<compile_context>
chip_gen: v7x
topology: tpu7x:2x2x1
jax: 0.10.0
libtpu: 0.0.40
codegen_flags: <defaults>
</compile_context>

<pallas_src>
import jax
import jax.numpy as jnp
import numpy as np
from jax.experimental import pallas as pl
from jax.experimental.pallas import tpu as pltpu


# ----------------------------------------------------------------------------
# Constant shift matrices: S[t][q, p] = 1  iff pixel q is the (ky,kx) neighbour
# of output pixel p inside the image (zero padding handled by leaving 0s).
# ----------------------------------------------------------------------------
def _build_shift_mats(H, W):
    hw = H * W
    s = np.zeros((9, hw, hw), np.float32)
    hh, ww = np.meshgrid(np.arange(H), np.arange(W), indexing="ij")
    p = (hh * W + ww).reshape(-1)
    for t, (ky, kx) in enumerate((ky, kx) for ky in range(3) for kx in range(3)):
        hs = hh + ky - 1
        ws = ww + kx - 1
        valid = ((hs >= 0) & (hs < H) & (ws >= 0) & (ws < W)).reshape(-1)
        q = (np.clip(hs, 0, H - 1) * W + np.clip(ws, 0, W - 1)).reshape(-1)
        s[t, q[valid], p[valid]] = 1.0
    return s


# ----------------------------------------------------------------------------
# Fused RDB kernel (one batch element per grid step, everything VMEM-resident)
# ----------------------------------------------------------------------------
def _make_rdb_kernel(depth, hw):
    inv_hw = 1.0 / float(hw)

    def se_wide(v, dw_ref, db_ref, uw_ref, ub_ref):
        # Squeeze-excite in "wide" form: the pooled vector is broadcast over
        # lanes so both 1x1 convs are lane-dense (N = HW) matmuls; all columns
        # of the result are identical -> elementwise multiply == channel scale.
        c = v.shape[0]
        pool = jnp.sum(v, axis=1, keepdims=True) * inv_hw          # (C, 1)
        pool_w = jnp.broadcast_to(pool, (c, hw))                   # (C, HW)
        a = jax.nn.sigmoid(
            jnp.dot(dw_ref[...], pool_w, preferred_element_type=jnp.float32)
            + db_ref[...])                                         # (Cd, HW)
        return jnp.maximum(
            jnp.dot(uw_ref[...], a, preferred_element_type=jnp.float32)
            + ub_ref[...], 0.0)                                    # (C, HW)

    def kernel(*refs):
        s_ref = refs[0]                       # (9, HW, HW) shift matrices
        x_ref = refs[1]                       # (1, C0, HW)
        layer_refs = refs[2:2 + 6 * depth]    # per RCAB: wbig, cb, dw, db, uw, ub
        tdw, tdb, tuw, tub, lffw, lffb = refs[2 + 6 * depth:2 + 6 * depth + 6]
        out_ref = refs[2 + 6 * depth + 6]     # (1, C0, HW)

        x = x_ref[0]                                               # (C0, HW)
        feat = x                                                   # dense concat, VMEM-resident
        for l in range(depth):
            wbig, cb, dw, db, uw, ub = layer_refs[6 * l:6 * l + 6]
            # im2col via constant shift matmuls -> (9*Cl, HW) patch matrix.
            patches = [
                jnp.dot(feat, s_ref[t], preferred_element_type=jnp.float32)
                for t in range(9)
            ]
            pmat = jnp.concatenate(patches, axis=0)                # (9*Cl, HW)
            # single big-K conv matmul + bias + ReLU
            y = jnp.dot(wbig[...], pmat,
                        preferred_element_type=jnp.float32) + cb[...]
            y = jnp.maximum(y, 0.0)                                # (growth, HW)
            ca = se_wide(y, dw, db, uw, ub)                        # (growth, HW)
            feat = jnp.concatenate([feat, y * ca], axis=0)         # dense connectivity

        ca = se_wide(feat, tdw, tdb, tuw, tub)                     # (Ct, HW)
        out = jnp.dot(lffw[...], feat * ca,
                      preferred_element_type=jnp.float32) + lffb[...]  # (C0, HW)
        out_ref[...] = (out + x).astype(out_ref.dtype)[None]       # + local residual

    return kernel


# ----------------------------------------------------------------------------
# Wrapper: one pallas_call for the whole RDB
# ----------------------------------------------------------------------------
def rdb_forward(params, x):
    """x: (N, C0, H, W) float32 (PyTorch NCHW). Returns (N, C0, H, W)."""
    n, c0, h, w = x.shape
    hw = h * w
    depth = len(params["rcab"])

    s_mats = jnp.asarray(_build_shift_mats(h, w))                  # (9, HW, HW)

    args = [s_mats, x.reshape(n, c0, hw)]
    in_specs = [
        pl.BlockSpec((9, hw, hw), lambda i: (0, 0, 0)),
        pl.BlockSpec((1, c0, hw), lambda i: (i, 0, 0)),
    ]

    def add_weight(a):
        args.append(a)
        in_specs.append(pl.BlockSpec(tuple(a.shape), lambda i: (0, 0)))

    for p in params["rcab"]:
        cout, cin = p["conv_w"].shape[0], p["conv_w"].shape[1]
        # (Cout, Cin, 3, 3) -> (Cout, 9*Cin), column order = tap-major then ci,
        # matching the patch-matrix row order built in the kernel.
        add_weight(jnp.transpose(p["conv_w"], (0, 2, 3, 1)).reshape(cout, 9 * cin))
        add_weight(p["conv_b"].reshape(-1, 1))
        add_weight(p["down_w"])
        add_weight(p["down_b"].reshape(-1, 1))
        add_weight(p["up_w"])
        add_weight(p["up_b"].reshape(-1, 1))
    add_weight(params["down_w"])
    add_weight(params["down_b"].reshape(-1, 1))
    add_weight(params["up_w"])
    add_weight(params["up_b"].reshape(-1, 1))
    add_weight(params["lff_w"])
    add_weight(params["lff_b"].reshape(-1, 1))

    out = pl.pallas_call(
        _make_rdb_kernel(depth, hw),
        out_shape=jax.ShapeDtypeStruct((n, c0, hw), jnp.float32),
        grid=(n,),
        in_specs=in_specs,
        out_specs=pl.BlockSpec((1, c0, hw), lambda i: (i, 0, 0)),
        compiler_params=pltpu.CompilerParams(
            dimension_semantics=("parallel",)),
    )(*args)
    return out.reshape(n, c0, h, w)


# ----------------------------------------------------------------------------
# Deterministic parameter init (PyTorch layouts; shapes match RDB.__init__)
# ----------------------------------------------------------------------------
def init_rdb_params(key, in_ch, growth, depth, reduct):
    def winit(k, shape, fan_in):
        return jax.random.normal(k, shape, jnp.float32) / np.sqrt(float(fan_in))

    keys = iter(jax.random.split(key, 6 * depth + 6))
    params = {"rcab": []}
    ch = in_ch
    for _ in range(depth):
        gr = int(growth / reduct)
        params["rcab"].append({
            "conv_w": winit(next(keys), (growth, ch, 3, 3), 9 * ch),
            "conv_b": 0.01 * jax.random.normal(next(keys), (growth,), jnp.float32),
            "down_w": winit(next(keys), (gr, growth), growth),
            "down_b": 0.01 * jax.random.normal(next(keys), (gr,), jnp.float32),
            "up_w": winit(next(keys), (growth, gr), gr),
            "up_b": 0.01 * jax.random.normal(next(keys), (growth,), jnp.float32),
        })
        ch += growth
    cr = int(ch / reduct)
    params["down_w"] = winit(next(keys), (cr, ch), ch)
    params["down_b"] = 0.01 * jax.random.normal(next(keys), (cr,), jnp.float32)
    params["up_w"] = winit(next(keys), (ch, cr), cr)
    params["up_b"] = 0.01 * jax.random.normal(next(keys), (ch,), jnp.float32)
    params["lff_w"] = winit(next(keys), (in_ch, ch), ch)
    params["lff_b"] = 0.01 * jax.random.normal(next(keys), (in_ch,), jnp.float32)
    return params


# ----------------------------------------------------------------------------
# Pure-JAX reference (mirrors the PyTorch forward, NCHW) for a sanity check
# ----------------------------------------------------------------------------
def rdb_reference(params, x):
    def conv3(v, w, b):
        y = jax.lax.conv_general_dilated(
            v, w, window_strides=(1, 1), padding="SAME",
            dimension_numbers=("NCHW", "OIHW", "NCHW"))
        return y + b[None, :, None, None]

    def se(v, dw, db, uw, ub):
        pool = jnp.mean(v, axis=(2, 3))
        a = jax.nn.sigmoid(pool @ dw.T + db)
        b = jax.nn.relu(a @ uw.T + ub)
        return b[:, :, None, None]

    res = x
    for p in params["rcab"]:
        y = jax.nn.relu(conv3(x, p["conv_w"], p["conv_b"]))
        y = y * se(y, p["down_w"], p["down_b"], p["up_w"], p["up_b"])
        x = jnp.concatenate([x, y], axis=1)
    x = x * se(x, params["down_w"], params["down_b"], params["up_w"], params["up_b"])
    x = (jnp.einsum("oi,nihw->nohw", params["lff_w"], x)
         + params["lff_b"][None, :, None, None])
    return res + x


# ----------------------------------------------------------------------------
if __name__ == "__main__":
    key = jax.random.PRNGKey(0)
    kx, kp = jax.random.split(key)

    # RDB(inChannel=8, growthRate=8, layerDepth=3, dilation=1, reductRateCa=2)
    n, c0, h, w = 2, 8, 16, 16
    growth, depth, reduct = 8, 3, 2

    x = jax.random.normal(kx, (n, c0, h, w), jnp.float32)   # NCHW like PyTorch
    params = init_rdb_params(kp, c0, growth, depth, reduct)

    out = jax.jit(rdb_forward)(params, x)
    out = jax.block_until_ready(out)
    assert out.shape == (n, c0, h, w) and out.dtype == jnp.float32

    ref = rdb_reference(params, x)
    np.testing.assert_allclose(np.asarray(out), np.asarray(ref),
                               rtol=2e-2, atol=2e-2)
    print("KERNEL_OK")
</pallas_src>

<mosaic_0001>
module attributes {stable_mosaic.version = 11 : i64} {
  func.func @kernel(%arg0: i32, %arg1: memref<9x256x256xf32, #tpu.memory_space<vmem>>, %arg2: memref<1x8x256xf32, #tpu.memory_space<vmem>>, %arg3: memref<8x72xf32, #tpu.memory_space<vmem>>, %arg4: memref<8x1xf32, #tpu.memory_space<vmem>>, %arg5: memref<4x8xf32, #tpu.memory_space<vmem>>, %arg6: memref<4x1xf32, #tpu.memory_space<vmem>>, %arg7: memref<8x4xf32, #tpu.memory_space<vmem>>, %arg8: memref<8x1xf32, #tpu.memory_space<vmem>>, %arg9: memref<8x144xf32, #tpu.memory_space<vmem>>, %arg10: memref<8x1xf32, #tpu.memory_space<vmem>>, %arg11: memref<4x8xf32, #tpu.memory_space<vmem>>, %arg12: memref<4x1xf32, #tpu.memory_space<vmem>>, %arg13: memref<8x4xf32, #tpu.memory_space<vmem>>, %arg14: memref<8x1xf32, #tpu.memory_space<vmem>>, %arg15: memref<8x216xf32, #tpu.memory_space<vmem>>, %arg16: memref<8x1xf32, #tpu.memory_space<vmem>>, %arg17: memref<4x8xf32, #tpu.memory_space<vmem>>, %arg18: memref<4x1xf32, #tpu.memory_space<vmem>>, %arg19: memref<8x4xf32, #tpu.memory_space<vmem>>, %arg20: memref<8x1xf32, #tpu.memory_space<vmem>>, %arg21: memref<16x32xf32, #tpu.memory_space<vmem>>, %arg22: memref<16x1xf32, #tpu.memory_space<vmem>>, %arg23: memref<32x16xf32, #tpu.memory_space<vmem>>, %arg24: memref<32x1xf32, #tpu.memory_space<vmem>>, %arg25: memref<8x32xf32, #tpu.memory_space<vmem>>, %arg26: memref<8x1xf32, #tpu.memory_space<vmem>>, %arg27: memref<1x8x256xf32, #tpu.memory_space<vmem>>) attributes {dimension_semantics = [#tpu.dimension_semantics<parallel>], iteration_bounds = array<i64: 2>, scalar_prefetch = 0 : i64, scratch_operands = 0 : i64, tpu.core_type = #tpu.core_type<tc>, window_params = [{pipeline_mode = #tpu.pipeline_mode<synchronous>, transform_indices = @transform_0, window_bounds = array<i64: 9, 256, 256>}, {transform_indices = @transform_1, window_bounds = array<i64: 1, 8, 256>}, {pipeline_mode = #tpu.pipeline_mode<synchronous>, transform_indices = @transform_2, window_bounds = array<i64: 8, 72>}, {pipeline_mode = #tpu.pipeline_mode<synchronous>, transform_indices = @transform_3, window_bounds = array<i64: 8, 1>}, {pipeline_mode = #tpu.pipeline_mode<synchronous>, transform_indices = @transform_4, window_bounds = array<i64: 4, 8>}, {pipeline_mode = #tpu.pipeline_mode<synchronous>, transform_indices = @transform_5, window_bounds = array<i64: 4, 1>}, {pipeline_mode = #tpu.pipeline_mode<synchronous>, transform_indices = @transform_6, window_bounds = array<i64: 8, 4>}, {pipeline_mode = #tpu.pipeline_mode<synchronous>, transform_indices = @transform_7, window_bounds = array<i64: 8, 1>}, {pipeline_mode = #tpu.pipeline_mode<synchronous>, transform_indices = @transform_8, window_bounds = array<i64: 8, 144>}, {pipeline_mode = #tpu.pipeline_mode<synchronous>, transform_indices = @transform_9, window_bounds = array<i64: 8, 1>}, {pipeline_mode = #tpu.pipeline_mode<synchronous>, transform_indices = @transform_10, window_bounds = array<i64: 4, 8>}, {pipeline_mode = #tpu.pipeline_mode<synchronous>, transform_indices = @transform_11, window_bounds = array<i64: 4, 1>}, {pipeline_mode = #tpu.pipeline_mode<synchronous>, transform_indices = @transform_12, window_bounds = array<i64: 8, 4>}, {pipeline_mode = #tpu.pipeline_mode<synchronous>, transform_indices = @transform_13, window_bounds = array<i64: 8, 1>}, {pipeline_mode = #tpu.pipeline_mode<synchronous>, transform_indices = @transform_14, window_bounds = array<i64: 8, 216>}, {pipeline_mode = #tpu.pipeline_mode<synchronous>, transform_indices = @transform_15, window_bounds = array<i64: 8, 1>}, {pipeline_mode = #tpu.pipeline_mode<synchronous>, transform_indices = @transform_16, window_bounds = array<i64: 4, 8>}, {pipeline_mode = #tpu.pipeline_mode<synchronous>, transform_indices = @transform_17, window_bounds = array<i64: 4, 1>}, {pipeline_mode = #tpu.pipeline_mode<synchronous>, transform_indices = @transform_18, window_bounds = array<i64: 8, 4>}, {pipeline_mode = #tpu.pipeline_mode<synchronous>, transform_indices = @transform_19, window_bounds = array<i64: 8, 1>}, {pipeline_mode = #tpu.pipeline_mode<synchronous>, transform_indices = @transform_20, window_bounds = array<i64: 16, 32>}, {pipeline_mode = #tpu.pipeline_mode<synchronous>, transform_indices = @transform_21, window_bounds = array<i64: 16, 1>}, {pipeline_mode = #tpu.pipeline_mode<synchronous>, transform_indices = @transform_22, window_bounds = array<i64: 32, 16>}, {pipeline_mode = #tpu.pipeline_mode<synchronous>, transform_indices = @transform_23, window_bounds = array<i64: 32, 1>}, {pipeline_mode = #tpu.pipeline_mode<synchronous>, transform_indices = @transform_24, window_bounds = array<i64: 8, 32>}, {pipeline_mode = #tpu.pipeline_mode<synchronous>, transform_indices = @transform_25, window_bounds = array<i64: 8, 1>}, {transform_indices = @transform_26, window_bounds = array<i64: 1, 8, 256>}]} {
    %c0 = arith.constant 0 : index
    %c0_0 = arith.constant 0 : index
    %c0_1 = arith.constant 0 : index
    %0 = vector.load %arg2[%c0, %c0_0, %c0_1] : memref<1x8x256xf32, #tpu.memory_space<vmem>>, vector<1x8x256xf32>
    %1 = vector.shape_cast %0 : vector<1x8x256xf32> to vector<8x256xf32>
    %c0_2 = arith.constant 0 : index
    %c0_3 = arith.constant 0 : index
    %c0_4 = arith.constant 0 : index
    %2 = vector.load %arg1[%c0_2, %c0_3, %c0_4] : memref<9x256x256xf32, #tpu.memory_space<vmem>>, vector<1x256x256xf32>
    %3 = vector.shape_cast %2 : vector<1x256x256xf32> to vector<256x256xf32>
    %cst = arith.constant dense<0.000000e+00> : vector<8x256xf32>
    %4 = tpu.matmul %1, %3, %cst {dimension_numbers = #tpu.dot_dimension_numbers<[1], [0], [0], [1], [0, 0, 1, 1], [], []>} : vector<8x256xf32>, vector<256x256xf32>, vector<8x256xf32> -> vector<8x256xf32>
    %c1 = arith.constant 1 : index
    %c0_5 = arith.constant 0 : index
    %c0_6 = arith.constant 0 : index
    %5 = vector.load %arg1[%c1, %c0_5, %c0_6] : memref<9x256x256xf32, #tpu.memory_space<vmem>>, vector<1x256x256xf32>
    %6 = vector.shape_cast %5 : vector<1x256x256xf32> to vector<256x256xf32>
    %cst_7 = arith.constant dense<0.000000e+00> : vector<8x256xf32>
    %7 = tpu.matmul %1, %6, %cst_7 {dimension_numbers = #tpu.dot_dimension_numbers<[1], [0], [0], [1], [0, 0, 1, 1], [], []>} : vector<8x256xf32>, vector<256x256xf32>, vector<8x256xf32> -> vector<8x256xf32>
    %c2 = arith.constant 2 : index
    %c0_8 = arith.constant 0 : index
    %c0_9 = arith.constant 0 : index
    %8 = vector.load %arg1[%c2, %c0_8, %c0_9] : memref<9x256x256xf32, #tpu.memory_space<vmem>>, vector<1x256x256xf32>
    %9 = vector.shape_cast %8 : vector<1x256x256xf32> to vector<256x256xf32>
    %cst_10 = arith.constant dense<0.000000e+00> : vector<8x256xf32>
    %10 = tpu.matmul %1, %9, %cst_10 {dimension_numbers = #tpu.dot_dimension_numbers<[1], [0], [0], [1], [0, 0, 1, 1], [], []>} : vector<8x256xf32>, vector<256x256xf32>, vector<8x256xf32> -> vector<8x256xf32>
    %c3 = arith.constant 3 : index
    %c0_11 = arith.constant 0 : index
    %c0_12 = arith.constant 0 : index
    %11 = vector.load %arg1[%c3, %c0_11, %c0_12] : memref<9x256x256xf32, #tpu.memory_space<vmem>>, vector<1x256x256xf32>
    %12 = vector.shape_cast %11 : vector<1x256x256xf32> to vector<256x256xf32>
    %cst_13 = arith.constant dense<0.000000e+00> : vector<8x256xf32>
    %13 = tpu.matmul %1, %12, %cst_13 {dimension_numbers = #tpu.dot_dimension_numbers<[1], [0], [0], [1], [0, 0, 1, 1], [], []>} : vector<8x256xf32>, vector<256x256xf32>, vector<8x256xf32> -> vector<8x256xf32>
    %c4 = arith.constant 4 : index
    %c0_14 = arith.constant 0 : index
    %c0_15 = arith.constant 0 : index
    %14 = vector.load %arg1[%c4, %c0_14, %c0_15] : memref<9x256x256xf32, #tpu.memory_space<vmem>>, vector<1x256x256xf32>
    %15 = vector.shape_cast %14 : vector<1x256x256xf32> to vector<256x256xf32>
    %cst_16 = arith.constant dense<0.000000e+00> : vector<8x256xf32>
    %16 = tpu.matmul %1, %15, %cst_16 {dimension_numbers = #tpu.dot_dimension_numbers<[1], [0], [0], [1], [0, 0, 1, 1], [], []>} : vector<8x256xf32>, vector<256x256xf32>, vector<8x256xf32> -> vector<8x256xf32>
    %c5 = arith.constant 5 : index
    %c0_17 = arith.constant 0 : index
    %c0_18 = arith.constant 0 : index
    %17 = vector.load %arg1[%c5, %c0_17, %c0_18] : memref<9x256x256xf32, #tpu.memory_space<vmem>>, vector<1x256x256xf32>
    %18 = vector.shape_cast %17 : vector<1x256x256xf32> to vector<256x256xf32>
    %cst_19 = arith.constant dense<0.000000e+00> : vector<8x256xf32>
    %19 = tpu.matmul %1, %18, %cst_19 {dimension_numbers = #tpu.dot_dimension_numbers<[1], [0], [0], [1], [0, 0, 1, 1], [], []>} : vector<8x256xf32>, vector<256x256xf32>, vector<8x256xf32> -> vector<8x256xf32>
    %c6 = arith.constant 6 : index
    %c0_20 = arith.constant 0 : index
    %c0_21 = arith.constant 0 : index
    %20 = vector.load %arg1[%c6, %c0_20, %c0_21] : memref<9x256x256xf32, #tpu.memory_space<vmem>>, vector<1x256x256xf32>
    %21 = vector.shape_cast %20 : vector<1x256x256xf32> to vector<256x256xf32>
    %cst_22 = arith.constant dense<0.000000e+00> : vector<8x256xf32>
    %22 = tpu.matmul %1, %21, %cst_22 {dimension_numbers = #tpu.dot_dimension_numbers<[1], [0], [0], [1], [0, 0, 1, 1], [], []>} : vector<8x256xf32>, vector<256x256xf32>, vector<8x256xf32> -> vector<8x256xf32>
    %c7 = arith.constant 7 : index
    %c0_23 = arith.constant 0 : index
    %c0_24 = arith.constant 0 : index
    %23 = vector.load %arg1[%c7, %c0_23, %c0_24] : memref<9x256x256xf32, #tpu.memory_space<vmem>>, vector<1x256x256xf32>
    %24 = vector.shape_cast %23 : vector<1x256x256xf32> to vector<256x256xf32>
    %cst_25 = arith.constant dense<0.000000e+00> : vector<8x256xf32>
    %25 = tpu.matmul %1, %24, %cst_25 {dimension_numbers = #tpu.dot_dimension_numbers<[1], [0], [0], [1], [0, 0, 1, 1], [], []>} : vector<8x256xf32>, vector<256x256xf32>, vector<8x256xf32> -> vector<8x256xf32>
    %c8 = arith.constant 8 : index
    %c0_26 = arith.constant 0 : index
    %c0_27 = arith.constant 0 : index
    %26 = vector.load %arg1[%c8, %c0_26, %c0_27] : memref<9x256x256xf32, #tpu.memory_space<vmem>>, vector<1x256x256xf32>
    %27 = vector.shape_cast %26 : vector<1x256x256xf32> to vector<256x256xf32>
    %cst_28 = arith.constant dense<0.000000e+00> : vector<8x256xf32>
    %28 = tpu.matmul %1, %27, %cst_28 {dimension_numbers = #tpu.dot_dimension_numbers<[1], [0], [0], [1], [0, 0, 1, 1], [], []>} : vector<8x256xf32>, vector<256x256xf32>, vector<8x256xf32> -> vector<8x256xf32>
    %29 = tpu.concatenate %4, %7, %10, %13, %16, %19, %22, %25, %28 in 0 : vector<8x256xf32>, vector<8x256xf32>, vector<8x256xf32>, vector<8x256xf32>, vector<8x256xf32>, vector<8x256xf32>, vector<8x256xf32>, vector<8x256xf32>, vector<8x256xf32> -> vector<72x256xf32>
    %c0_29 = arith.constant 0 : index
    %c0_30 = arith.constant 0 : index
    %30 = vector.load %arg3[%c0_29, %c0_30] : memref<8x72xf32, #tpu.memory_space<vmem>>, vector<8x72xf32>
    %cst_31 = arith.constant dense<0.000000e+00> : vector<8x256xf32>
    %31 = tpu.matmul %30, %29, %cst_31 {dimension_numbers = #tpu.dot_dimension_numbers<[1], [0], [0], [1], [0, 0, 1, 1], [], []>} : vector<8x72xf32>, vector<72x256xf32>, vector<8x256xf32> -> vector<8x256xf32>
    %c0_32 = arith.constant 0 : index
    %c0_33 = arith.constant 0 : index
    %32 = vector.load %arg4[%c0_32, %c0_33] : memref<8x1xf32, #tpu.memory_space<vmem>>, vector<8x1xf32>
    %33 = vector.broadcast %32 : vector<8x1xf32> to vector<8x256xf32>
    %34 = arith.addf %31, %33 : vector<8x256xf32>
    %cst_34 = arith.constant 0.000000e+00 : f32
    %35 = vector.broadcast %cst_34 : f32 to vector<8x256xf32>
    %36 = arith.maximumf %34, %35 : vector<8x256xf32>
    %cst_35 = arith.constant dense<0.000000e+00> : vector<8xf32>
    %37 = vector.multi_reduction <add>, %36, %cst_35 [1] : vector<8x256xf32> to vector<8xf32>
    %38 = vector.shape_cast %37 : vector<8xf32> to vector<8x1xf32>
    %cst_36 = arith.constant 3.906250e-03 : f32
    %39 = vector.broadcast %cst_36 : f32 to vector<8x1xf32>
    %40 = arith.mulf %38, %39 : vector<8x1xf32>
    %41 = vector.shape_cast %40 : vector<8x1xf32> to vector<8x1xf32>
    %42 = vector.broadcast %41 : vector<8x1xf32> to vector<8x256xf32>
    %c0_37 = arith.constant 0 : index
    %c0_38 = arith.constant 0 : index
    %43 = vector.load %arg5[%c0_37, %c0_38] : memref<4x8xf32, #tpu.memory_space<vmem>>, vector<4x8xf32>
    %cst_39 = arith.constant dense<0.000000e+00> : vector<4x256xf32>
    %44 = tpu.matmul %43, %42, %cst_39 {dimension_numbers = #tpu.dot_dimension_numbers<[1], [0], [0], [1], [0, 0, 1, 1], [], []>} : vector<4x8xf32>, vector<8x256xf32>, vector<4x256xf32> -> vector<4x256xf32>
    %c0_40 = arith.constant 0 : index
    %c0_41 = arith.constant 0 : index
    %45 = vector.load %arg6[%c0_40, %c0_41] : memref<4x1xf32, #tpu.memory_space<vmem>>, vector<4x1xf32>
    %46 = vector.broadcast %45 : vector<4x1xf32> to vector<4x256xf32>
    %47 = arith.addf %44, %46 : vector<4x256xf32>
    %48 = arith.negf %47 : vector<4x256xf32>
    %49 = math.exp %48 : vector<4x256xf32>
    %cst_42 = arith.constant 1.000000e+00 : f32
    %50 = vector.broadcast %cst_42 : f32 to vector<4x256xf32>
    %51 = arith.addf %50, %49 : vector<4x256xf32>
    %52 = arith.divf %50, %51 : vector<4x256xf32>
    %c0_43 = arith.constant 0 : index
    %c0_44 = arith.constant 0 : index
    %53 = vector.load %arg7[%c0_43, %c0_44] : memref<8x4xf32, #tpu.memory_space<vmem>>, vector<8x4xf32>
    %cst_45 = arith.constant dense<0.000000e+00> : vector<8x256xf32>
    %54 = tpu.matmul %53, %52, %cst_45 {dimension_numbers = #tpu.dot_dimension_numbers<[1], [0], [0], [1], [0, 0, 1, 1], [], []>} : vector<8x4xf32>, vector<4x256xf32>, vector<8x256xf32> -> vector<8x256xf32>
    %c0_46 = arith.constant 0 : index
    %c0_47 = arith.constant 0 : index
    %55 = vector.load %arg8[%c0_46, %c0_47] : memref<8x1xf32, #tpu.memory_space<vmem>>, vector<8x1xf32>
    %56 = vector.broadcast %55 : vector<8x1xf32> to vector<8x256xf32>
    %57 = arith.addf %54, %56 : vector<8x256xf32>
    %cst_48 = arith.constant 0.000000e+00 : f32
    %58 = vector.broadcast %cst_48 : f32 to vector<8x256xf32>
    %59 = arith.maximumf %57, %58 : vector<8x256xf32>
    %60 = arith.mulf %36, %59 : vector<8x256xf32>
    %61 = tpu.concatenate %1, %60 in 0 : vector<8x256xf32>, vector<8x256xf32> -> vector<16x256xf32>
    %c0_49 = arith.constant 0 : index
    %c0_50 = arith.constant 0 : index
    %c0_51 = arith.constant 0 : index
    %62 = vector.load %arg1[%c0_49, %c0_50, %c0_51] : memref<9x256x256xf32, #tpu.memory_space<vmem>>, vector<1x256x256xf32>
    %63 = vector.shape_cast %62 : vector<1x256x256xf32> to vector<256x256xf32>
    %cst_52 = arith.constant dense<0.000000e+00> : vector<16x256xf32>
    %64 = tpu.matmul %61, %63, %cst_52 {dimension_numbers = #tpu.dot_dimension_numbers<[1], [0], [0], [1], [0, 0, 1, 1], [], []>} : vector<16x256xf32>, vector<256x256xf32>, vector<16x256xf32> -> vector<16x256xf32>
    %c1_53 = arith.constant 1 : index
    %c0_54 = arith.constant 0 : index
    %c0_55 = arith.constant 0 : index
    %65 = vector.load %arg1[%c1_53, %c0_54, %c0_55] : memref<9x256x256xf32, #tpu.memory_space<vmem>>, vector<1x256x256xf32>
    %66 = vector.shape_cast %65 : vector<1x256x256xf32> to vector<256x256xf32>
    %cst_56 = arith.constant dense<0.000000e+00> : vector<16x256xf32>
    %67 = tpu.matmul %61, %66, %cst_56 {dimension_numbers = #tpu.dot_dimension_numbers<[1], [0], [0], [1], [0, 0, 1, 1], [], []>} : vector<16x256xf32>, vector<256x256xf32>, vector<16x256xf32> -> vector<16x256xf32>
    %c2_57 = arith.constant 2 : index
    %c0_58 = arith.constant 0 : index
    %c0_59 = arith.constant 0 : index
    %68 = vector.load %arg1[%c2_57, %c0_58, %c0_59] : memref<9x256x256xf32, #tpu.memory_space<vmem>>, vector<1x256x256xf32>
    %69 = vector.shape_cast %68 : vector<1x256x256xf32> to vector<256x256xf32>
    %cst_60 = arith.constant dense<0.000000e+00> : vector<16x256xf32>
    %70 = tpu.matmul %61, %69, %cst_60 {dimension_numbers = #tpu.dot_dimension_numbers<[1], [0], [0], [1], [0, 0, 1, 1], [], []>} : vector<16x256xf32>, vector<256x256xf32>, vector<16x256xf32> -> vector<16x256xf32>
    %c3_61 = arith.constant 3 : index
    %c0_62 = arith.constant 0 : index
    %c0_63 = arith.constant 0 : index
    %71 = vector.load %arg1[%c3_61, %c0_62, %c0_63] : memref<9x256x256xf32, #tpu.memory_space<vmem>>, vector<1x256x256xf32>
    %72 = vector.shape_cast %71 : vector<1x256x256xf32> to vector<256x256xf32>
    %cst_64 = arith.constant dense<0.000000e+00> : vector<16x256xf32>
    %73 = tpu.matmul %61, %72, %cst_64 {dimension_numbers = #tpu.dot_dimension_numbers<[1], [0], [0], [1], [0, 0, 1, 1], [], []>} : vector<16x256xf32>, vector<256x256xf32>, vector<16x256xf32> -> vector<16x256xf32>
    %c4_65 = arith.constant 4 : index
    %c0_66 = arith.constant 0 : index
    %c0_67 = arith.constant 0 : index
    %74 = vector.load %arg1[%c4_65, %c0_66, %c0_67] : memref<9x256x256xf32, #tpu.memory_space<vmem>>, vector<1x256x256xf32>
    %75 = vector.shape_cast %74 : vector<1x256x256xf32> to vector<256x256xf32>
    %cst_68 = arith.constant dense<0.000000e+00> : vector<16x256xf32>
    %76 = tpu.matmul %61, %75, %cst_68 {dimension_numbers = #tpu.dot_dimension_numbers<[1], [0], [0], [1], [0, 0, 1, 1], [], []>} : vector<16x256xf32>, vector<256x256xf32>, vector<16x256xf32> -> vector<16x256xf32>
    %c5_69 = arith.constant 5 : index
    %c0_70 = arith.constant 0 : index
    %c0_71 = arith.constant 0 : index
    %77 = vector.load %arg1[%c5_69, %c0_70, %c0_71] : memref<9x256x256xf32, #tpu.memory_space<vmem>>, vector<1x256x256xf32>
    %78 = vector.shape_cast %77 : vector<1x256x256xf32> to vector<256x256xf32>
    %cst_72 = arith.constant dense<0.000000e+00> : vector<16x256xf32>
    %79 = tpu.matmul %61, %78, %cst_72 {dimension_numbers = #tpu.dot_dimension_numbers<[1], [0], [0], [1], [0, 0, 1, 1], [], []>} : vector<16x256xf32>, vector<256x256xf32>, vector<16x256xf32> -> vector<16x256xf32>
    %c6_73 = arith.constant 6 : index
    %c0_74 = arith.constant 0 : index
    %c0_75 = arith.constant 0 : index
    %80 = vector.load %arg1[%c6_73, %c0_74, %c0_75] : memref<9x256x256xf32, #tpu.memory_space<vmem>>, vector<1x256x256xf32>
    %81 = vector.shape_cast %80 : vector<1x256x256xf32> to vector<256x256xf32>
    %cst_76 = arith.constant dense<0.000000e+00> : vector<16x256xf32>
    %82 = tpu.matmul %61, %81, %cst_76 {dimension_numbers = #tpu.dot_dimension_numbers<[1], [0], [0], [1], [0, 0, 1, 1], [], []>} : vector<16x256xf32>, vector<256x256xf32>, vector<16x256xf32> -> vector<16x256xf32>
    %c7_77 = arith.constant 7 : index
    %c0_78 = arith.constant 0 : index
    %c0_79 = arith.constant 0 : index
    %83 = vector.load %arg1[%c7_77, %c0_78, %c0_79] : memref<9x256x256xf32, #tpu.memory_space<vmem>>, vector<1x256x256xf32>
    %84 = vector.shape_cast %83 : vector<1x256x256xf32> to vector<256x256xf32>
    %cst_80 = arith.constant dense<0.000000e+00> : vector<16x256xf32>
    %85 = tpu.matmul %61, %84, %cst_80 {dimension_numbers = #tpu.dot_dimension_numbers<[1], [0], [0], [1], [0, 0, 1, 1], [], []>} : vector<16x256xf32>, vector<256x256xf32>, vector<16x256xf32> -> vector<16x256xf32>
    %c8_81 = arith.constant 8 : index
    %c0_82 = arith.constant 0 : index
    %c0_83 = arith.constant 0 : index
    %86 = vector.load %arg1[%c8_81, %c0_82, %c0_83] : memref<9x256x256xf32, #tpu.memory_space<vmem>>, vector<1x256x256xf32>
    %87 = vector.shape_cast %86 : vector<1x256x256xf32> to vector<256x256xf32>
    %cst_84 = arith.constant dense<0.000000e+00> : vector<16x256xf32>
    %88 = tpu.matmul %61, %87, %cst_84 {dimension_numbers = #tpu.dot_dimension_numbers<[1], [0], [0], [1], [0, 0, 1, 1], [], []>} : vector<16x256xf32>, vector<256x256xf32>, vector<16x256xf32> -> vector<16x256xf32>
    %89 = tpu.concatenate %64, %67, %70, %73, %76, %79, %82, %85, %88 in 0 : vector<16x256xf32>, vector<16x256xf32>, vector<16x256xf32>, vector<16x256xf32>, vector<16x256xf32>, vector<16x256xf32>, vector<16x256xf32>, vector<16x256xf32>, vector<16x256xf32> -> vector<144x256xf32>
    %c0_85 = arith.constant 0 : index
    %c0_86 = arith.constant 0 : index
    %90 = vector.load %arg9[%c0_85, %c0_86] : memref<8x144xf32, #tpu.memory_space<vmem>>, vector<8x144xf32>
    %cst_87 = arith.constant dense<0.000000e+00> : vector<8x256xf32>
    %91 = tpu.matmul %90, %89, %cst_87 {dimension_numbers = #tpu.dot_dimension_numbers<[1], [0], [0], [1], [0, 0, 1, 1], [], []>} : vector<8x144xf32>, vector<144x256xf32>, vector<8x256xf32> -> vector<8x256xf32>
    %c0_88 = arith.constant 0 : index
    %c0_89 = arith.constant 0 : index
    %92 = vector.load %arg10[%c0_88, %c0_89] : memref<8x1xf32, #tpu.memory_space<vmem>>, vector<8x1xf32>
    %93 = vector.broadcast %92 : vector<8x1xf32> to vector<8x256xf32>
    %94 = arith.addf %91, %93 : vector<8x256xf32>
    %cst_90 = arith.constant 0.000000e+00 : f32
    %95 = vector.broadcast %cst_90 : f32 to vector<8x256xf32>
    %96 = arith.maximumf %94, %95 : vector<8x256xf32>
    %cst_91 = arith.constant dense<0.000000e+00> : vector<8xf32>
    %97 = vector.multi_reduction <add>, %96, %cst_91 [1] : vector<8x256xf32> to vector<8xf32>
    %98 = vector.shape_cast %97 : vector<8xf32> to vector<8x1xf32>
    %cst_92 = arith.constant 3.906250e-03 : f32
    %99 = vector.broadcast %cst_92 : f32 to vector<8x1xf32>
    %100 = arith.mulf %98, %99 : vector<8x1xf32>
    %101 = vector.shape_cast %100 : vector<8x1xf32> to vector<8x1xf32>
    %102 = vector.broadcast %101 : vector<8x1xf32> to vector<8x256xf32>
    %c0_93 = arith.constant 0 : index
    %c0_94 = arith.constant 0 : index
    %103 = vector.load %arg11[%c0_93, %c0_94] : memref<4x8xf32, #tpu.memory_space<vmem>>, vector<4x8xf32>
    %cst_95 = arith.constant dense<0.000000e+00> : vector<4x256xf32>
    %104 = tpu.matmul %103, %102, %cst_95 {dimension_numbers = #tpu.dot_dimension_numbers<[1], [0], [0], [1], [0, 0, 1, 1], [], []>} : vector<4x8xf32>, vector<8x256xf32>, vector<4x256xf32> -> vector<4x256xf32>
    %c0_96 = arith.constant 0 : index
    %c0_97 = arith.constant 0 : index
    %105 = vector.load %arg12[%c0_96, %c0_97] : memref<4x1xf32, #tpu.memory_space<vmem>>, vector<4x1xf32>
    %106 = vector.broadcast %105 : vector<4x1xf32> to vector<4x256xf32>
    %107 = arith.addf %104, %106 : vector<4x256xf32>
    %108 = arith.negf %107 : vector<4x256xf32>
    %109 = math.exp %108 : vector<4x256xf32>
    %cst_98 = arith.constant 1.000000e+00 : f32
    %110 = vector.broadcast %cst_98 : f32 to vector<4x256xf32>
    %111 = arith.addf %110, %109 : vector<4x256xf32>
    %112 = arith.divf %110, %111 : vector<4x256xf32>
    %c0_99 = arith.constant 0 : index
    %c0_100 = arith.constant 0 : index
    %113 = vector.load %arg13[%c0_99, %c0_100] : memref<8x4xf32, #tpu.memory_space<vmem>>, vector<8x4xf32>
    %cst_101 = arith.constant dense<0.000000e+00> : vector<8x256xf32>
    %114 = tpu.matmul %113, %112, %cst_101 {dimension_numbers = #tpu.dot_dimension_numbers<[1], [0], [0], [1], [0, 0, 1, 1], [], []>} : vector<8x4xf32>, vector<4x256xf32>, vector<8x256xf32> -> vector<8x256xf32>
    %c0_102 = arith.constant 0 : index
    %c0_103 = arith.constant 0 : index
    %115 = vector.load %arg14[%c0_102, %c0_103] : memref<8x1xf32, #tpu.memory_space<vmem>>, vector<8x1xf32>
    %116 = vector.broadcast %115 : vector<8x1xf32> to vector<8x256xf32>
    %117 = arith.addf %114, %116 : vector<8x256xf32>
    %cst_104 = arith.constant 0.000000e+00 : f32
    %118 = vector.broadcast %cst_104 : f32 to vector<8x256xf32>
    %119 = arith.maximumf %117, %118 : vector<8x256xf32>
    %120 = arith.mulf %96, %119 : vector<8x256xf32>
    %121 = tpu.concatenate %61, %120 in 0 : vector<16x256xf32>, vector<8x256xf32> -> vector<24x256xf32>
    %c0_105 = arith.constant 0 : index
    %c0_106 = arith.constant 0 : index
    %c0_107 = arith.constant 0 : index
    %122 = vector.load %arg1[%c0_105, %c0_106, %c0_107] : memref<9x256x256xf32, #tpu.memory_space<vmem>>, vector<1x256x256xf32>
    %123 = vector.shape_cast %122 : vector<1x256x256xf32> to vector<256x256xf32>
    %cst_108 = arith.constant dense<0.000000e+00> : vector<24x256xf32>
    %124 = tpu.matmul %121, %123, %cst_108 {dimension_numbers = #tpu.dot_dimension_numbers<[1], [0], [0], [1], [0, 0, 1, 1], [], []>} : vector<24x256xf32>, vector<256x256xf32>, vector<24x256xf32> -> vector<24x256xf32>
    %c1_109 = arith.constant 1 : index
    %c0_110 = arith.constant 0 : index
    %c0_111 = arith.constant 0 : index
    %125 = vector.load %arg1[%c1_109, %c0_110, %c0_111] : memref<9x256x256xf32, #tpu.memory_space<vmem>>, vector<1x256x256xf32>
    %126 = vector.shape_cast %125 : vector<1x256x256xf32> to vector<256x256xf32>
    %cst_112 = arith.constant dense<0.000000e+00> : vector<24x256xf32>
    %127 = tpu.matmul %121, %126, %cst_112 {dimension_numbers = #tpu.dot_dimension_numbers<[1], [0], [0], [1], [0, 0, 1, 1], [], []>} : vector<24x256xf32>, vector<256x256xf32>, vector<24x256xf32> -> vector<24x256xf32>
    %c2_113 = arith.constant 2 : index
    %c0_114 = arith.constant 0 : index
    %c0_115 = arith.constant 0 : index
    %128 = vector.load %arg1[%c2_113, %c0_114, %c0_115] : memref<9x256x256xf32, #tpu.memory_space<vmem>>, vector<1x256x256xf32>
    %129 = vector.shape_cast %128 : vector<1x256x256xf32> to vector<256x256xf32>
    %cst_116 = arith.constant dense<0.000000e+00> : vector<24x256xf32>
    %130 = tpu.matmul %121, %129, %cst_116 {dimension_numbers = #tpu.dot_dimension_numbers<[1], [0], [0], [1], [0, 0, 1, 1], [], []>} : vector<24x256xf32>, vector<256x256xf32>, vector<24x256xf32> -> vector<24x256xf32>
    %c3_117 = arith.constant 3 : index
    %c0_118 = arith.constant 0 : index
    %c0_119 = arith.constant 0 : index
    %131 = vector.load %arg1[%c3_117, %c0_118, %c0_119] : memref<9x256x256xf32, #tpu.memory_space<vmem>>, vector<1x256x256xf32>
    %132 = vector.shape_cast %131 : vector<1x256x256xf32> to vector<256x256xf32>
    %cst_120 = arith.constant dense<0.000000e+00> : vector<24x256xf32>
    %133 = tpu.matmul %121, %132, %cst_120 {dimension_numbers = #tpu.dot_dimension_numbers<[1], [0], [0], [1], [0, 0, 1, 1], [], []>} : vector<24x256xf32>, vector<256x256xf32>, vector<24x256xf32> -> vector<24x256xf32>
    %c4_121 = arith.constant 4 : index
    %c0_122 = arith.constant 0 : index
    %c0_123 = arith.constant 0 : index
    %134 = vector.load %arg1[%c4_121, %c0_122, %c0_123] : memref<9x256x256xf32, #tpu.memory_space<vmem>>, vector<1x256x256xf32>
    %135 = vector.shape_cast %134 : vector<1x256x256xf32> to vector<256x256xf32>
    %cst_124 = arith.constant dense<0.000000e+00> : vector<24x256xf32>
    %136 = tpu.matmul %121, %135, %cst_124 {dimension_numbers = #tpu.dot_dimension_numbers<[1], [0], [0], [1], [0, 0, 1, 1], [], []>} : vector<24x256xf32>, vector<256x256xf32>, vector<24x256xf32> -> vector<24x256xf32>
    %c5_125 = arith.constant 5 : index
    %c0_126 = arith.constant 0 : index
    %c0_127 = arith.constant 0 : index
    %137 = vector.load %arg1[%c5_125, %c0_126, %c0_127] : memref<9x256x256xf32, #tpu.memory_space<vmem>>, vector<1x256x256xf32>
    %138 = vector.shape_cast %137 : vector<1x256x256xf32> to vector<256x256xf32>
    %cst_128 = arith.constant dense<0.000000e+00> : vector<24x256xf32>
    %139 = tpu.matmul %121, %138, %cst_128 {dimension_numbers = #tpu.dot_dimension_numbers<[1], [0], [0], [1], [0, 0, 1, 1], [], []>} : vector<24x256xf32>, vector<256x256xf32>, vector<24x256xf32> -> vector<24x256xf32>
    %c6_129 = arith.constant 6 : index
    %c0_130 = arith.constant 0 : index
    %c0_131 = arith.constant 0 : index
    %140 = vector.load %arg1[%c6_129, %c0_130, %c0_131] : memref<9x256x256xf32, #tpu.memory_space<vmem>>, vector<1x256x256xf32>
    %141 = vector.shape_cast %140 : vector<1x256x256xf32> to vector<256x256xf32>
    %cst_132 = arith.constant dense<0.000000e+00> : vector<24x256xf32>
    %142 = tpu.matmul %121, %141, %cst_132 {dimension_numbers = #tpu.dot_dimension_numbers<[1], [0], [0], [1], [0, 0, 1, 1], [], []>} : vector<24x256xf32>, vector<256x256xf32>, vector<24x256xf32> -> vector<24x256xf32>
    %c7_133 = arith.constant 7 : index
    %c0_134 = arith.constant 0 : index
    %c0_135 = arith.constant 0 : index
    %143 = vector.load %arg1[%c7_133, %c0_134, %c0_135] : memref<9x256x256xf32, #tpu.memory_space<vmem>>, vector<1x256x256xf32>
    %144 = vector.shape_cast %143 : vector<1x256x256xf32> to vector<256x256xf32>
    %cst_136 = arith.constant dense<0.000000e+00> : vector<24x256xf32>
    %145 = tpu.matmul %121, %144, %cst_136 {dimension_numbers = #tpu.dot_dimension_numbers<[1], [0], [0], [1], [0, 0, 1, 1], [], []>} : vector<24x256xf32>, vector<256x256xf32>, vector<24x256xf32> -> vector<24x256xf32>
    %c8_137 = arith.constant 8 : index
    %c0_138 = arith.constant 0 : index
    %c0_139 = arith.constant 0 : index
    %146 = vector.load %arg1[%c8_137, %c0_138, %c0_139] : memref<9x256x256xf32, #tpu.memory_space<vmem>>, vector<1x256x256xf32>
    %147 = vector.shape_cast %146 : vector<1x256x256xf32> to vector<256x256xf32>
    %cst_140 = arith.constant dense<0.000000e+00> : vector<24x256xf32>
    %148 = tpu.matmul %121, %147, %cst_140 {dimension_numbers = #tpu.dot_dimension_numbers<[1], [0], [0], [1], [0, 0, 1, 1], [], []>} : vector<24x256xf32>, vector<256x256xf32>, vector<24x256xf32> -> vector<24x256xf32>
    %149 = tpu.concatenate %124, %127, %130, %133, %136, %139, %142, %145, %148 in 0 : vector<24x256xf32>, vector<24x256xf32>, vector<24x256xf32>, vector<24x256xf32>, vector<24x256xf32>, vector<24x256xf32>, vector<24x256xf32>, vector<24x256xf32>, vector<24x256xf32> -> vector<216x256xf32>
    %c0_141 = arith.constant 0 : index
    %c0_142 = arith.constant 0 : index
    %150 = vector.load %arg15[%c0_141, %c0_142] : memref<8x216xf32, #tpu.memory_space<vmem>>, vector<8x216xf32>
    %cst_143 = arith.constant dense<0.000000e+00> : vector<8x256xf32>
    %151 = tpu.matmul %150, %149, %cst_143 {dimension_numbers = #tpu.dot_dimension_numbers<[1], [0], [0], [1], [0, 0, 1, 1], [], []>} : vector<8x216xf32>, vector<216x256xf32>, vector<8x256xf32> -> vector<8x256xf32>
    %c0_144 = arith.constant 0 : index
    %c0_145 = arith.constant 0 : index
    %152 = vector.load %arg16[%c0_144, %c0_145] : memref<8x1xf32, #tpu.memory_space<vmem>>, vector<8x1xf32>
    %153 = vector.broadcast %152 : vector<8x1xf32> to vector<8x256xf32>
    %154 = arith.addf %151, %153 : vector<8x256xf32>
    %cst_146 = arith.constant 0.000000e+00 : f32
    %155 = vector.broadcast %cst_146 : f32 to vector<8x256xf32>
    %156 = arith.maximumf %154, %155 : vector<8x256xf32>
    %cst_147 = arith.constant dense<0.000000e+00> : vector<8xf32>
    %157 = vector.multi_reduction <add>, %156, %cst_147 [1] : vector<8x256xf32> to vector<8xf32>
    %158 = vector.shape_cast %157 : vector<8xf32> to vector<8x1xf32>
    %cst_148 = arith.constant 3.906250e-03 : f32
    %159 = vector.broadcast %cst_148 : f32 to vector<8x1xf32>
    %160 = arith.mulf %158, %159 : vector<8x1xf32>
    %161 = vector.shape_cast %160 : vector<8x1xf32> to vector<8x1xf32>
    %162 = vector.broadcast %161 : vector<8x1xf32> to vector<8x256xf32>
    %c0_149 = arith.constant 0 : index
    %c0_150 = arith.constant 0 : index
    %163 = vector.load %arg17[%c0_149, %c0_150] : memref<4x8xf32, #tpu.memory_space<vmem>>, vector<4x8xf32>
    %cst_151 = arith.constant dense<0.000000e+00> : vector<4x256xf32>
    %164 = tpu.matmul %163, %162, %cst_151 {dimension_numbers = #tpu.dot_dimension_numbers<[1], [0], [0], [1], [0, 0, 1, 1], [], []>} : vector<4x8xf32>, vector<8x256xf32>, vector<4x256xf32> -> vector<4x256xf32>
    %c0_152 = arith.constant 0 : index
    %c0_153 = arith.constant 0 : index
    %165 = vector.load %arg18[%c0_152, %c0_153] : memref<4x1xf32, #tpu.memory_space<vmem>>, vector<4x1xf32>
    %166 = vector.broadcast %165 : vector<4x1xf32> to vector<4x256xf32>
    %167 = arith.addf %164, %166 : vector<4x256xf32>
    %168 = arith.negf %167 : vector<4x256xf32>
    %169 = math.exp %168 : vector<4x256xf32>
    %cst_154 = arith.constant 1.000000e+00 : f32
    %170 = vector.broadcast %cst_154 : f32 to vector<4x256xf32>
    %171 = arith.addf %170, %169 : vector<4x256xf32>
    %172 = arith.divf %170, %171 : vector<4x256xf32>
    %c0_155 = arith.constant 0 : index
    %c0_156 = arith.constant 0 : index
    %173 = vector.load %arg19[%c0_155, %c0_156] : memref<8x4xf32, #tpu.memory_space<vmem>>, vector<8x4xf32>
    %cst_157 = arith.constant dense<0.000000e+00> : vector<8x256xf32>
    %174 = tpu.matmul %173, %172, %cst_157 {dimension_numbers = #tpu.dot_dimension_numbers<[1], [0], [0], [1], [0, 0, 1, 1], [], []>} : vector<8x4xf32>, vector<4x256xf32>, vector<8x256xf32> -> vector<8x256xf32>
    %c0_158 = arith.constant 0 : index
    %c0_159 = arith.constant 0 : index
    %175 = vector.load %arg20[%c0_158, %c0_159] : memref<8x1xf32, #tpu.memory_space<vmem>>, vector<8x1xf32>
    %176 = vector.broadcast %175 : vector<8x1xf32> to vector<8x256xf32>
    %177 = arith.addf %174, %176 : vector<8x256xf32>
    %cst_160 = arith.constant 0.000000e+00 : f32
    %178 = vector.broadcast %cst_160 : f32 to vector<8x256xf32>
    %179 = arith.maximumf %177, %178 : vector<8x256xf32>
    %180 = arith.mulf %156, %179 : vector<8x256xf32>
    %181 = tpu.concatenate %121, %180 in 0 : vector<24x256xf32>, vector<8x256xf32> -> vector<32x256xf32>
    %cst_161 = arith.constant dense<0.000000e+00> : vector<32xf32>
    %182 = vector.multi_reduction <add>, %181, %cst_161 [1] : vector<32x256xf32> to vector<32xf32>
    %183 = vector.shape_cast %182 : vector<32xf32> to vector<32x1xf32>
    %cst_162 = arith.constant 3.906250e-03 : f32
    %184 = vector.broadcast %cst_162 : f32 to vector<32x1xf32>
    %185 = arith.mulf %183, %184 : vector<32x1xf32>
    %186 = vector.shape_cast %185 : vector<32x1xf32> to vector<32x1xf32>
    %187 = vector.broadcast %186 : vector<32x1xf32> to vector<32x256xf32>
    %c0_163 = arith.constant 0 : index
    %c0_164 = arith.constant 0 : index
    %188 = vector.load %arg21[%c0_163, %c0_164] : memref<16x32xf32, #tpu.memory_space<vmem>>, vector<16x32xf32>
    %cst_165 = arith.constant dense<0.000000e+00> : vector<16x256xf32>
    %189 = tpu.matmul %188, %187, %cst_165 {dimension_numbers = #tpu.dot_dimension_numbers<[1], [0], [0], [1], [0, 0, 1, 1], [], []>} : vector<16x32xf32>, vector<32x256xf32>, vector<16x256xf32> -> vector<16x256xf32>
    %c0_166 = arith.constant 0 : index
    %c0_167 = arith.constant 0 : index
    %190 = vector.load %arg22[%c0_166, %c0_167] : memref<16x1xf32, #tpu.memory_space<vmem>>, vector<16x1xf32>
    %191 = vector.broadcast %190 : vector<16x1xf32> to vector<16x256xf32>
    %192 = arith.addf %189, %191 : vector<16x256xf32>
    %193 = arith.negf %192 : vector<16x256xf32>
    %194 = math.exp %193 : vector<16x256xf32>
    %cst_168 = arith.constant 1.000000e+00 : f32
    %195 = vector.broadcast %cst_168 : f32 to vector<16x256xf32>
    %196 = arith.addf %195, %194 : vector<16x256xf32>
    %197 = arith.divf %195, %196 : vector<16x256xf32>
    %c0_169 = arith.constant 0 : index
    %c0_170 = arith.constant 0 : index
    %198 = vector.load %arg23[%c0_169, %c0_170] : memref<32x16xf32, #tpu.memory_space<vmem>>, vector<32x16xf32>
    %cst_171 = arith.constant dense<0.000000e+00> : vector<32x256xf32>
    %199 = tpu.matmul %198, %197, %cst_171 {dimension_numbers = #tpu.dot_dimension_numbers<[1], [0], [0], [1], [0, 0, 1, 1], [], []>} : vector<32x16xf32>, vector<16x256xf32>, vector<32x256xf32> -> vector<32x256xf32>
    %c0_172 = arith.constant 0 : index
    %c0_173 = arith.constant 0 : index
    %200 = vector.load %arg24[%c0_172, %c0_173] : memref<32x1xf32, #tpu.memory_space<vmem>>, vector<32x1xf32>
    %201 = vector.broadcast %200 : vector<32x1xf32> to vector<32x256xf32>
    %202 = arith.addf %199, %201 : vector<32x256xf32>
    %cst_174 = arith.constant 0.000000e+00 : f32
    %203 = vector.broadcast %cst_174 : f32 to vector<32x256xf32>
    %204 = arith.maximumf %202, %203 : vector<32x256xf32>
    %c0_175 = arith.constant 0 : index
    %c0_176 = arith.constant 0 : index
    %205 = vector.load %arg25[%c0_175, %c0_176] : memref<8x32xf32, #tpu.memory_space<vmem>>, vector<8x32xf32>
    %206 = arith.mulf %181, %204 : vector<32x256xf32>
    %cst_177 = arith.constant dense<0.000000e+00> : vector<8x256xf32>
    %207 = tpu.matmul %205, %206, %cst_177 {dimension_numbers = #tpu.dot_dimension_numbers<[1], [0], [0], [1], [0, 0, 1, 1], [], []>} : vector<8x32xf32>, vector<32x256xf32>, vector<8x256xf32> -> vector<8x256xf32>
    %c0_178 = arith.constant 0 : index
    %c0_179 = arith.constant 0 : index
    %208 = vector.load %arg26[%c0_178, %c0_179] : memref<8x1xf32, #tpu.memory_space<vmem>>, vector<8x1xf32>
    %209 = vector.broadcast %208 : vector<8x1xf32> to vector<8x256xf32>
    %210 = arith.addf %207, %209 : vector<8x256xf32>
    %211 = arith.addf %210, %1 : vector<8x256xf32>
    %212 = vector.shape_cast %211 : vector<8x256xf32> to vector<1x8x256xf32>
    %c0_180 = arith.constant 0 : index
    %c0_181 = arith.constant 0 : index
    %c0_182 = arith.constant 0 : index
    %213 = vector.load %arg27[%c0_180, %c0_181, %c0_182] : memref<1x8x256xf32, #tpu.memory_space<vmem>>, vector<1x8x256xf32>
    tpu.vector_store %arg27[%c0_180, %c0_181, %c0_182], %212 {strides = array<i32>} : memref<1x8x256xf32, #tpu.memory_space<vmem>>, vector<1x8x256xf32>,
    return
  }
  func.func @transform_0(%arg0: i32) -> (i32, i32, i32) {
    %c0_i32 = arith.constant 0 : i32
    %c0_i32_0 = arith.constant 0 : i32
    %c0_i32_1 = arith.constant 0 : i32
    %c0_i32_2 = arith.constant 0 : i32
    return %c0_i32, %c0_i32_0, %c0_i32_1 : i32, i32, i32
  }
  func.func @transform_1(%arg0: i32) -> (i32, i32, i32) {
    %c0_i32 = arith.constant 0 : i32
    %c0_i32_0 = arith.constant 0 : i32
    %c0_i32_1 = arith.constant 0 : i32
    return %arg0, %c0_i32, %c0_i32_0 : i32, i32, i32
  }
  func.func @transform_2(%arg0: i32) -> (i32, i32) {
    %c0_i32 = arith.constant 0 : i32
    %c0_i32_0 = arith.constant 0 : i32
    %c0_i32_1 = arith.constant 0 : i32
    return %c0_i32, %c0_i32_0 : i32, i32
  }
  func.func @transform_3(%arg0: i32) -> (i32, i32) {
    %c0_i32 = arith.constant 0 : i32
    %c0_i32_0 = arith.constant 0 : i32
    %c0_i32_1 = arith.constant 0 : i32
    return %c0_i32, %c0_i32_0 : i32, i32
  }
  func.func @transform_4(%arg0: i32) -> (i32, i32) {
    %c0_i32 = arith.constant 0 : i32
    %c0_i32_0 = arith.constant 0 : i32
    %c0_i32_1 = arith.constant 0 : i32
    return %c0_i32, %c0_i32_0 : i32, i32
  }
  func.func @transform_5(%arg0: i32) -> (i32, i32) {
    %c0_i32 = arith.constant 0 : i32
    %c0_i32_0 = arith.constant 0 : i32
    %c0_i32_1 = arith.constant 0 : i32
    return %c0_i32, %c0_i32_0 : i32, i32
  }
  func.func @transform_6(%arg0: i32) -> (i32, i32) {
    %c0_i32 = arith.constant 0 : i32
    %c0_i32_0 = arith.constant 0 : i32
    %c0_i32_1 = arith.constant 0 : i32
    return %c0_i32, %c0_i32_0 : i32, i32
  }
  func.func @transform_7(%arg0: i32) -> (i32, i32) {
    %c0_i32 = arith.constant 0 : i32
    %c0_i32_0 = arith.constant 0 : i32
    %c0_i32_1 = arith.constant 0 : i32
    return %c0_i32, %c0_i32_0 : i32, i32
  }
  func.func @transform_8(%arg0: i32) -> (i32, i32) {
    %c0_i32 = arith.constant 0 : i32
    %c0_i32_0 = arith.constant 0 : i32
    %c0_i32_1 = arith.constant 0 : i32
    return %c0_i32, %c0_i32_0 : i32, i32
  }
  func.func @transform_9(%arg0: i32) -> (i32, i32) {
    %c0_i32 = arith.constant 0 : i32
    %c0_i32_0 = arith.constant 0 : i32
    %c0_i32_1 = arith.constant 0 : i32
    return %c0_i32, %c0_i32_0 : i32, i32
  }
  func.func @transform_10(%arg0: i32) -> (i32, i32) {
    %c0_i32 = arith.constant 0 : i32
    %c0_i32_0 = arith.constant 0 : i32
    %c0_i32_1 = arith.constant 0 : i32
    return %c0_i32, %c0_i32_0 : i32, i32
  }
  func.func @transform_11(%arg0: i32) -> (i32, i32) {
    %c0_i32 = arith.constant 0 : i32
    %c0_i32_0 = arith.constant 0 : i32
    %c0_i32_1 = arith.constant 0 : i32
    return %c0_i32, %c0_i32_0 : i32, i32
  }
  func.func @transform_12(%arg0: i32) -> (i32, i32) {
    %c0_i32 = arith.constant 0 : i32
    %c0_i32_0 = arith.constant 0 : i32
    %c0_i32_1 = arith.constant 0 : i32
    return %c0_i32, %c0_i32_0 : i32, i32
  }
  func.func @transform_13(%arg0: i32) -> (i32, i32) {
    %c0_i32 = arith.constant 0 : i32
    %c0_i32_0 = arith.constant 0 : i32
    %c0_i32_1 = arith.constant 0 : i32
    return %c0_i32, %c0_i32_0 : i32, i32
  }
  func.func @transform_14(%arg0: i32) -> (i32, i32) {
    %c0_i32 = arith.constant 0 : i32
    %c0_i32_0 = arith.constant 0 : i32
    %c0_i32_1 = arith.constant 0 : i32
    return %c0_i32, %c0_i32_0 : i32, i32
  }
  func.func @transform_15(%arg0: i32) -> (i32, i32) {
    %c0_i32 = arith.constant 0 : i32
    %c0_i32_0 = arith.constant 0 : i32
    %c0_i32_1 = arith.constant 0 : i32
    return %c0_i32, %c0_i32_0 : i32, i32
  }
  func.func @transform_16(%arg0: i32) -> (i32, i32) {
    %c0_i32 = arith.constant 0 : i32
    %c0_i32_0 = arith.constant 0 : i32
    %c0_i32_1 = arith.constant 0 : i32
    return %c0_i32, %c0_i32_0 : i32, i32
  }
  func.func @transform_17(%arg0: i32) -> (i32, i32) {
    %c0_i32 = arith.constant 0 : i32
    %c0_i32_0 = arith.constant 0 : i32
    %c0_i32_1 = arith.constant 0 : i32
    return %c0_i32, %c0_i32_0 : i32, i32
  }
  func.func @transform_18(%arg0: i32) -> (i32, i32) {
    %c0_i32 = arith.constant 0 : i32
    %c0_i32_0 = arith.constant 0 : i32
    %c0_i32_1 = arith.constant 0 : i32
    return %c0_i32, %c0_i32_0 : i32, i32
  }
  func.func @transform_19(%arg0: i32) -> (i32, i32) {
    %c0_i32 = arith.constant 0 : i32
    %c0_i32_0 = arith.constant 0 : i32
    %c0_i32_1 = arith.constant 0 : i32
    return %c0_i32, %c0_i32_0 : i32, i32
  }
  func.func @transform_20(%arg0: i32) -> (i32, i32) {
    %c0_i32 = arith.constant 0 : i32
    %c0_i32_0 = arith.constant 0 : i32
    %c0_i32_1 = arith.constant 0 : i32
    return %c0_i32, %c0_i32_0 : i32, i32
  }
  func.func @transform_21(%arg0: i32) -> (i32, i32) {
    %c0_i32 = arith.constant 0 : i32
    %c0_i32_0 = arith.constant 0 : i32
    %c0_i32_1 = arith.constant 0 : i32
    return %c0_i32, %c0_i32_0 : i32, i32
  }
  func.func @transform_22(%arg0: i32) -> (i32, i32) {
    %c0_i32 = arith.constant 0 : i32
    %c0_i32_0 = arith.constant 0 : i32
    %c0_i32_1 = arith.constant 0 : i32
    return %c0_i32, %c0_i32_0 : i32, i32
  }
  func.func @transform_23(%arg0: i32) -> (i32, i32) {
    %c0_i32 = arith.constant 0 : i32
    %c0_i32_0 = arith.constant 0 : i32
    %c0_i32_1 = arith.constant 0 : i32
    return %c0_i32, %c0_i32_0 : i32, i32
  }
  func.func @transform_24(%arg0: i32) -> (i32, i32) {
    %c0_i32 = arith.constant 0 : i32
    %c0_i32_0 = arith.constant 0 : i32
    %c0_i32_1 = arith.constant 0 : i32
    return %c0_i32, %c0_i32_0 : i32, i32
  }
  func.func @transform_25(%arg0: i32) -> (i32, i32) {
    %c0_i32 = arith.constant 0 : i32
    %c0_i32_0 = arith.constant 0 : i32
    %c0_i32_1 = arith.constant 0 : i32
    return %c0_i32, %c0_i32_0 : i32, i32
  }
  func.func @transform_26(%arg0: i32) -> (i32, i32, i32) {
    %c0_i32 = arith.constant 0 : i32
    %c0_i32_0 = arith.constant 0 : i32
    %c0_i32_1 = arith.constant 0 : i32
    return %arg0, %c0_i32, %c0_i32_0 : i32, i32, i32
  }
}

</mosaic_0001>

<bundles_post_ra>
// kernel: rdb_forward.1
= control target key start
LH: loop header
LB: loop body
LE: loop exit
PB: predicated region body
PF: predicated region fallthrough
CT: control target
= control target key end

     0   :  { %s9203_s0 = inlined_call_operand.hbm [shape: f32[9,256,256], index: 0, kind: input, shape index: {}]   ;;  %s9204_s1 = inlined_call_operand.vmem [shape: f32[2,8,256], index: 1, kind: input, shape index: {}]   ;;  %s9205_s2 = inlined_call_operand.vmem [shape: f32[8,72], index: 2, kind: input, shape index: {}]   ;;  %s9206_s3 = inlined_call_operand.vmem [shape: f32[8,1], index: 3, kind: input, shape index: {}]   ;;  %s9207_s4 = inlined_call_operand.hbm [shape: f32[4,8], index: 4, kind: input, shape index: {}]   ;;  %s9208_s5 = inlined_call_operand.vmem [shape: f32[4,1], index: 5, kind: input, shape index: {}]   ;;  %s9209_s6 = inlined_call_operand.vmem [shape: f32[8,4], index: 6, kind: input, shape index: {}]   ;;  %s9210_s7 = inlined_call_operand.vmem [shape: f32[8,1], index: 7, kind: input, shape index: {}]   ;;  %s9211_s8 = inlined_call_operand.vmem [shape: f32[8,144], index: 8, kind: input, shape index: {}]   ;;  %s9212_s9 = inlined_call_operand.vmem [shape: f32[8,1], index: 9, kind: input, shape index: {}]   ;;  %s9213_s10 = inlined_call_operand.hbm [shape: f32[4,8], index: 10, kind: input, shape index: {}]   ;;  %s9214_s11 = inlined_call_operand.vmem [shape: f32[4,1], index: 11, kind: input, shape index: {}]   ;;  %s9215_s12 = inlined_call_operand.vmem [shape: f32[8,4], index: 12, kind: input, shape index: {}]   ;;  %s9216_s13 = inlined_call_operand.vmem [shape: f32[8,1], index: 13, kind: input, shape index: {}]   ;;  %s9217_s14 = inlined_call_operand.vmem [shape: f32[8,216], index: 14, kind: input, shape index: {}]   ;;  %s9218_s15 = inlined_call_operand.vmem [shape: f32[8,1], index: 15, kind: input, shape index: {}]   ;;  %s9219_s16 = inlined_call_operand.hbm [shape: f32[4,8], index: 16, kind: input, shape index: {}]   ;;  %s9220_s17 = inlined_call_operand.vmem [shape: f32[4,1], index: 17, kind: input, shape index: {}]   ;;  %s9221_s18 = inlined_call_operand.vmem [shape: f32[8,4], index: 18, kind: input, shape index: {}]   ;;  %s9222_s19 = inlined_call_operand.vmem [shape: f32[8,1], index: 19, kind: input, shape index: {}]   ;;  %s9223_s20 = inlined_call_operand.hbm [shape: f32[16,32], index: 20, kind: input, shape index: {}]   ;;  %s9224_s21 = inlined_call_operand.vmem [shape: f32[16,1], index: 21, kind: input, shape index: {}]   ;;  %s9225_s22 = inlined_call_operand.vmem [shape: f32[32,16], index: 22, kind: input, shape index: {}]   ;;  %s9226_s23 = inlined_call_operand.vmem [shape: f32[32,1], index: 23, kind: input, shape index: {}]   ;;  %s9227_s24 = inlined_call_operand.hbm [shape: f32[8,32], index: 24, kind: input, shape index: {}]   ;;  %s9228_s25 = inlined_call_operand.vmem [shape: f32[8,1], index: 25, kind: input, shape index: {}]   ;;  %s9229_s26 = inlined_call_operand.vmem [shape: f32[2,8,256], index: 26, kind: output, shape index: {}]  }
   0x1   :  { %9765 = sst [smem:[#allocation303_spill]] %s9203_s0 }
   0x2   :  { %9766 = sst [smem:[#allocation304_spill]] %s9204_s1 }
   0x3   :  { %9767 = sst [smem:[#allocation305_spill]] %s9205_s2 }
   0x4   :  { %9768 = sst [smem:[#allocation306_spill]] %s9206_s3 }
   0x5   :  { %9769 = sst [smem:[#allocation307_spill]] %s9207_s4 }
   0x6   :  { %9770 = sst [smem:[#allocation308_spill]] %s9208_s5 }
   0x7   :  { %9771 = sst [smem:[#allocation309_spill]] %s9209_s6 }
   0x8   :  { %9772 = sst [smem:[#allocation310_spill]] %s9210_s7 }
   0x9   :  { %9773 = sst [smem:[#allocation311_spill]] %s9211_s8 }
   0xa   :  { %9774 = sst [smem:[#allocation312_spill]] %s9212_s9 }
   0xb   :  { %9775 = sst [smem:[#allocation313_spill]] %s9213_s10 }
   0xc   :  { %9776 = sst [smem:[#allocation314_spill]] %s9219_s16 }
   0xd   :  { %9777 = sst [smem:[#allocation315_spill]] %s9225_s22 }
   0xe   :  { %9778 = sst [smem:[#allocation316_spill]] %s9228_s25 }
   0xf   :  { %9779 = sst [smem:[#allocation317_spill]] %s9229_s26 }
  0x10   :  { %31 = vsyncpa [#allocation3], 0 }
  0x11   :  { %32 = vsyncpa [#allocation5], 0 }
  0x12   :  { %33 = vsyncpa [#allocation8], 0 }
  0x13   :  { %34 = vsyncpa [#allocation11], 0  ;;  %s7212_s27 = smov 0  }
  0x14 LB: > { %9780 = sst [smem:[#allocation16_spill]] %s7063_s27  ;;  %s7065_s3 = smov [#allocation4]   ;;  %s7063_s27 = sphi %s7212_s27, %s40_s27  }
  0x15   : > { %s654_s7 = sshll.u32 %s7065_s3, 4  ;;  %s7218_s28 = sadd.s32 4294967295, %s7063_s27   ;;  %s7223_s7 = int_to_ptr.vmem [resolvable:$true] %s654_s7 }
  0x16   : > { %p4843_p0 = scmp.ge.s32.totalorder %s7063_s27, 1  ;;  %p622_p1 = scmp.lt.s32.totalorder %s7063_s27, 3 }
  0x17   : > { %p9237_p2 = scmp.eq.s32.totalorder %s7218_s28, 0  ;;  %s7066_s4 = smov [#allocation7]  }
  0x18   : > { %p7225_p3 = pnand %p4843_p0, %p622_p1  ;;  %s706_s29 = sshll.u32 %s7066_s4, 4  ;;  %s7231_s29 = int_to_ptr.vmem [resolvable:$true] %s706_s29 }
  0x19   : > { %s7067_s0 = smov [#allocation2]   ;;  %s7068_s2 = smov [#allocation6]  }
  0x1a   : > { %s9781_s8 = scalar_select %p7225_p3, 1, 0 }
  0x1b   : > { %p6774_p4 = pneg %p7225_p3  ;;  %s634_s9 = sshll.u32 %s7067_s0, 4  ;;  %s7239_s9 = int_to_ptr.vmem [resolvable:$true] %s634_s9 }
  0x1c   : > { %s7241_s5 = sshll.u32 %s7068_s2, 4  ;;  %s9783_s1 = sld [smem:[#allocation307_spill]]  ;;  %s681_s5 = int_to_ptr.vmem [resolvable:$true] %s7241_s5 }
  0x1d   : > { %p7235_p5 = pnand %p9237_p2, %p6774_p4 }
  0x1f   : > { %p7251_p7 = pneg %p7235_p5 }
  0x22   : > { %s6873_s3 = scalar_lea.hbm %s9783_s1, 64 }
  0x23   : > { %p6874_p6 = scmp.ne.s32.totalorder %s9783_s1, %s6873_s3  ;;  %p6880_p10 = scmp.lt.u32.totalorder %s6873_s3, %s9783_s1 }
  0x25   : > { %p6876_p8 = pnand %p7251_p7, %p6874_p6 }
  0x27   : > { %p6877_p9 = pneg %p6876_p8 }
  0x29   : > { %p6882_p11 = pnand %p6880_p10, %p6877_p9 }
  0x2b   : > { %6885 = shalt.err (!%p6882_p11)
}
  0x2c   : > { %s6886_s27 = scalar_lea.vmem %s7223_s7, 64  ;;  %p6894_p1 = scmp.lt.s32.totalorder %s7223_s7, %s7223_s7 }
  0x2d   : > { %p6887_p12 = scmp.ne.s32.totalorder %s7223_s7, %s6886_s27  ;;  %p6895_p4 = scmp.lt.s32.totalorder %s6886_s27, %s6886_s27 }
  0x2f   : > { %p6889_p13 = pnand %p6887_p12, %p7251_p7  ;;  %p6896_p6 = por %p6895_p4, %p6894_p1 }
  0x31   : > { %p6890_p0 = pneg %p6889_p13 }
  0x33   : > { %p6897_p8 = pnand %p6896_p6, %p6890_p0 }
  0x35   : > { %6900 = shalt.err (!%p6897_p8)
}
  0x36   : > { %6780 = dma.hbm_to_vmem [thread:$0]  (!%p7235_p5), %s9783_s1, 64, %s7223_s7, [#allocation5]  }
  0x37   : > { %s9785_s16 = sld [smem:[#allocation314_spill]] }
  0x3d   : > { %s6901_s4 = scalar_lea.hbm %s9785_s16, 64 }
  0x3e   : > { %p6902_p9 = scmp.ne.s32.totalorder %s9785_s16, %s6901_s4  ;;  %p6908_p12 = scmp.lt.u32.totalorder %s6901_s4, %s9785_s16 }
  0x40   : > { %p6904_p10 = pnand %p6902_p9, %p7251_p7 }
  0x42   : > { %p6905_p11 = pneg %p6904_p10 }
  0x44   : > { %p6910_p13 = pnand %p6908_p12, %p6905_p11 }
  0x46   : > { %6913 = shalt.err (!%p6910_p13)
}
  0x47   : > { %s6914_s7 = scalar_lea.vmem %s7231_s29, 64  ;;  %p6922_p6 = scmp.lt.s32.totalorder %s7231_s29, %s7231_s29 }
  0x48   : > { %p6915_p0 = scmp.ne.s32.totalorder %s7231_s29, %s6914_s7  ;;  %p6923_p8 = scmp.lt.s32.totalorder %s6914_s7, %s6914_s7 }
  0x4a   : > { %p6917_p1 = pnand %p6915_p0, %p7251_p7  ;;  %p6924_p9 = por %p6923_p8, %p6922_p6 }
  0x4c   : > { %p6918_p4 = pneg %p6917_p1 }
  0x4e   : > { %p6925_p10 = pnand %p6924_p9, %p6918_p4 }
  0x50   : > { %6928 = shalt.err (!%p6925_p10)
}
  0x51   : > { %6786 = dma.hbm_to_vmem [thread:$0]  (!%p7235_p5), %s9785_s16, 64, %s7231_s29, [#allocation8]  }
  0x52   : > { %s9786_s6 = sld [smem:[#allocation303_spill]] }
  0x58   : > { %s6929_s3 = scalar_lea.hbm %s9786_s6, 73728 }
  0x59   : > { %p6930_p11 = scmp.ne.s32.totalorder %s9786_s6, %s6929_s3  ;;  %p6936_p0 = scmp.lt.u32.totalorder %s6929_s3, %s9786_s6 }
  0x5b   : > { %p6932_p12 = pnand %p6930_p11, %p7251_p7 }
  0x5d   : > { %p6933_p13 = pneg %p6932_p12 }
  0x5f   : > { %p6938_p1 = pnand %p6936_p0, %p6933_p13 }
  0x61   : > { %6941 = shalt.err (!%p6938_p1)
}
  0x62   : > { %s6942_s29 = scalar_lea.vmem %s7239_s9, 73728  ;;  %p6950_p9 = scmp.lt.s32.totalorder %s7239_s9, %s7239_s9 }
  0x63   : > { %p6943_p4 = scmp.ne.s32.totalorder %s7239_s9, %s6942_s29  ;;  %p6951_p10 = scmp.lt.s32.totalorder %s6942_s29, %s6942_s29 }
  0x65   : > { %p6945_p6 = pnand %p6943_p4, %p7251_p7  ;;  %p6952_p11 = por %p6951_p10, %p6950_p9 }
  0x67   : > { %p6946_p8 = pneg %p6945_p6 }
  0x69   : > { %p6953_p12 = pnand %p6952_p11, %p6946_p8 }
  0x6b   : > { %6956 = shalt.err (!%p6953_p12)
}
  0x6c   : > { %s7069_s22 = smov 256   ;;  %s7070_s25 = smov 16  }
  0x6d   : > { %6777 = dma.hbm_to_vmem [thread:$0]  (!%p7235_p5), %s9786_s6, 73728, %s7239_s9, [#allocation3], %s7069_s22, %s7069_s22, %s7070_s25  }
  0x6e   : > { %s9787_s2 = sld [smem:[#allocation313_spill]] }
  0x74   : > { %s6957_s27 = scalar_lea.hbm %s9787_s2, 64 }
  0x75   : > { %p6958_p13 = scmp.ne.s32.totalorder %s9787_s2, %s6957_s27  ;;  %p6964_p4 = scmp.lt.u32.totalorder %s6957_s27, %s9787_s2 }
  0x77   : > { %p6960_p0 = pnand %p6958_p13, %p7251_p7 }
  0x79   : > { %p6961_p1 = pneg %p6960_p0 }
  0x7b   : > { %p6966_p6 = pnand %p6964_p4, %p6961_p1 }
  0x7d   : > { %6969 = shalt.err (!%p6966_p6)
}
  0x7e   : > { %s6970_s26 = scalar_lea.vmem %s681_s5, 64  ;;  %p6978_p11 = scmp.lt.s32.totalorder %s681_s5, %s681_s5 }
  0x7f   : > { %p6971_p8 = scmp.ne.s32.totalorder %s681_s5, %s6970_s26  ;;  %p6979_p12 = scmp.lt.s32.totalorder %s6970_s26, %s6970_s26 }
  0x81   : > { %p6973_p9 = pnand %p6971_p8, %p7251_p7  ;;  %p6980_p2 = por %p6979_p12, %p6978_p11 }
  0x83   : > { %p6974_p10 = pneg %p6973_p9 }
  0x85   : > { %p6981_p3 = pnand %p6980_p2, %p6974_p10 }
  0x87   : > { %6984 = shalt.err (!%p6981_p3)
}
  0x88   : > { %6783 = dma.hbm_to_vmem [thread:$0]  (!%p7235_p5), %s9787_s2, 64, %s681_s5, [#allocation5]  }
  0x89   : > { %s7071_s16 = smov [#allocation9]   ;;  %s6985_s3 = scalar_lea.hbm %s9223_s20, 256 }
  0x8a   : > { %s725_s1 = sshll.u32 %s7071_s16, 4  ;;  %p6986_p13 = scmp.ne.s32.totalorder %s9223_s20, %s6985_s3  ;;  %s726_s1 = int_to_ptr.vmem [resolvable:$true] %s725_s1 }
  0x8b   : > { %p6992_p0 = scmp.lt.u32.totalorder %s6985_s3, %s9223_s20 }
  0x8c   : > { %p6988_p2 = pnand %p6986_p13, %p7251_p7 }
  0x8e   : > { %p6989_p3 = pneg %p6988_p2 }
  0x90   : > { %p6994_p1 = pnand %p6992_p0, %p6989_p3 }
  0x92   : > { %6997 = shalt.err (!%p6994_p1)
}
  0x93   : > { %s6998_s5 = scalar_lea.vmem %s726_s1, 256  ;;  %p7006_p9 = scmp.lt.s32.totalorder %s726_s1, %s726_s1 }
  0x94   : > { %p6999_p4 = scmp.ne.s32.totalorder %s726_s1, %s6998_s5  ;;  %p7007_p10 = scmp.lt.s32.totalorder %s6998_s5, %s6998_s5 }
  0x96   : > { %p7001_p6 = pnand %p6999_p4, %p7251_p7  ;;  %p7008_p11 = por %p7007_p10, %p7006_p9 }
  0x98   : > { %p7002_p8 = pneg %p7001_p6 }
  0x9a   : > { %p7009_p12 = pnand %p7008_p11, %p7002_p8 }
  0x9c   : > { %7012 = shalt.err (!%p7009_p12)
}
  0x9d   : > { %s7072_s26 = smov 128   ;;  %s7073_s9 = smov 8  }
  0x9e   : > { %6789 = dma.hbm_to_vmem [thread:$0]  (!%p7235_p5), %s9223_s20, 256, %s726_s1, [#allocation8], %s7072_s26, %s7072_s26, %s7073_s9  }
  0x9f   : > { %s7074_s25 = smov [#allocation10]   ;;  %s7013_s27 = scalar_lea.hbm %s9227_s24, 128 }
  0xa0   : > { %s748_s10 = sshll.u32 %s7074_s25, 4  ;;  %p7014_p13 = scmp.ne.s32.totalorder %s9227_s24, %s7013_s27  ;;  %s749_s10 = int_to_ptr.vmem [resolvable:$true] %s748_s10 }
  0xa1   : > { %p7020_p0 = scmp.lt.u32.totalorder %s7013_s27, %s9227_s24 }
  0xa2   : > { %p7016_p2 = pnand %p7014_p13, %p7251_p7 }
  0xa4   : > { %p7017_p3 = pneg %p7016_p2 }
  0xa6   : > { %p7022_p1 = pnand %p7020_p0, %p7017_p3 }
  0xa8   : > { %7025 = shalt.err (!%p7022_p1)
}
  0xa9   : > { %s7026_s1 = scalar_lea.vmem %s749_s10, 128  ;;  %p7034_p9 = scmp.lt.s32.totalorder %s749_s10, %s749_s10 }
  0xaa   : > { %p7027_p4 = scmp.ne.s32.totalorder %s749_s10, %s7026_s1  ;;  %p7035_p10 = scmp.lt.s32.totalorder %s7026_s1, %s7026_s1 }
  0xac   : > { %p7029_p6 = pnand %p7027_p4, %p7251_p7  ;;  %p7036_p11 = por %p7035_p10, %p7034_p9 }
  0xae   : > { %p7030_p8 = pneg %p7029_p6 }
  0xb0   : > { %p7037_p12 = pnand %p7036_p11, %p7030_p8 }
  0xb2   : > { %7040 = shalt.err (!%p7037_p12)
}
  0xb3   : > { %6792 = dma.hbm_to_vmem [thread:$0]  (!%p7235_p5), %s9227_s24, 128, %s749_s10, [#allocation11]  }
  0xb4   : > { %p9788_p13 = scmp.ne.s32.totalorder %s9781_s8, 0 }
  0xb6   : > { %772 = sbr.rel (%p9788_p13) target bundleno = 4926 (0x133e), region = 124 }
  0xbd   : > { %p9789_p2 = scmp.eq.s32.totalorder %s7218_s28, 0 }
  0xbf   : > { %7046 = dma.done.wait (%p9789_p2), [#allocation3], 73728   ;;  %p9790_p7 = pmov %p9789_p2 }
  0xc0   : > { %p9791_p3 = pmov %p9789_p2 }
  0xc1   : > { %7048 = vsyncadd (%p9790_p7), [#allocation3], 4294893568 }
  0xc2   : > { %7050 = dma.done.wait (%p9791_p3), [#allocation5], 128   ;;  %p9792_p0 = pmov %p9789_p2 }
  0xc4   : > { %7052 = vsyncadd (%p9792_p0), [#allocation5], 4294967168  ;;  %p9793_p1 = pmov %p9792_p0 }
  0xc5   : > { %p9794_p5 = pmov %p9792_p0 }
  0xc6   : > { %7054 = dma.done.wait (%p9793_p1), [#allocation8], 320  }
  0xc7   : > { %7056 = vsyncadd (%p9794_p5), [#allocation8], 4294966976  ;;  %p9795_p4 = pmov %p9792_p0 }
  0xc8   : > { %p9796_p6 = pmov %p9792_p0 }
  0xc9   : > { %7058 = dma.done.wait (%p9795_p4), [#allocation11], 128  }
  0xca   : > { %7060 = vsyncadd (%p9796_p6), [#allocation11], 4294967168  ;;  %v875_v0 = vld [vmem:[#allocation2 + $0x8] sm:$0xff]  ;;  %v877_v1 = vld [vmem:[#allocation2 + $0x18] sm:$0xff]  ;;  %p862_p8 = scmp.lt.s32.totalorder %s7218_s28, 1  ;;  %s9839_s2 = sld [smem:[#allocation304_spill]] }
  0xcb   : > { %v1011_v2 = vld [vmem:[#allocation2 + $0x208] sm:$0xff]  ;;  %v7391_v3 = vpack.c.bf16 %v877_v1, %v875_v0  ;;  %v1013_v4 = vld [vmem:[#allocation2 + $0x218] sm:$0xff]  ;;  %v874_v5 = vld [vmem:[#allocation2] sm:$0xff]  ;;  %s10088_s10 = sld [smem:[#allocation306_spill]]  ;;  %s10109_s27 = sld [smem:[#allocation305_spill]]  ;;  %vm2104_vm0 = vcmask 588800  }
  0xcc   : > { %v876_v6 = vld [vmem:[#allocation2 + $0x10] sm:$0xff]  ;;  %v7393_v7 = vpack.c.bf16 %v1013_v4, %v1011_v2  ;;  %v1010_v9 = vld [vmem:[#allocation2 + $0x200] sm:$0xff]  ;;  %v879_v11 = vld [vmem:[#allocation2 + $0x28] sm:$0xff]  ;;  %s10585_s28 = smov (!%p862_p8, %s7218_s28), 1  ;;  %s10111_s30 = sld [smem:[#allocation308_spill]]  ;;  %vm2192_vm1 = vcmask 64512  }
  0xcd   : > { %9797 = vst [vmem:[#allocation17_spill] sm:$0xff] %v7391_v3  ;;  %v7395_v8 = vpack.c.bf16 %v876_v6, %v874_v5  ;;  %v1012_v10 = vld [vmem:[#allocation2 + $0x210] sm:$0xff]  ;;  %4899 = vmatprep.subr.bf16.mxu0 %v7391_v3  ;;  %v881_v13 = vld [vmem:[#allocation2 + $0x38] sm:$0xff]  ;;  %v1015_v14 = vld [vmem:[#allocation2 + $0x228] sm:$0xff]  ;;  %s4896_s8 = sshll.u32 %s10585_s28, 4  ;;  %s10112_s16 = sld [smem:[#allocation310_spill]] }
  0xce   : > { %9798 = vst [vmem:[#allocation18_spill] sm:$0xff] %v7393_v7  ;;  %v7398_v12 = vpack.c.bf16 %v1012_v10, %v1010_v9  ;;  %v1017_v15 = vld [vmem:[#allocation2 + $0x238] sm:$0xff]  ;;  %4963 = vmatprep.subr.bf16.mxu1 %v7393_v7  ;;  %v7402_v16 = vpack.c.bf16 %v881_v13, %v879_v11  ;;  %v878_v18 = vld [vmem:[#allocation2 + $0x20] sm:$0xff]  ;;  %v880_v19 = vld [vmem:[#allocation2 + $0x30] sm:$0xff]  ;;  %s10113_s3 = sld [smem:[#allocation312_spill]]  ;;  %vm2290_vm2 = vcmask 1043456  }
  0xcf   : > { %9799 = vst [vmem:[#allocation19_spill] sm:$0xff] %v7395_v8  ;;  %4901 = vmatpush1.bf16.msra.mxu0 %v7395_v8  ;;  %v7404_v17 = vpack.c.bf16 %v1017_v15, %v1015_v14  ;;  %v1014_v20 = vld [vmem:[#allocation2 + $0x220] sm:$0xff]  ;;  %v7407_v21 = vpack.c.bf16 %v880_v19, %v878_v18  ;;  %v1016_v22 = vld [vmem:[#allocation2 + $0x230] sm:$0xff]  ;;  %v883_v23 = vld [vmem:[#allocation2 + $0x48] sm:$0xff]  ;;  %s10114_s7 = sld [smem:[#allocation309_spill]]  ;;  %vm2286_vm3 = vcmask 31744  }
  0xd0   : > { %9800 = vst [vmem:[#allocation20_spill] sm:$0xff] %v7398_v12  ;;  %9801 = vst [vmem:[#allocation21_spill] sm:$0xff] %v7402_v16  ;;  %4965 = vmatpush1.bf16.msra.mxu1 %v7398_v12  ;;  %v885_v24 = vld [vmem:[#allocation2 + $0x58] sm:$0xff]  ;;  %4903 = vmatprep.subr.bf16.mxu0 %v7402_v16  ;;  %v7411_v25 = vpack.c.bf16 %v1016_v22, %v1014_v20  ;;  %v1019_v27 = vld [vmem:[#allocation2 + $0x248] sm:$0xff]  ;;  %s7525_s22 = scalar_lea.vmem %s9839_s2, %s4896_s8  ;;  %s10328_s1 = sld [smem:[#allocation311_spill]]  ;;  %vm3073_vm4 = vcmask 130048  }
  0xd1   : > { %9802 = vst [vmem:[#allocation22_spill] sm:$0xff] %v7404_v17  ;;  %9803 = vst [vmem:[#allocation23_spill] sm:$0xff] %v7407_v21  ;;  %4967 = vmatprep.subr.bf16.mxu1 %v7404_v17  ;;  %v7413_v26 = vpack.c.bf16 %v885_v24, %v883_v23  ;;  %v1021_v28 = vld [vmem:[#allocation2 + $0x258] sm:$0xff]  ;;  %v882_v29 = vld [vmem:[#allocation2 + $0x40] sm:$0xff]  ;;  %vm4093_vm5 = vcmask 719872   ;;  %s10580_s9 = sld [smem:[#allocation316_spill]] }
  0xd2   : > { %9804 = vst [vmem:[#allocation24_spill] sm:$0xff] %v7411_v25  ;;  %v7415_v30 = vpack.c.bf16 %v1021_v28, %v1019_v27  ;;  %v884_v31 = vld [vmem:[#allocation2 + $0x50] sm:$0xff]  ;;  %v1018_v32 = vld [vmem:[#allocation2 + $0x240] sm:$0xff]  ;;  %v887_v35 = vld [vmem:[#allocation2 + $0x68] sm:$0xff]  ;;  %vm4388_vm6 = vcmask 261120   ;;  %s10581_s0 = sld [smem:[#allocation315_spill]] }
  0xd3   : > { %9805 = vst [vmem:[#allocation25_spill] sm:$0xff] %v7413_v26  ;;  %v1020_v33 = vld [vmem:[#allocation2 + $0x250] sm:$0xff]  ;;  %4905 = vmatpush1.bf16.msra.mxu0 %v7407_v21  ;;  %v7418_v34 = vpack.c.bf16 %v884_v31, %v882_v29  ;;  %v889_v36 = vld [vmem:[#allocation2 + $0x78] sm:$0xff]  ;;  %v1023_v37 = vld [vmem:[#allocation2 + $0x268] sm:$0xff]  ;;  %s10582_s29 = sld [smem:[#allocation317_spill]] }
  0xd4   : > { %9806 = vst [vmem:[#allocation26_spill] sm:$0xff] %v7415_v30  ;;  %4969 = vmatpush1.bf16.msra.mxu1 %v7411_v25  ;;  %4907 = vmatprep.subr.bf16.mxu0 %v7413_v26  ;;  %v7422_v38 = vpack.c.bf16 %v1020_v33, %v1018_v32  ;;  %v7424_v39 = vpack.c.bf16 %v889_v36, %v887_v35  ;;  %v1025_v40 = vld [vmem:[#allocation2 + $0x278] sm:$0xff]  ;;  %v886_v41 = vld [vmem:[#allocation2 + $0x60] sm:$0xff]  ;;  %v888_v42 = vld [vmem:[#allocation2 + $0x70] sm:$0xff] }
  0xd5   : > { %9807 = vst [vmem:[#allocation27_spill] sm:$0xff] %v7418_v34  ;;  %4971 = vmatprep.subr.bf16.mxu1 %v7415_v30  ;;  %v7427_v43 = vpack.c.bf16 %v1025_v40, %v1023_v37  ;;  %v1022_v44 = vld [vmem:[#allocation2 + $0x260] sm:$0xff]  ;;  %v1024_v45 = vld [vmem:[#allocation2 + $0x270] sm:$0xff]  ;;  %v891_v46 = vld [vmem:[#allocation2 + $0x88] sm:$0xff]  ;;  %v7430_v50 = vpack.c.bf16 %v888_v42, %v886_v41 }
  0xd6   : > { %9808 = vst [vmem:[#allocation28_spill] sm:$0xff] %v7422_v38  ;;  %9809 = vst [vmem:[#allocation29_spill] sm:$0xff] %v7424_v39  ;;  %v893_v47 = vld [vmem:[#allocation2 + $0x98] sm:$0xff]  ;;  %v1027_v48 = vld [vmem:[#allocation2 + $0x288] sm:$0xff]  ;;  %v7434_v51 = vpack.c.bf16 %v1024_v45, %v1022_v44 }
  0xd7   : > { %9810 = vst [vmem:[#allocation30_spill] sm:$0xff] %v7427_v43  ;;  %v1029_v49 = vld [vmem:[#allocation2 + $0x298] sm:$0xff]  ;;  %4909 = vmatpush1.bf16.msra.mxu0 %v7418_v34  ;;  %9811 = vst [vmem:[#allocation31_spill] sm:$0xff] %v7430_v50  ;;  %v7436_v52 = vpack.c.bf16 %v893_v47, %v891_v46  ;;  %v890_v53 = vld [vmem:[#allocation2 + $0x80] sm:$0xff] }
  0xd8   : > { %4973 = vmatpush1.bf16.msra.mxu1 %v7422_v38  ;;  %4911 = vmatprep.subr.bf16.mxu0 %v7424_v39  ;;  %9812 = vst [vmem:[#allocation32_spill] sm:$0xff] %v7434_v51  ;;  %v892_v54 = vld [vmem:[#allocation2 + $0x90] sm:$0xff]  ;;  %v1026_v55 = vld [vmem:[#allocation2 + $0x280] sm:$0xff]  ;;  %v7439_v56 = vpack.c.bf16 %v1029_v49, %v1027_v48  ;;  %v895_v58 = vld [vmem:[#allocation2 + $0xa8] sm:$0xff] }
  0xd9   : > { %9813 = vst [vmem:[#allocation33_spill] sm:$0xff] %v7436_v52  ;;  %4975 = vmatprep.subr.bf16.mxu1 %v7427_v43  ;;  %v1028_v57 = vld [vmem:[#allocation2 + $0x290] sm:$0xff]  ;;  %v897_v59 = vld [vmem:[#allocation2 + $0xb8] sm:$0xff]  ;;  %v1031_v60 = vld [vmem:[#allocation2 + $0x2a8] sm:$0xff]  ;;  %v7442_v62 = vpack.c.bf16 %v892_v54, %v890_v53  ;;  %s871_s5 = scalar_lea.vmem %s10582_s29, %s4896_s8 }
  0xda   : > { %9814 = vst [vmem:[#allocation34_spill] sm:$0xff] %v7439_v56  ;;  %v1033_v61 = vld [vmem:[#allocation2 + $0x2b8] sm:$0xff]  ;;  %v7446_v63 = vpack.c.bf16 %v1028_v57, %v1026_v55  ;;  %v7448_v0 = vpack.c.bf16 %v897_v59, %v895_v58  ;;  %v894_v1 = vld [vmem:[#allocation2 + $0xa0] sm:$0xff]  ;;  %v896_v2 = vld [vmem:[#allocation2 + $0xb0] sm:$0xff] }
  0xdb   : > { %4913 = vmatpush1.bf16.msra.mxu0 %v7430_v50  ;;  %9815 = vst [vmem:[#allocation35_spill] sm:$0xff] %v7442_v62  ;;  %v1030_v4 = vld [vmem:[#allocation2 + $0x2a0] sm:$0xff]  ;;  %v7451_v5 = vpack.c.bf16 %v1033_v61, %v1031_v60  ;;  %v1032_v6 = vld [vmem:[#allocation2 + $0x2b0] sm:$0xff]  ;;  %v899_v9 = vld [vmem:[#allocation2 + $0xc8] sm:$0xff]  ;;  %v7454_v14 = vpack.c.bf16 %v896_v2, %v894_v1 }
  0xdc   : > { %4977 = vmatpush1.bf16.msra.mxu1 %v7434_v51  ;;  %4915 = vmatprep.subr.bf16.mxu0 %v7436_v52  ;;  %9816 = vst [vmem:[#allocation36_spill] sm:$0xff] %v7446_v63  ;;  %9817 = vst [vmem:[#allocation37_spill] sm:$0xff] %v7448_v0  ;;  %v901_v10 = vld [vmem:[#allocation2 + $0xd8] sm:$0xff]  ;;  %v1035_v11 = vld [vmem:[#allocation2 + $0x2c8] sm:$0xff]  ;;  %v7458_v15 = vpack.c.bf16 %v1032_v6, %v1030_v4 }
  0xdd   : > { %4979 = vmatprep.subr.bf16.mxu1 %v7439_v56  ;;  %9818 = vst [vmem:[#allocation38_spill] sm:$0xff] %v7451_v5  ;;  %v1037_v13 = vld [vmem:[#allocation2 + $0x2d8] sm:$0xff]  ;;  %9819 = vst [vmem:[#allocation39_spill] sm:$0xff] %v7454_v14  ;;  %v7460_v18 = vpack.c.bf16 %v901_v10, %v899_v9  ;;  %v898_v19 = vld [vmem:[#allocation2 + $0xc0] sm:$0xff] }
  0xde   : > { %9820 = vst [vmem:[#allocation40_spill] sm:$0xff] %v7458_v15  ;;  %v900_v20 = vld [vmem:[#allocation2 + $0xd0] sm:$0xff]  ;;  %v1034_v22 = vld [vmem:[#allocation2 + $0x2c0] sm:$0xff]  ;;  %v7463_v23 = vpack.c.bf16 %v1037_v13, %v1035_v11  ;;  %v903_v27 = vld [vmem:[#allocation2 + $0xe8] sm:$0xff] }
  0xdf   : > { %4917 = vmatpush1.bf16.msra.mxu0 %v7442_v62  ;;  %9821 = vst [vmem:[#allocation41_spill] sm:$0xff] %v7460_v18  ;;  %v1036_v24 = vld [vmem:[#allocation2 + $0x2d0] sm:$0xff]  ;;  %v905_v28 = vld [vmem:[#allocation2 + $0xf8] sm:$0xff]  ;;  %v1039_v29 = vld [vmem:[#allocation2 + $0x2e8] sm:$0xff]  ;;  %v7466_v32 = vpack.c.bf16 %v900_v20, %v898_v19 }
  0xe0   : > { %4981 = vmatpush1.bf16.msra.mxu1 %v7446_v63  ;;  %4919 = vmatprep.subr.bf16.mxu0 %v7448_v0  ;;  %9822 = vst [vmem:[#allocation42_spill] sm:$0xff] %v7463_v23  ;;  %v1041_v31 = vld [vmem:[#allocation2 + $0x2f8] sm:$0xff]  ;;  %v7470_v33 = vpack.c.bf16 %v1036_v24, %v1034_v22  ;;  %v7472_v35 = vpack.c.bf16 %v905_v28, %v903_v27  ;;  %v902_v36 = vld [vmem:[#allocation2 + $0xe0] sm:$0xff]  ;;  %v904_v37 = vld [vmem:[#allocation2 + $0xf0] sm:$0xff] }
  0xe1   : > { %4983 = vmatprep.subr.bf16.mxu1 %v7451_v5  ;;  %9823 = vst [vmem:[#allocation43_spill] sm:$0xff] %v7466_v32  ;;  %v1038_v40 = vld [vmem:[#allocation2 + $0x2e0] sm:$0xff]  ;;  %v7475_v41 = vpack.c.bf16 %v1041_v31, %v1039_v29  ;;  %v1040_v42 = vld [vmem:[#allocation2 + $0x2f0] sm:$0xff]  ;;  %v907_v44 = vld [vmem:[#allocation2 + $0x108] sm:$0xff]  ;;  %v7478_v48 = vpack.c.bf16 %v904_v37, %v902_v36 }
  0xe2   : > { %9824 = vst [vmem:[#allocation44_spill] sm:$0xff] %v7470_v33  ;;  %9825 = vst [vmem:[#allocation45_spill] sm:$0xff] %v7472_v35  ;;  %v909_v45 = vld [vmem:[#allocation2 + $0x118] sm:$0xff]  ;;  %v1043_v46 = vld [vmem:[#allocation2 + $0x308] sm:$0xff]  ;;  %v7483_v49 = vpack.c.bf16 %v1040_v42, %v1038_v40 }
  0xe3   : > { %4921 = vmatpush1.bf16.msra.mxu0 %v7454_v14  ;;  %9826 = vst [vmem:[#allocation46_spill] sm:$0xff] %v7475_v41  ;;  %v1045_v47 = vld [vmem:[#allocation2 + $0x318] sm:$0xff]  ;;  %9827 = vst [vmem:[#allocation47_spill] sm:$0xff] %v7478_v48  ;;  %v7485_v53 = vpack.c.bf16 %v909_v45, %v907_v44  ;;  %v906_v54 = vld [vmem:[#allocation2 + $0x100] sm:$0xff] }
  0xe4   : > { %4985 = vmatpush1.bf16.msra.mxu1 %v7458_v15  ;;  %4923 = vmatprep.subr.bf16.mxu0 %v7460_v18  ;;  %9828 = vst [vmem:[#allocation48_spill] sm:$0xff] %v7483_v49  ;;  %v908_v55 = vld [vmem:[#allocation2 + $0x110] sm:$0xff]  ;;  %v1042_v57 = vld [vmem:[#allocation2 + $0x300] sm:$0xff]  ;;  %v7488_v58 = vpack.c.bf16 %v1045_v47, %v1043_v46  ;;  %v911_v60 = vld [vmem:[#allocation2 + $0x128] sm:$0xff] }
  0xe5   : > { %4987 = vmatprep.subr.bf16.mxu1 %v7463_v23  ;;  %9829 = vst [vmem:[#allocation49_spill] sm:$0xff] %v7485_v53  ;;  %v1044_v59 = vld [vmem:[#allocation2 + $0x310] sm:$0xff]  ;;  %v913_v61 = vld [vmem:[#allocation2 + $0x138] sm:$0xff]  ;;  %v1047_v1 = vld [vmem:[#allocation2 + $0x328] sm:$0xff]  ;;  %v7491_v4 = vpack.c.bf16 %v908_v55, %v906_v54 }
  0xe6   : > { %9830 = vst [vmem:[#allocation50_spill] sm:$0xff] %v7488_v58  ;;  %v1049_v2 = vld [vmem:[#allocation2 + $0x338] sm:$0xff]  ;;  %v7500_v6 = vpack.c.bf16 %v1044_v59, %v1042_v57  ;;  %v7502_v9 = vpack.c.bf16 %v913_v61, %v911_v60  ;;  %v910_v10 = vld [vmem:[#allocation2 + $0x120] sm:$0xff]  ;;  %v912_v11 = vld [vmem:[#allocation2 + $0x130] sm:$0xff] }
  0xe7   : > { %4925 = vmatpush1.bf16.msra.mxu0 %v7466_v32  ;;  %9831 = vst [vmem:[#allocation51_spill] sm:$0xff] %v7491_v4  ;;  %v1046_v13 = vld [vmem:[#allocation2 + $0x320] sm:$0xff]  ;;  %v7505_v19 = vpack.c.bf16 %v1049_v2, %v1047_v1  ;;  %v1048_v20 = vld [vmem:[#allocation2 + $0x330] sm:$0xff]  ;;  %v915_v22 = vld [vmem:[#allocation2 + $0x148] sm:$0xff]  ;;  %v7508_v29 = vpack.c.bf16 %v912_v11, %v910_v10 }
  0xe8   : > { %4989 = vmatpush1.bf16.msra.mxu1 %v7470_v33  ;;  %4927 = vmatprep.subr.bf16.mxu0 %v7472_v35  ;;  %9832 = vst [vmem:[#allocation52_spill] sm:$0xff] %v7500_v6  ;;  %9833 = vst [vmem:[#allocation53_spill] sm:$0xff] %v7502_v9  ;;  %v917_v24 = vld [vmem:[#allocation2 + $0x158] sm:$0xff]  ;;  %v1051_v27 = vld [vmem:[#allocation2 + $0x348] sm:$0xff]  ;;  %v7513_v31 = vpack.c.bf16 %v1048_v20, %v1046_v13 }
  0xe9   : > { %4991 = vmatprep.subr.bf16.mxu1 %v7475_v41  ;;  %9834 = vst [vmem:[#allocation54_spill] sm:$0xff] %v7505_v19  ;;  %v1053_v28 = vld [vmem:[#allocation2 + $0x358] sm:$0xff]  ;;  %9835 = vst [vmem:[#allocation55_spill] sm:$0xff] %v7508_v29  ;;  %v7515_v36 = vpack.c.bf16 %v917_v24, %v915_v22  ;;  %v914_v37 = vld [vmem:[#allocation2 + $0x140] sm:$0xff] }
  0xea   : > { %9836 = vst [vmem:[#allocation56_spill] sm:$0xff] %v7513_v31  ;;  %v916_v40 = vld [vmem:[#allocation2 + $0x150] sm:$0xff]  ;;  %v1050_v42 = vld [vmem:[#allocation2 + $0x340] sm:$0xff]  ;;  %v7518_v44 = vpack.c.bf16 %v1053_v28, %v1051_v27  ;;  %v919_v46 = vld [vmem:[#allocation2 + $0x168] sm:$0xff] }
  0xeb   : > { %4929 = vmatpush1.bf16.msra.mxu0 %v7478_v48  ;;  %9837 = vst [vmem:[#allocation57_spill] sm:$0xff] %v7515_v36  ;;  %v1052_v45 = vld [vmem:[#allocation2 + $0x350] sm:$0xff]  ;;  %v921_v47 = vld [vmem:[#allocation2 + $0x178] sm:$0xff]  ;;  %v1055_v54 = vld [vmem:[#allocation2 + $0x368] sm:$0xff]  ;;  %v7528_v57 = vpack.c.bf16 %v916_v40, %v914_v37 }
  0xec   : > { %4993 = vmatpush1.bf16.msra.mxu1 %v7483_v49  ;;  %4931 = vmatprep.subr.bf16.mxu0 %v7485_v53  ;;  %9838 = vst [vmem:[#allocation58_spill] sm:$0xff] %v7518_v44  ;;  %v1057_v55 = vld [vmem:[#allocation2 + $0x378] sm:$0xff]  ;;  %v918_v59 = vld [vmem:[#allocation2 + $0x160] sm:$0xff]  ;;  %v7532_v60 = vpack.c.bf16 %v1052_v45, %v1050_v42  ;;  %v7534_v61 = vpack.c.bf16 %v921_v47, %v919_v46  ;;  %v920_v1 = vld [vmem:[#allocation2 + $0x170] sm:$0xff] }
  0xed   : > { %4995 = vmatprep.subr.bf16.mxu1 %v7488_v58  ;;  %9840 = vst [vmem:[#allocation59_spill] sm:$0xff] %v7528_v57  ;;  %v1054_v2 = vld [vmem:[#allocation2 + $0x360] sm:$0xff]  ;;  %v1056_v10 = vld [vmem:[#allocation2 + $0x370] sm:$0xff]  ;;  %v7537_v11 = vpack.c.bf16 %v1057_v55, %v1055_v54  ;;  %v923_v13 = vld [vmem:[#allocation2 + $0x188] sm:$0xff]  ;;  %v7545_v28 = vpack.c.bf16 %v920_v1, %v918_v59 }
  0xee   : > { %9841 = vst [vmem:[#allocation60_spill] sm:$0xff] %v7532_v60  ;;  %9842 = vst [vmem:[#allocation61_spill] sm:$0xff] %v7534_v61  ;;  %v925_v20 = vld [vmem:[#allocation2 + $0x198] sm:$0xff]  ;;  %v7540_v22 = vld [vmem:[%s7525_s22 + $0x8] sm:$0xff]  ;;  %v7549_v37 = vpack.c.bf16 %v1056_v10, %v1054_v2 }
  0xef   : > { %4933 = vmatpush1.bf16.msra.mxu0 %v7491_v4  ;;  %9843 = vst [vmem:[#allocation62_spill] sm:$0xff] %v7537_v11  ;;  %v1059_v24 = vld [vmem:[#allocation2 + $0x388] sm:$0xff]  ;;  %v1061_v27 = vld [vmem:[#allocation2 + $0x398] sm:$0xff]  ;;  %1002 = vmatprep.mubr.f32.mxu0 %v7540_v22  ;;  %9844 = vst [vmem:[#allocation63_spill] sm:$0xff] %v7545_v28  ;;  %v7551_v40 = vpack.c.bf16 %v925_v20, %v923_v13 }
  0xf0   : > { %4997 = vmatpush1.bf16.msra.mxu1 %v7500_v6  ;;  %4935 = vmatprep.subr.bf16.mxu0 %v7502_v9  ;;  %9845 = vst [vmem:[#allocation64_spill] sm:$0xff] %v7549_v37  ;;  %v922_v42 = vld [vmem:[#allocation2 + $0x180] sm:$0xff]  ;;  %v924_v45 = vld [vmem:[#allocation2 + $0x190] sm:$0xff]  ;;  %v7554_v47 = vpack.c.bf16 %v1061_v27, %v1059_v24  ;;  %v927_v55 = vld [vmem:[#allocation2 + $0x1a8] sm:$0xff] }
  0xf1   : > { %4999 = vmatprep.subr.bf16.mxu1 %v7505_v19  ;;  %1138 = vmatprep.mubr.f32.mxu1 %v7540_v22  ;;  %9846 = vst [vmem:[#allocation65_spill] sm:$0xff] %v7551_v40  ;;  %v1058_v46 = vld [vmem:[#allocation2 + $0x380] sm:$0xff]  ;;  %v1060_v54 = vld [vmem:[#allocation2 + $0x390] sm:$0xff]  ;;  %v1063_v59 = vld [vmem:[#allocation2 + $0x3a8] sm:$0xff] }
  0xf2   : > { %9847 = vst [vmem:[#allocation66_spill] sm:$0xff] %v7554_v47  ;;  %v1065_v1 = vld [vmem:[#allocation2 + $0x3b8] sm:$0xff]  ;;  %v7561_v2 = vpack.c.bf16 %v1060_v54, %v1058_v46  ;;  %v926_v13 = vld [vmem:[#allocation2 + $0x1a0] sm:$0xff]  ;;  %v928_v20 = vld [vmem:[#allocation2 + $0x1b0] sm:$0xff] }
  0xf3   : > { %4937 = vmatpush1.bf16.msra.mxu0 %v7508_v29  ;;  %v1062_v24 = vld [vmem:[#allocation2 + $0x3a0] sm:$0xff]  ;;  %v7566_v27 = vpack.c.bf16 %v1065_v1, %v1063_v59  ;;  %v931_v29 = vld [vmem:[#allocation2 + $0x1c8] sm:$0xff]  ;;  %v7569_v9 = vpack.c.bf16 %v928_v20, %v926_v13  ;;  %v1073_v20 = vld [vmem:[#allocation2 + $0x3f8] sm:$0xff] }
  0xf4   : > { %5001 = vmatpush1.bf16.msra.mxu1 %v7513_v31  ;;  %4939 = vmatprep.subr.bf16.mxu0 %v7515_v36  ;;  %v7557_v36 = vpack.c.bf16 %v924_v45, %v922_v42  ;;  %9849 = vst [vmem:[#allocation68_spill] sm:$0xff] %v7561_v2  ;;  %v1067_v42 = vld [vmem:[#allocation2 + $0x3c8] sm:$0xff]  ;;  %v1069_v45 = vld [vmem:[#allocation2 + $0x3d8] sm:$0xff]  ;;  %v930_v54 = vld [vmem:[#allocation2 + $0x1c0] sm:$0xff] }
  0xf5   : > { %5003 = vmatprep.subr.bf16.mxu1 %v7518_v44  ;;  %9851 = vst [vmem:[#allocation70_spill] sm:$0xff] %v7566_v27  ;;  %9852 = vst [vmem:[#allocation71_spill] sm:$0xff] %v7569_v9  ;;  %v1066_v59 = vld [vmem:[#allocation2 + $0x3c0] sm:$0xff]  ;;  %v7578_v1 = vpack.c.bf16 %v1069_v45, %v1067_v42  ;;  %v935_v4 = vld [vmem:[#allocation2 + $0x1e8] sm:$0xff] }
  0xf6   : > { %9848 = vst [vmem:[#allocation67_spill] sm:$0xff] %v7557_v36  ;;  %v1071_v13 = vld [vmem:[#allocation2 + $0x3e8] sm:$0xff]  ;;  %v1070_v42 = vld [vmem:[#allocation2 + $0x3e0] sm:$0xff]  ;;  %v1289_v32 = vld [vmem:[#allocation2 + $0x638] sm:$0xff] }
  0xf7   : > { %4941 = vmatpush1.bf16.msra.mxu0 %v7528_v57  ;;  %v929_v57 = vld [vmem:[#allocation2 + $0x1b8] sm:$0xff]  ;;  %9855 = vst [vmem:[#allocation74_spill] sm:$0xff] %v7578_v1  ;;  %v7590_v45 = vpack.c.bf16 %v1073_v20, %v1071_v13  ;;  %v1147_v48 = vld [vmem:[#allocation2 + $0x408] sm:$0xff]  ;;  %v1282_v13 = vld [vmem:[#allocation2 + $0x600] sm:$0xff] }
  0xf8   : > { %5005 = vmatpush1.bf16.msra.mxu1 %v7532_v60  ;;  %4943 = vmatprep.subr.bf16.mxu0 %v7534_v61  ;;  %v7563_v10 = vpack.c.bf16 %v929_v57, %v927_v55  ;;  %v1064_v61 = vld [vmem:[#allocation2 + $0x3b0] sm:$0xff]  ;;  %v7606_v18 = vld [vmem:[%s7525_s22] sm:$0xff]  ;;  %v1155_v14 = vld [vmem:[#allocation2 + $0x448] sm:$0xff] }
  0xf9   : > { %5007 = vmatprep.subr.bf16.mxu1 %v7537_v11  ;;  %v7573_v57 = vpack.c.bf16 %v1064_v61, %v1062_v24  ;;  %v932_v55 = vld [vmem:[#allocation2 + $0x1d0] sm:$0xff]  ;;  %9859 = vst [vmem:[#allocation78_spill] sm:$0xff] %v7590_v45  ;;  %v1157_v0 = vld [vmem:[#allocation2 + $0x458] sm:$0xff]  ;;  %v1159_v52 = vld [vmem:[#allocation2 + $0x468] sm:$0xff] }
  0xfa   : > { %9850 = vst [vmem:[#allocation69_spill] sm:$0xff] %v7563_v10  ;;  %v7581_v53 = vpack.c.bf16 %v932_v55, %v930_v54  ;;  %v936_v24 = vld [vmem:[#allocation2 + $0x1f0] sm:$0xff]  ;;  %v1283_v54 = vld [vmem:[#allocation2 + $0x608] sm:$0xff]  ;;  %v1285_v55 = vld [vmem:[#allocation2 + $0x618] sm:$0xff] }
  0xfb   : > { %4945 = vmatpush1.bf16.msra.mxu0 %v7545_v28  ;;  %v933_v28 = vld [vmem:[#allocation2 + $0x1d8] sm:$0xff]  ;;  %9853 = vst [vmem:[#allocation72_spill] sm:$0xff] %v7573_v57  ;;  %v7602_v20 = vpack.c.bf16 %v1285_v55, %v1283_v54  ;;  %v1152_v54 = vld [vmem:[#allocation2 + $0x430] sm:$0xff]  ;;  %v1286_v55 = vld [vmem:[#allocation2 + $0x620] sm:$0xff] }
  0xfc   : > { %5009 = vmatpush1.bf16.msra.mxu1 %v7549_v37  ;;  %4947 = vmatprep.subr.bf16.mxu0 %v7551_v40  ;;  %v7575_v46 = vpack.c.bf16 %v933_v28, %v931_v29  ;;  %v1068_v40 = vld [vmem:[#allocation2 + $0x3d0] sm:$0xff]  ;;  %9856 = vst [vmem:[#allocation75_spill] sm:$0xff] %v7581_v53  ;;  %v934_v28 = vld [vmem:[#allocation2 + $0x1e0] sm:$0xff]  ;;  %v1163_v39 = vld [vmem:[#allocation2 + $0x488] sm:$0xff] }
  0xfd   : > { %5011 = vmatprep.subr.bf16.mxu1 %v7554_v47  ;;  %v7585_v29 = vpack.c.bf16 %v1068_v40, %v1066_v59  ;;  %v7593_v35 = vpack.c.bf16 %v936_v24, %v934_v28  ;;  %v1146_v40 = vld [vmem:[#allocation2 + $0x400] sm:$0xff]  ;;  %v1148_v59 = vld [vmem:[#allocation2 + $0x410] sm:$0xff]  ;;  %9863 = vst [vmem:[#allocation82_spill] sm:$0xff] %v7602_v20  ;;  %v1153_v28 = vld [vmem:[#allocation2 + $0x438] sm:$0xff] }
  0xfe   : > { %9854 = vst [vmem:[#allocation73_spill] sm:$0xff] %v7575_v46  ;;  %v1287_v24 = vld [vmem:[#allocation2 + $0x628] sm:$0xff]  ;;  %v1292_v62 = vld [vmem:[#allocation2 + $0x650] sm:$0xff] }
  0xff   : > { %4949 = vmatpush1.bf16.msra.mxu0 %v7557_v36  ;;  %v937_v36 = vld [vmem:[#allocation2 + $0x1f8] sm:$0xff]  ;;  %9857 = vst [vmem:[#allocation76_spill] sm:$0xff] %v7585_v29  ;;  %9860 = vst [vmem:[#allocation79_spill] sm:$0xff] %v7593_v35  ;;  %v1296_v50 = vld [vmem:[#allocation2 + $0x670] sm:$0xff] }
 0x100   : > { %5013 = vmatpush1.bf16.msra.mxu1 %v7561_v2  ;;  %4951 = vmatprep.subr.bf16.mxu0 %v7563_v10  ;;  %v7587_v61 = vpack.c.bf16 %v937_v36, %v935_v4  ;;  %v1072_v10 = vld [vmem:[#allocation2 + $0x3f0] sm:$0xff]  ;;  %v1167_v26 = vld [vmem:[#allocation2 + $0x4a8] sm:$0xff] }
 0x101   : > { %5015 = vmatprep.subr.bf16.mxu1 %v7566_v27  ;;  %v7597_v4 = vpack.c.bf16 %v1072_v10, %v1070_v42  ;;  %v7608_v10 = vpack.c.bf16 %v1148_v59, %v1146_v40  ;;  %v1150_v42 = vld [vmem:[#allocation2 + $0x420] sm:$0xff]  ;;  %v1291_v40 = vld [vmem:[#allocation2 + $0x648] sm:$0xff]  ;;  %v1293_v59 = vld [vmem:[#allocation2 + $0x658] sm:$0xff] }
 0x102   : > { %9858 = vst [vmem:[#allocation77_spill] sm:$0xff] %v7587_v61  ;;  %v1171_v16 = vld [vmem:[#allocation2 + $0x4c8] sm:$0xff] }
 0x103   : > { %4953 = vmatpush1.bf16.msra.mxu0 %v7569_v9  ;;  %v1149_v9 = vld [vmem:[#allocation2 + $0x418] sm:$0xff]  ;;  %9861 = vst [vmem:[#allocation80_spill] sm:$0xff] %v7597_v4  ;;  %9864 = vst [vmem:[#allocation83_spill] sm:$0xff] %v7608_v10  ;;  %v1175_v3 = vld [vmem:[#allocation2 + $0x4e8] sm:$0xff] }
 0x104   : > { %5017 = vmatpush1.bf16.msra.mxu1 %v7573_v57  ;;  %4955 = vmatprep.subr.bf16.mxu0 %v7575_v46  ;;  %v7599_v36 = vpack.c.bf16 %v1149_v9, %v1147_v48  ;;  %v1284_v46 = vld [vmem:[#allocation2 + $0x610] sm:$0xff] }
 0x105   : > { %5019 = vmatprep.subr.bf16.mxu1 %v7578_v1  ;;  %v7612_v48 = vpack.c.bf16 %v1284_v46, %v1282_v13  ;;  %v1154_v13 = vld [vmem:[#allocation2 + $0x440] sm:$0xff] }
 0x106   : > { %9862 = vst [vmem:[#allocation81_spill] sm:$0xff] %v7599_v36 }
 0x107   : > { %4957 = vmatpush1.bf16.msra.mxu0 %v7581_v53  ;;  %v1151_v53 = vld [vmem:[#allocation2 + $0x428] sm:$0xff]  ;;  %9865 = vst [vmem:[#allocation84_spill] sm:$0xff] %v7612_v48 }
 0x108   : > { %5021 = vmatpush1.bf16.msra.mxu1 %v7585_v29  ;;  %4959 = vmatprep.subr.bf16.mxu0 %v7587_v61  ;;  %v7614_v9 = vpack.c.bf16 %v1153_v28, %v1151_v53  ;;  %v7617_v61 = vpack.c.bf16 %v1289_v32, %v1287_v24  ;;  %v7622_v53 = vpack.c.bf16 %v1152_v54, %v1150_v42  ;;  %v1156_v28 = vld [vmem:[#allocation2 + $0x450] sm:$0xff]  ;;  %v1290_v24 = vld [vmem:[#allocation2 + $0x640] sm:$0xff]  ;;  %v1295_v42 = vld [vmem:[#allocation2 + $0x668] sm:$0xff] }
 0x109   : > { %5023 = vmatprep.subr.bf16.mxu1 %v7590_v45  ;;  %v7628_v32 = vpack.c.bf16 %v1157_v0, %v1155_v14  ;;  %v1297_v54 = vld [vmem:[#allocation2 + $0x678] sm:$0xff]  ;;  %v7636_v0 = vpack.c.bf16 %v1156_v28, %v1154_v13  ;;  %v7640_v14 = vpack.c.bf16 %v1292_v62, %v1290_v24  ;;  %v1299_v13 = vld [vmem:[#allocation2 + $0x688] sm:$0xff]  ;;  %v1164_v24 = vld [vmem:[#allocation2 + $0x490] sm:$0xff] }
 0x10a   : > { %9866 = vst [vmem:[#allocation85_spill] sm:$0xff] %v7614_v9  ;;  %9867 = vst [vmem:[#allocation86_spill] sm:$0xff] %v7617_v61  ;;  %v1301_v28 = vld [vmem:[#allocation2 + $0x698] sm:$0xff] }
 0x10b   : > { %4961 = vmatpush1.bf16.msra.mxu0 %v7593_v35  ;;  %v1288_v35 = vld [vmem:[#allocation2 + $0x630] sm:$0xff]  ;;  %9868 = vst [vmem:[#allocation87_spill] sm:$0xff] %v7622_v53  ;;  %9870 = vst [vmem:[#allocation89_spill] sm:$0xff] %v7628_v32 }
 0x10c   : > { %5025 = vmatpush1.bf16.msra.mxu1 %v7597_v4  ;;  %5027 = vmatprep.subr.bf16.mxu0 %v7599_v36  ;;  %v7626_v46 = vpack.c.bf16 %v1288_v35, %v1286_v55  ;;  %v7631_v36 = vpack.c.bf16 %v1293_v59, %v1291_v40  ;;  %9872 = vst [vmem:[#allocation91_spill] sm:$0xff] %v7636_v0  ;;  %9873 = vst [vmem:[#allocation92_spill] sm:$0xff] %v7640_v14  ;;  %v1158_v55 = vld [vmem:[#allocation2 + $0x460] sm:$0xff]  ;;  %v1160_v40 = vld [vmem:[#allocation2 + $0x470] sm:$0xff] }
 0x10d   : > { %5091 = vmatprep.subr.bf16.mxu1 %v7602_v20  ;;  %v1294_v59 = vld [vmem:[#allocation2 + $0x660] sm:$0xff]  ;;  %v7648_v34 = vpack.c.bf16 %v1160_v40, %v1158_v55  ;;  %v1303_v55 = vld [vmem:[#allocation2 + $0x6a8] sm:$0xff]  ;;  %v1305_v40 = vld [vmem:[#allocation2 + $0x6b8] sm:$0xff] }
 0x10e   : > { %1003 = vmatmul.mubr.f32.vlgmr.msra.gmra.mrb[0].mxu0 %v7606_v18  ;;  %9869 = vst [vmem:[#allocation88_spill] sm:$0xff] %v7626_v46  ;;  %9871 = vst [vmem:[#allocation90_spill] sm:$0xff] %v7631_v36 }
 0x10f   : > { %1139 = vmatmul.mubr.f32.vlgmr.msra.gmra.mrb[0].mxu1 %v7606_v18  ;;  %5029 = vmatpush1.bf16.msra.mxu0 %v7608_v10  ;;  %v1161_v10 = vld [vmem:[#allocation2 + $0x478] sm:$0xff]  ;;  %9876 = vst [vmem:[#allocation95_spill] sm:$0xff] %v7648_v34 }
 0x110   : > { %5093 = vmatpush1.bf16.msra.mxu1 %v7612_v48  ;;  %5031 = vmatprep.subr.bf16.mxu0 %v7614_v9  ;;  %v7642_v35 = vpack.c.bf16 %v1161_v10, %v1159_v52  ;;  %v7645_v9 = vpack.c.bf16 %v1297_v54, %v1295_v42  ;;  %v7652_v52 = vpack.c.bf16 %v1296_v50, %v1294_v59  ;;  %v1162_v10 = vld [vmem:[#allocation2 + $0x480] sm:$0xff]  ;;  %v1168_v59 = vld [vmem:[#allocation2 + $0x4b0] sm:$0xff] }
 0x111   : > { %5095 = vmatprep.subr.bf16.mxu1 %v7617_v61  ;;  %1274 = vmatprep.mubr.f32.mxu0 %v7540_v22  ;;  %v1298_v42 = vld [vmem:[#allocation2 + $0x680] sm:$0xff]  ;;  %v7657_v54 = vpack.c.bf16 %v1301_v28, %v1299_v13  ;;  %v7660_v21 = vpack.c.bf16 %v1164_v24, %v1162_v10  ;;  %v7669_v28 = vpack.c.bf16 %v1305_v40, %v1303_v55  ;;  %v1307_v10 = vld [vmem:[#allocation2 + $0x6c8] sm:$0xff]  ;;  %v1309_v24 = vld [vmem:[#allocation2 + $0x6d8] sm:$0xff] }
 0x112   : > { %1410 = vmatprep.mubr.f32.mxu1 %v7540_v22  ;;  %9874 = vst [vmem:[#allocation93_spill] sm:$0xff] %v7642_v35  ;;  %9875 = vst [vmem:[#allocation94_spill] sm:$0xff] %v7645_v9  ;;  %v1302_v13 = vld [vmem:[#allocation2 + $0x6a0] sm:$0xff]  ;;  %v7681_v40 = vpack.c.bf16 %v1309_v24, %v1307_v10 }
 0x113   : > { %5033 = vmatpush1.bf16.msra.mxu0 %v7622_v53  ;;  %v1165_v53 = vld [vmem:[#allocation2 + $0x498] sm:$0xff]  ;;  %9877 = vst [vmem:[#allocation96_spill] sm:$0xff] %v7652_v52  ;;  %9879 = vst [vmem:[#allocation98_spill] sm:$0xff] %v7657_v54  ;;  %v1306_v55 = vld [vmem:[#allocation2 + $0x6c0] sm:$0xff] }
 0x114   : > { %5097 = vmatpush1.bf16.msra.mxu1 %v7626_v46  ;;  %5035 = vmatprep.subr.bf16.mxu0 %v7628_v32  ;;  %v7654_v62 = vpack.c.bf16 %v1165_v53, %v1163_v39  ;;  %v1300_v32 = vld [vmem:[#allocation2 + $0x690] sm:$0xff]  ;;  %9880 = vst [vmem:[#allocation99_spill] sm:$0xff] %v7660_v21  ;;  %v1166_v53 = vld [vmem:[#allocation2 + $0x4a0] sm:$0xff]  ;;  %9883 = vst [vmem:[#allocation102_spill] sm:$0xff] %v7669_v28 }
 0x115   : > { %5099 = vmatprep.subr.bf16.mxu1 %v7631_v36  ;;  %v7664_v39 = vpack.c.bf16 %v1300_v32, %v1298_v42  ;;  %v7672_v8 = vpack.c.bf16 %v1168_v59, %v1166_v53  ;;  %v1172_v42 = vld [vmem:[#allocation2 + $0x4d0] sm:$0xff]  ;;  %9887 = vst [vmem:[#allocation106_spill] sm:$0xff] %v7681_v40  ;;  %v1311_v53 = vld [vmem:[#allocation2 + $0x6e8] sm:$0xff]  ;;  %v1313_v59 = vld [vmem:[#allocation2 + $0x6f8] sm:$0xff] }
 0x116   : > { %9878 = vst [vmem:[#allocation97_spill] sm:$0xff] %v7654_v62  ;;  %v1310_v10 = vld [vmem:[#allocation2 + $0x6e0] sm:$0xff]  ;;  %v7693_v24 = vpack.c.bf16 %v1313_v59, %v1311_v53 }
 0x117   : > { %5037 = vmatpush1.bf16.msra.mxu0 %v7636_v0  ;;  %v1169_v0 = vld [vmem:[#allocation2 + $0x4b8] sm:$0xff]  ;;  %9881 = vst [vmem:[#allocation100_spill] sm:$0xff] %v7664_v39  ;;  %9884 = vst [vmem:[#allocation103_spill] sm:$0xff] %v7672_v8  ;;  %v1314_v53 = vld [vmem:[#allocation2 + $0x700] sm:$0xff] }
 0x118   : > { %5101 = vmatpush1.bf16.msra.mxu1 %v7640_v14  ;;  %5039 = vmatprep.subr.bf16.mxu0 %v7642_v35  ;;  %v7666_v50 = vpack.c.bf16 %v1169_v0, %v1167_v26  ;;  %v1304_v35 = vld [vmem:[#allocation2 + $0x6b0] sm:$0xff]  ;;  %v1170_v0 = vld [vmem:[#allocation2 + $0x4c0] sm:$0xff]  ;;  %9891 = vst [vmem:[#allocation110_spill] sm:$0xff] %v7693_v24 }
 0x119   : > { %5103 = vmatprep.subr.bf16.mxu1 %v7645_v9  ;;  %v7676_v26 = vpack.c.bf16 %v1304_v35, %v1302_v13  ;;  %v1174_v35 = vld [vmem:[#allocation2 + $0x4e0] sm:$0xff]  ;;  %v1176_v13 = vld [vmem:[#allocation2 + $0x4f0] sm:$0xff] }
 0x11a   : > { %9882 = vst [vmem:[#allocation101_spill] sm:$0xff] %v7666_v50 }
 0x11b   : > { %5041 = vmatpush1.bf16.msra.mxu0 %v7648_v34  ;;  %v1173_v34 = vld [vmem:[#allocation2 + $0x4d8] sm:$0xff]  ;;  %9885 = vst [vmem:[#allocation104_spill] sm:$0xff] %v7676_v26 }
 0x11c   : > { %5105 = vmatpush1.bf16.msra.mxu1 %v7652_v52  ;;  %5043 = vmatprep.subr.bf16.mxu0 %v7654_v62  ;;  %v7678_v32 = vpack.c.bf16 %v1173_v34, %v1171_v16  ;;  %v1308_v62 = vld [vmem:[#allocation2 + $0x6d0] sm:$0xff] }
 0x11d   : > { %5107 = vmatprep.subr.bf16.mxu1 %v7657_v54  ;;  %v7688_v16 = vpack.c.bf16 %v1308_v62, %v1306_v55  ;;  %v1178_v62 = vld [vmem:[#allocation2 + $0x500] sm:$0xff]  ;;  %v1180_v55 = vld [vmem:[#allocation2 + $0x510] sm:$0xff] }
 0x11e   : > { %9886 = vst [vmem:[#allocation105_spill] sm:$0xff] %v7678_v32 }
 0x11f   : > { %5045 = vmatpush1.bf16.msra.mxu0 %v7660_v21  ;;  %v1177_v21 = vld [vmem:[#allocation2 + $0x4f8] sm:$0xff]  ;;  %9889 = vst [vmem:[#allocation108_spill] sm:$0xff] %v7688_v16 }
 0x120   : > { %5109 = vmatpush1.bf16.msra.mxu1 %v7664_v39  ;;  %5047 = vmatprep.subr.bf16.mxu0 %v7666_v50  ;;  %v7684_v39 = vpack.c.bf16 %v1172_v42, %v1170_v0  ;;  %v7690_v34 = vpack.c.bf16 %v1177_v21, %v1175_v3  ;;  %v1312_v50 = vld [vmem:[#allocation2 + $0x6f0] sm:$0xff]  ;;  %v1315_v0 = vld [vmem:[#allocation2 + $0x708] sm:$0xff]  ;;  %v1317_v42 = vld [vmem:[#allocation2 + $0x718] sm:$0xff] }
 0x121   : > { %5111 = vmatprep.subr.bf16.mxu1 %v7669_v28  ;;  %v1179_v28 = vld [vmem:[#allocation2 + $0x508] sm:$0xff]  ;;  %v7700_v3 = vpack.c.bf16 %v1312_v50, %v1310_v10  ;;  %v7705_v59 = vpack.c.bf16 %v1317_v42, %v1315_v0  ;;  %v1184_v10 = vld [vmem:[#allocation2 + $0x530] sm:$0xff]  ;;  %v1318_v0 = vld [vmem:[#allocation2 + $0x720] sm:$0xff] }
 0x122   : > { %9888 = vst [vmem:[#allocation107_spill] sm:$0xff] %v7684_v39  ;;  %9890 = vst [vmem:[#allocation109_spill] sm:$0xff] %v7690_v34 }
 0x123   : > { %5049 = vmatpush1.bf16.msra.mxu0 %v7672_v8  ;;  %v1181_v8 = vld [vmem:[#allocation2 + $0x518] sm:$0xff]  ;;  %9893 = vst [vmem:[#allocation112_spill] sm:$0xff] %v7700_v3  ;;  %9895 = vst [vmem:[#allocation114_spill] sm:$0xff] %v7705_v59 }
 0x124   : > { %5113 = vmatpush1.bf16.msra.mxu1 %v7676_v26  ;;  %5051 = vmatprep.subr.bf16.mxu0 %v7678_v32  ;;  %v7696_v26 = vpack.c.bf16 %v1176_v13, %v1174_v35  ;;  %v7702_v21 = vpack.c.bf16 %v1181_v8, %v1179_v28  ;;  %v1316_v32 = vld [vmem:[#allocation2 + $0x710] sm:$0xff]  ;;  %v1319_v35 = vld [vmem:[#allocation2 + $0x728] sm:$0xff]  ;;  %v1321_v13 = vld [vmem:[#allocation2 + $0x738] sm:$0xff] }
 0x125   : > { %5115 = vmatprep.subr.bf16.mxu1 %v7681_v40  ;;  %v1183_v40 = vld [vmem:[#allocation2 + $0x528] sm:$0xff]  ;;  %v7712_v8 = vpack.c.bf16 %v1316_v32, %v1314_v53  ;;  %v1182_v28 = vld [vmem:[#allocation2 + $0x520] sm:$0xff]  ;;  %v7717_v42 = vpack.c.bf16 %v1321_v13, %v1319_v35  ;;  %v1188_v53 = vld [vmem:[#allocation2 + $0x550] sm:$0xff] }
 0x126   : > { %9892 = vst [vmem:[#allocation111_spill] sm:$0xff] %v7696_v26  ;;  %9894 = vst [vmem:[#allocation113_spill] sm:$0xff] %v7702_v21  ;;  %v1322_v35 = vld [vmem:[#allocation2 + $0x740] sm:$0xff] }
 0x127   : > { %5053 = vmatpush1.bf16.msra.mxu0 %v7684_v39  ;;  %v1185_v39 = vld [vmem:[#allocation2 + $0x538] sm:$0xff]  ;;  %9897 = vst [vmem:[#allocation116_spill] sm:$0xff] %v7712_v8  ;;  %9899 = vst [vmem:[#allocation118_spill] sm:$0xff] %v7717_v42 }
 0x128   : > { %5117 = vmatpush1.bf16.msra.mxu1 %v7688_v16  ;;  %5055 = vmatprep.subr.bf16.mxu0 %v7690_v34  ;;  %v7708_v16 = vpack.c.bf16 %v1180_v55, %v1178_v62  ;;  %v7714_v50 = vpack.c.bf16 %v1185_v39, %v1183_v40  ;;  %v1320_v34 = vld [vmem:[#allocation2 + $0x730] sm:$0xff]  ;;  %v1323_v62 = vld [vmem:[#allocation2 + $0x748] sm:$0xff]  ;;  %v1325_v55 = vld [vmem:[#allocation2 + $0x758] sm:$0xff] }
 0x129   : > { %5119 = vmatprep.subr.bf16.mxu1 %v7693_v24  ;;  %v1187_v24 = vld [vmem:[#allocation2 + $0x548] sm:$0xff]  ;;  %v7724_v39 = vpack.c.bf16 %v1320_v34, %v1318_v0  ;;  %v1186_v40 = vld [vmem:[#allocation2 + $0x540] sm:$0xff]  ;;  %v7729_v13 = vpack.c.bf16 %v1325_v55, %v1323_v62  ;;  %v1192_v0 = vld [vmem:[#allocation2 + $0x570] sm:$0xff] }
 0x12a   : > { %9896 = vst [vmem:[#allocation115_spill] sm:$0xff] %v7708_v16  ;;  %9898 = vst [vmem:[#allocation117_spill] sm:$0xff] %v7714_v50  ;;  %v1326_v62 = vld [vmem:[#allocation2 + $0x760] sm:$0xff] }
 0x12b   : > { %5057 = vmatpush1.bf16.msra.mxu0 %v7696_v26  ;;  %v1189_v26 = vld [vmem:[#allocation2 + $0x558] sm:$0xff]  ;;  %9901 = vst [vmem:[#allocation120_spill] sm:$0xff] %v7724_v39  ;;  %9903 = vst [vmem:[#allocation122_spill] sm:$0xff] %v7729_v13 }
 0x12c   : > { %5121 = vmatpush1.bf16.msra.mxu1 %v7700_v3  ;;  %5059 = vmatprep.subr.bf16.mxu0 %v7702_v21  ;;  %v7720_v3 = vpack.c.bf16 %v1184_v10, %v1182_v28  ;;  %v7726_v32 = vpack.c.bf16 %v1189_v26, %v1187_v24  ;;  %v1324_v21 = vld [vmem:[#allocation2 + $0x750] sm:$0xff]  ;;  %v1327_v28 = vld [vmem:[#allocation2 + $0x768] sm:$0xff]  ;;  %v1329_v10 = vld [vmem:[#allocation2 + $0x778] sm:$0xff] }
 0x12d   : > { %5123 = vmatprep.subr.bf16.mxu1 %v7705_v59  ;;  %v1191_v59 = vld [vmem:[#allocation2 + $0x568] sm:$0xff]  ;;  %v7736_v26 = vpack.c.bf16 %v1324_v21, %v1322_v35  ;;  %v1190_v24 = vld [vmem:[#allocation2 + $0x560] sm:$0xff]  ;;  %v7741_v55 = vpack.c.bf16 %v1329_v10, %v1327_v28  ;;  %v1196_v35 = vld [vmem:[#allocation2 + $0x590] sm:$0xff] }
 0x12e   : > { %9900 = vst [vmem:[#allocation119_spill] sm:$0xff] %v7720_v3  ;;  %9902 = vst [vmem:[#allocation121_spill] sm:$0xff] %v7726_v32  ;;  %v1330_v28 = vld [vmem:[#allocation2 + $0x780] sm:$0xff] }
 0x12f   : > { %5061 = vmatpush1.bf16.msra.mxu0 %v7708_v16  ;;  %v1193_v16 = vld [vmem:[#allocation2 + $0x578] sm:$0xff]  ;;  %9905 = vst [vmem:[#allocation124_spill] sm:$0xff] %v7736_v26  ;;  %9907 = vst [vmem:[#allocation126_spill] sm:$0xff] %v7741_v55 }
 0x130   : > { %5125 = vmatpush1.bf16.msra.mxu1 %v7712_v8  ;;  %5063 = vmatprep.subr.bf16.mxu0 %v7714_v50  ;;  %v7732_v8 = vpack.c.bf16 %v1188_v53, %v1186_v40  ;;  %v7738_v34 = vpack.c.bf16 %v1193_v16, %v1191_v59  ;;  %v1328_v50 = vld [vmem:[#allocation2 + $0x770] sm:$0xff]  ;;  %v1331_v40 = vld [vmem:[#allocation2 + $0x788] sm:$0xff]  ;;  %v1333_v53 = vld [vmem:[#allocation2 + $0x798] sm:$0xff] }
 0x131   : > { %5127 = vmatprep.subr.bf16.mxu1 %v7717_v42  ;;  %v1195_v42 = vld [vmem:[#allocation2 + $0x588] sm:$0xff]  ;;  %v7748_v16 = vpack.c.bf16 %v1328_v50, %v1326_v62  ;;  %v1194_v59 = vld [vmem:[#allocation2 + $0x580] sm:$0xff]  ;;  %v7753_v10 = vpack.c.bf16 %v1333_v53, %v1331_v40  ;;  %v1200_v62 = vld [vmem:[#allocation2 + $0x5b0] sm:$0xff] }
 0x132   : > { %9904 = vst [vmem:[#allocation123_spill] sm:$0xff] %v7732_v8  ;;  %9906 = vst [vmem:[#allocation125_spill] sm:$0xff] %v7738_v34  ;;  %v1334_v40 = vld [vmem:[#allocation2 + $0x7a0] sm:$0xff] }
 0x133   : > { %5065 = vmatpush1.bf16.msra.mxu0 %v7720_v3  ;;  %v1197_v3 = vld [vmem:[#allocation2 + $0x598] sm:$0xff]  ;;  %9909 = vst [vmem:[#allocation128_spill] sm:$0xff] %v7748_v16  ;;  %9911 = vst [vmem:[#allocation130_spill] sm:$0xff] %v7753_v10 }
 0x134   : > { %5129 = vmatpush1.bf16.msra.mxu1 %v7724_v39  ;;  %5067 = vmatprep.subr.bf16.mxu0 %v7726_v32  ;;  %v7744_v39 = vpack.c.bf16 %v1192_v0, %v1190_v24  ;;  %v7750_v21 = vpack.c.bf16 %v1197_v3, %v1195_v42  ;;  %v1332_v32 = vld [vmem:[#allocation2 + $0x790] sm:$0xff]  ;;  %v1335_v24 = vld [vmem:[#allocation2 + $0x7a8] sm:$0xff]  ;;  %v1337_v0 = vld [vmem:[#allocation2 + $0x7b8] sm:$0xff] }
 0x135   : > { %5131 = vmatprep.subr.bf16.mxu1 %v7729_v13  ;;  %v1199_v13 = vld [vmem:[#allocation2 + $0x5a8] sm:$0xff]  ;;  %v7760_v3 = vpack.c.bf16 %v1332_v32, %v1330_v28  ;;  %v1198_v42 = vld [vmem:[#allocation2 + $0x5a0] sm:$0xff]  ;;  %v7765_v53 = vpack.c.bf16 %v1337_v0, %v1335_v24  ;;  %v1204_v28 = vld [vmem:[#allocation2 + $0x5d0] sm:$0xff] }
 0x136   : > { %9908 = vst [vmem:[#allocation127_spill] sm:$0xff] %v7744_v39  ;;  %9910 = vst [vmem:[#allocation129_spill] sm:$0xff] %v7750_v21  ;;  %v1338_v24 = vld [vmem:[#allocation2 + $0x7c0] sm:$0xff] }
 0x137   : > { %5069 = vmatpush1.bf16.msra.mxu0 %v7732_v8  ;;  %v1201_v8 = vld [vmem:[#allocation2 + $0x5b8] sm:$0xff]  ;;  %9913 = vst [vmem:[#allocation132_spill] sm:$0xff] %v7760_v3  ;;  %9915 = vst [vmem:[#allocation134_spill] sm:$0xff] %v7765_v53 }
 0x138   : > { %5133 = vmatpush1.bf16.msra.mxu1 %v7736_v26  ;;  %5071 = vmatprep.subr.bf16.mxu0 %v7738_v34  ;;  %v7756_v26 = vpack.c.bf16 %v1196_v35, %v1194_v59  ;;  %v7762_v50 = vpack.c.bf16 %v1201_v8, %v1199_v13  ;;  %v1336_v34 = vld [vmem:[#allocation2 + $0x7b0] sm:$0xff]  ;;  %v1339_v59 = vld [vmem:[#allocation2 + $0x7c8] sm:$0xff]  ;;  %v1341_v35 = vld [vmem:[#allocation2 + $0x7d8] sm:$0xff] }
 0x139   : > { %5135 = vmatprep.subr.bf16.mxu1 %v7741_v55  ;;  %v1203_v55 = vld [vmem:[#allocation2 + $0x5c8] sm:$0xff]  ;;  %v7772_v8 = vpack.c.bf16 %v1336_v34, %v1334_v40  ;;  %v1202_v13 = vld [vmem:[#allocation2 + $0x5c0] sm:$0xff]  ;;  %v7777_v0 = vpack.c.bf16 %v1341_v35, %v1339_v59  ;;  %v1208_v40 = vld [vmem:[#allocation2 + $0x5f0] sm:$0xff] }
 0x13a   : > { %9912 = vst [vmem:[#allocation131_spill] sm:$0xff] %v7756_v26  ;;  %9914 = vst [vmem:[#allocation133_spill] sm:$0xff] %v7762_v50  ;;  %v1342_v59 = vld [vmem:[#allocation2 + $0x7e0] sm:$0xff] }
 0x13b   : > { %5073 = vmatpush1.bf16.msra.mxu0 %v7744_v39  ;;  %v1205_v39 = vld [vmem:[#allocation2 + $0x5d8] sm:$0xff]  ;;  %9917 = vst [vmem:[#allocation136_spill] sm:$0xff] %v7772_v8  ;;  %9919 = vst [vmem:[#allocation138_spill] sm:$0xff] %v7777_v0 }
 0x13c   : > { %5137 = vmatpush1.bf16.msra.mxu1 %v7748_v16  ;;  %5075 = vmatprep.subr.bf16.mxu0 %v7750_v21  ;;  %v7768_v16 = vpack.c.bf16 %v1200_v62, %v1198_v42  ;;  %v7774_v32 = vpack.c.bf16 %v1205_v39, %v1203_v55  ;;  %v1340_v21 = vld [vmem:[#allocation2 + $0x7d0] sm:$0xff]  ;;  %v1343_v42 = vld [vmem:[#allocation2 + $0x7e8] sm:$0xff]  ;;  %v1345_v62 = vld [vmem:[#allocation2 + $0x7f8] sm:$0xff] }
 0x13d   : > { %5139 = vmatprep.subr.bf16.mxu1 %v7753_v10  ;;  %v1207_v10 = vld [vmem:[#allocation2 + $0x5e8] sm:$0xff]  ;;  %v7784_v39 = vpack.c.bf16 %v1340_v21, %v1338_v24  ;;  %v1206_v55 = vld [vmem:[#allocation2 + $0x5e0] sm:$0xff]  ;;  %v7789_v35 = vpack.c.bf16 %v1345_v62, %v1343_v42  ;;  %v1420_v24 = vld [vmem:[#allocation2 + $0x810] sm:$0xff] }
 0x13e   : > { %9916 = vst [vmem:[#allocation135_spill] sm:$0xff] %v7768_v16  ;;  %9918 = vst [vmem:[#allocation137_spill] sm:$0xff] %v7774_v32  ;;  %v1554_v42 = vld [vmem:[#allocation2 + $0xa00] sm:$0xff] }
 0x13f   : > { %5077 = vmatpush1.bf16.msra.mxu0 %v7756_v26  ;;  %v1209_v26 = vld [vmem:[#allocation2 + $0x5f8] sm:$0xff]  ;;  %9921 = vst [vmem:[#allocation140_spill] sm:$0xff] %v7784_v39  ;;  %9923 = vst [vmem:[#allocation142_spill] sm:$0xff] %v7789_v35 }
 0x140   : > { %5141 = vmatpush1.bf16.msra.mxu1 %v7760_v3  ;;  %5079 = vmatprep.subr.bf16.mxu0 %v7762_v50  ;;  %v7780_v3 = vpack.c.bf16 %v1204_v28, %v1202_v13  ;;  %v7786_v34 = vpack.c.bf16 %v1209_v26, %v1207_v10  ;;  %v1344_v50 = vld [vmem:[#allocation2 + $0x7f0] sm:$0xff]  ;;  %v1555_v13 = vld [vmem:[#allocation2 + $0xa08] sm:$0xff]  ;;  %v1557_v28 = vld [vmem:[#allocation2 + $0xa18] sm:$0xff] }
 0x141   : > { %5143 = vmatprep.subr.bf16.mxu1 %v7765_v53  ;;  %v1419_v53 = vld [vmem:[#allocation2 + $0x808] sm:$0xff]  ;;  %v7796_v26 = vpack.c.bf16 %v1344_v50, %v1342_v59  ;;  %v1418_v10 = vld [vmem:[#allocation2 + $0x800] sm:$0xff]  ;;  %v7801_v62 = vpack.c.bf16 %v1557_v28, %v1555_v13  ;;  %v1424_v59 = vld [vmem:[#allocation2 + $0x830] sm:$0xff] }
 0x142   : > { %9920 = vst [vmem:[#allocation139_spill] sm:$0xff] %v7780_v3  ;;  %9922 = vst [vmem:[#allocation141_spill] sm:$0xff] %v7786_v34  ;;  %v1558_v13 = vld [vmem:[#allocation2 + $0xa20] sm:$0xff] }
 0x143   : > { %5081 = vmatpush1.bf16.msra.mxu0 %v7768_v16  ;;  %v1421_v16 = vld [vmem:[#allocation2 + $0x818] sm:$0xff]  ;;  %9925 = vst [vmem:[#allocation144_spill] sm:$0xff] %v7796_v26  ;;  %9927 = vst [vmem:[#allocation146_spill] sm:$0xff] %v7801_v62 }
 0x144   : > { %5145 = vmatpush1.bf16.msra.mxu1 %v7772_v8  ;;  %5083 = vmatprep.subr.bf16.mxu0 %v7774_v32  ;;  %v7792_v8 = vpack.c.bf16 %v1208_v40, %v1206_v55  ;;  %v7798_v21 = vpack.c.bf16 %v1421_v16, %v1419_v53  ;;  %v1556_v32 = vld [vmem:[#allocation2 + $0xa10] sm:$0xff]  ;;  %v1559_v55 = vld [vmem:[#allocation2 + $0xa28] sm:$0xff]  ;;  %v1561_v40 = vld [vmem:[#allocation2 + $0xa38] sm:$0xff] }
 0x145   : > { %5147 = vmatprep.subr.bf16.mxu1 %v7777_v0  ;;  %v1423_v0 = vld [vmem:[#allocation2 + $0x828] sm:$0xff]  ;;  %v7808_v16 = vpack.c.bf16 %v1556_v32, %v1554_v42  ;;  %v1422_v53 = vld [vmem:[#allocation2 + $0x820] sm:$0xff]  ;;  %v7813_v28 = vpack.c.bf16 %v1561_v40, %v1559_v55  ;;  %v1428_v55 = vld [vmem:[#allocation2 + $0x850] sm:$0xff] }
 0x146   : > { %9924 = vst [vmem:[#allocation143_spill] sm:$0xff] %v7792_v8  ;;  %9926 = vst [vmem:[#allocation145_spill] sm:$0xff] %v7798_v21  ;;  %v1426_v42 = vld [vmem:[#allocation2 + $0x840] sm:$0xff] }
 0x147   : > { %5085 = vmatpush1.bf16.msra.mxu0 %v7780_v3  ;;  %v1425_v3 = vld [vmem:[#allocation2 + $0x838] sm:$0xff]  ;;  %9929 = vst [vmem:[#allocation148_spill] sm:$0xff] %v7808_v16  ;;  %9931 = vst [vmem:[#allocation150_spill] sm:$0xff] %v7813_v28  ;;  %v1562_v40 = vld [vmem:[#allocation2 + $0xa40] sm:$0xff] }
 0x148   : > { %5149 = vmatpush1.bf16.msra.mxu1 %v7784_v39  ;;  %5087 = vmatprep.subr.bf16.mxu0 %v7786_v34  ;;  %v7804_v39 = vpack.c.bf16 %v1420_v24, %v1418_v10  ;;  %v7810_v50 = vpack.c.bf16 %v1425_v3, %v1423_v0  ;;  %v1560_v34 = vld [vmem:[#allocation2 + $0xa30] sm:$0xff]  ;;  %v1563_v10 = vld [vmem:[#allocation2 + $0xa48] sm:$0xff]  ;;  %v1565_v24 = vld [vmem:[#allocation2 + $0xa58] sm:$0xff]  ;;  %v7818_v3 = vpack.c.bf16 %v1424_v59, %v1422_v53 }
 0x149   : > { %5151 = vmatprep.subr.bf16.mxu1 %v7789_v35  ;;  %v1427_v35 = vld [vmem:[#allocation2 + $0x848] sm:$0xff]  ;;  %v7822_v32 = vpack.c.bf16 %v1560_v34, %v1558_v13  ;;  %v1569_v59 = vld [vmem:[#allocation2 + $0xa78] sm:$0xff]  ;;  %v1430_v13 = vld [vmem:[#allocation2 + $0x860] sm:$0xff] }
 0x14a   : > { %9928 = vst [vmem:[#allocation147_spill] sm:$0xff] %v7804_v39  ;;  %9930 = vst [vmem:[#allocation149_spill] sm:$0xff] %v7810_v50  ;;  %v1567_v53 = vld [vmem:[#allocation2 + $0xa68] sm:$0xff] }
 0x14b   : > { %5089 = vmatpush1.bf16.msra.mxu0 %v7792_v8  ;;  %v1429_v8 = vld [vmem:[#allocation2 + $0x858] sm:$0xff]  ;;  %9932 = vst [vmem:[#allocation151_spill] sm:$0xff] %v7818_v3  ;;  %9933 = vst [vmem:[#allocation152_spill] sm:$0xff] %v7822_v32 }
 0x14c   : > { %5153 = vmatpush1.bf16.msra.mxu1 %v7796_v26  ;;  %5155 = vmatprep.subr.bf16.mxu0 %v7798_v21  ;;  %v7824_v0 = vpack.c.bf16 %v1429_v8, %v1427_v35  ;;  %v7827_v21 = vpack.c.bf16 %v1565_v24, %v1563_v10  ;;  %v7832_v8 = vpack.c.bf16 %v1428_v55, %v1426_v42  ;;  %v1432_v10 = vld [vmem:[#allocation2 + $0x870] sm:$0xff]  ;;  %v1566_v24 = vld [vmem:[#allocation2 + $0xa60] sm:$0xff]  ;;  %v1571_v42 = vld [vmem:[#allocation2 + $0xa88] sm:$0xff] }
 0x14d   : > { %5219 = vmatprep.subr.bf16.mxu1 %v7801_v62  ;;  %v1431_v62 = vld [vmem:[#allocation2 + $0x868] sm:$0xff]  ;;  %v1573_v55 = vld [vmem:[#allocation2 + $0xa98] sm:$0xff] }
 0x14e   : > { %1275 = vmatmul.mubr.f32.vlgmr.msra.gmra.mrb[2].mxu0 %v7606_v18  ;;  %9934 = vst [vmem:[#allocation153_spill] sm:$0xff] %v7824_v0  ;;  %9935 = vst [vmem:[#allocation154_spill] sm:$0xff] %v7827_v21  ;;  %v1707_v26 = vld [vmem:[#allocation2 + $0xc88] sm:$0xff] }
 0x14f   : > { %1411 = vmatmul.mubr.f32.vlgmr.msra.gmra.mrb[2].mxu1 %v7606_v18  ;;  %5157 = vmatpush1.bf16.msra.mxu0 %v7804_v39  ;;  %v1564_v18 = vld [vmem:[#allocation2 + $0xa50] sm:$0xff]  ;;  %v1433_v39 = vld [vmem:[#allocation2 + $0x878] sm:$0xff]  ;;  %9936 = vst [vmem:[#allocation155_spill] sm:$0xff] %v7832_v8 }
 0x150   : > { %5221 = vmatpush1.bf16.msra.mxu1 %v7808_v16  ;;  %5159 = vmatprep.subr.bf16.mxu0 %v7810_v50  ;;  %v7836_v34 = vpack.c.bf16 %v1564_v18, %v1562_v40  ;;  %v7838_v35 = vpack.c.bf16 %v1433_v39, %v1431_v62  ;;  %v1435_v50 = vld [vmem:[#allocation2 + $0x888] sm:$0xff]  ;;  %v1434_v40 = vld [vmem:[#allocation2 + $0x880] sm:$0xff]  ;;  %v1436_v18 = vld [vmem:[#allocation2 + $0x890] sm:$0xff] }
 0x151   : > { %5223 = vmatprep.subr.bf16.mxu1 %v7813_v28  ;;  %1546 = vmatprep.mubr.f32.mxu0 %v7540_v22  ;;  %v7841_v28 = vpack.c.bf16 %v1569_v59, %v1567_v53  ;;  %v1570_v53 = vld [vmem:[#allocation2 + $0xa80] sm:$0xff]  ;;  %v7853_v59 = vpack.c.bf16 %v1573_v55, %v1571_v42  ;;  %v1703_v16 = vld [vmem:[#allocation2 + $0xc68] sm:$0xff] }
 0x152   : > { %1682 = vmatprep.mubr.f32.mxu1 %v7540_v22  ;;  %9937 = vst [vmem:[#allocation156_spill] sm:$0xff] %v7836_v34  ;;  %9938 = vst [vmem:[#allocation157_spill] sm:$0xff] %v7838_v35  ;;  %v1568_v22 = vld [vmem:[#allocation2 + $0xa70] sm:$0xff]  ;;  %v1574_v42 = vld [vmem:[#allocation2 + $0xaa0] sm:$0xff] }
 0x153   : > { %5161 = vmatpush1.bf16.msra.mxu0 %v7818_v3  ;;  %9939 = vst [vmem:[#allocation158_spill] sm:$0xff] %v7841_v28  ;;  %v1437_v3 = vld [vmem:[#allocation2 + $0x898] sm:$0xff]  ;;  %v7848_v39 = vpack.c.bf16 %v1568_v22, %v1566_v24  ;;  %9943 = vst [vmem:[#allocation162_spill] sm:$0xff] %v7853_v59  ;;  %v1438_v24 = vld [vmem:[#allocation2 + $0x8a0] sm:$0xff] }
 0x154   : > { %5225 = vmatpush1.bf16.msra.mxu1 %v7822_v32  ;;  %5163 = vmatprep.subr.bf16.mxu0 %v7824_v0  ;;  %v7844_v32 = vpack.c.bf16 %v1432_v10, %v1430_v13  ;;  %v7850_v62 = vpack.c.bf16 %v1437_v3, %v1435_v50  ;;  %v1439_v0 = vld [vmem:[#allocation2 + $0x8a8] sm:$0xff]  ;;  %v1577_v10 = vld [vmem:[#allocation2 + $0xab8] sm:$0xff]  ;;  %v1440_v22 = vld [vmem:[#allocation2 + $0x8b0] sm:$0xff] }
 0x155   : > { %5227 = vmatprep.subr.bf16.mxu1 %v7827_v21  ;;  %9941 = vst [vmem:[#allocation160_spill] sm:$0xff] %v7848_v39  ;;  %v1572_v21 = vld [vmem:[#allocation2 + $0xa90] sm:$0xff]  ;;  %v1575_v13 = vld [vmem:[#allocation2 + $0xaa8] sm:$0xff] }
 0x156   : > { %9940 = vst [vmem:[#allocation159_spill] sm:$0xff] %v7844_v32  ;;  %9942 = vst [vmem:[#allocation161_spill] sm:$0xff] %v7850_v62  ;;  %v7860_v50 = vpack.c.bf16 %v1572_v21, %v1570_v53  ;;  %v7865_v55 = vpack.c.bf16 %v1577_v10, %v1575_v13  ;;  %v1444_v53 = vld [vmem:[#allocation2 + $0x8d0] sm:$0xff]  ;;  %v1578_v13 = vld [vmem:[#allocation2 + $0xac0] sm:$0xff] }
 0x157   : > { %5165 = vmatpush1.bf16.msra.mxu0 %v7832_v8  ;;  %v1441_v8 = vld [vmem:[#allocation2 + $0x8b8] sm:$0xff] }
 0x158   : > { %5229 = vmatpush1.bf16.msra.mxu1 %v7836_v34  ;;  %5167 = vmatprep.subr.bf16.mxu0 %v7838_v35  ;;  %v7856_v34 = vpack.c.bf16 %v1436_v18, %v1434_v40  ;;  %9945 = vst [vmem:[#allocation164_spill] sm:$0xff] %v7860_v50  ;;  %v7862_v3 = vpack.c.bf16 %v1441_v8, %v1439_v0  ;;  %9947 = vst [vmem:[#allocation166_spill] sm:$0xff] %v7865_v55  ;;  %v1443_v35 = vld [vmem:[#allocation2 + $0x8c8] sm:$0xff]  ;;  %v1581_v18 = vld [vmem:[#allocation2 + $0xad8] sm:$0xff] }
 0x159   : > { %5231 = vmatprep.subr.bf16.mxu1 %v7841_v28  ;;  %v1576_v28 = vld [vmem:[#allocation2 + $0xab0] sm:$0xff]  ;;  %v1579_v40 = vld [vmem:[#allocation2 + $0xac8] sm:$0xff]  ;;  %v1442_v8 = vld [vmem:[#allocation2 + $0x8c0] sm:$0xff] }
 0x15a   : > { %9944 = vst [vmem:[#allocation163_spill] sm:$0xff] %v7856_v34  ;;  %9946 = vst [vmem:[#allocation165_spill] sm:$0xff] %v7862_v3  ;;  %v7872_v21 = vpack.c.bf16 %v1576_v28, %v1574_v42  ;;  %v7877_v10 = vpack.c.bf16 %v1581_v18, %v1579_v40  ;;  %v1448_v42 = vld [vmem:[#allocation2 + $0x8f0] sm:$0xff]  ;;  %v1582_v40 = vld [vmem:[#allocation2 + $0xae0] sm:$0xff] }
 0x15b   : > { %5169 = vmatpush1.bf16.msra.mxu0 %v7844_v32  ;;  %v1445_v32 = vld [vmem:[#allocation2 + $0x8d8] sm:$0xff] }
 0x15c   : > { %5233 = vmatpush1.bf16.msra.mxu1 %v7848_v39  ;;  %5171 = vmatprep.subr.bf16.mxu0 %v7850_v62  ;;  %v7868_v39 = vpack.c.bf16 %v1440_v22, %v1438_v24  ;;  %9949 = vst [vmem:[#allocation168_spill] sm:$0xff] %v7872_v21  ;;  %v7874_v0 = vpack.c.bf16 %v1445_v32, %v1443_v35  ;;  %9951 = vst [vmem:[#allocation170_spill] sm:$0xff] %v7877_v10  ;;  %v1447_v62 = vld [vmem:[#allocation2 + $0x8e8] sm:$0xff]  ;;  %v1585_v22 = vld [vmem:[#allocation2 + $0xaf8] sm:$0xff] }
 0x15d   : > { %5235 = vmatprep.subr.bf16.mxu1 %v7853_v59  ;;  %v1580_v59 = vld [vmem:[#allocation2 + $0xad0] sm:$0xff]  ;;  %v1583_v24 = vld [vmem:[#allocation2 + $0xae8] sm:$0xff]  ;;  %v1446_v35 = vld [vmem:[#allocation2 + $0x8e0] sm:$0xff] }
 0x15e   : > { %9948 = vst [vmem:[#allocation167_spill] sm:$0xff] %v7868_v39  ;;  %9950 = vst [vmem:[#allocation169_spill] sm:$0xff] %v7874_v0  ;;  %v7884_v28 = vpack.c.bf16 %v1580_v59, %v1578_v13  ;;  %v7889_v18 = vpack.c.bf16 %v1585_v22, %v1583_v24  ;;  %v1450_v59 = vld [vmem:[#allocation2 + $0x900] sm:$0xff]  ;;  %v1452_v13 = vld [vmem:[#allocation2 + $0x910] sm:$0xff] }
 0x15f   : > { %5173 = vmatpush1.bf16.msra.mxu0 %v7856_v34  ;;  %v1449_v34 = vld [vmem:[#allocation2 + $0x8f8] sm:$0xff]  ;;  %v1586_v24 = vld [vmem:[#allocation2 + $0xb00] sm:$0xff] }
 0x160   : > { %5237 = vmatpush1.bf16.msra.mxu1 %v7860_v50  ;;  %5175 = vmatprep.subr.bf16.mxu0 %v7862_v3  ;;  %v7880_v50 = vpack.c.bf16 %v1444_v53, %v1442_v8  ;;  %9953 = vst [vmem:[#allocation172_spill] sm:$0xff] %v7884_v28  ;;  %v7886_v32 = vpack.c.bf16 %v1449_v34, %v1447_v62  ;;  %9955 = vst [vmem:[#allocation174_spill] sm:$0xff] %v7889_v18  ;;  %v1451_v3 = vld [vmem:[#allocation2 + $0x908] sm:$0xff]  ;;  %v1589_v53 = vld [vmem:[#allocation2 + $0xb18] sm:$0xff] }
 0x161   : > { %5239 = vmatprep.subr.bf16.mxu1 %v7865_v55  ;;  %v1584_v55 = vld [vmem:[#allocation2 + $0xaf0] sm:$0xff]  ;;  %v1587_v8 = vld [vmem:[#allocation2 + $0xb08] sm:$0xff] }
 0x162   : > { %9952 = vst [vmem:[#allocation171_spill] sm:$0xff] %v7880_v50  ;;  %9954 = vst [vmem:[#allocation173_spill] sm:$0xff] %v7886_v32  ;;  %v7896_v34 = vpack.c.bf16 %v1584_v55, %v1582_v40  ;;  %v7901_v22 = vpack.c.bf16 %v1589_v53, %v1587_v8  ;;  %v1454_v55 = vld [vmem:[#allocation2 + $0x920] sm:$0xff]  ;;  %v1456_v40 = vld [vmem:[#allocation2 + $0x930] sm:$0xff] }
 0x163   : > { %5177 = vmatpush1.bf16.msra.mxu0 %v7868_v39  ;;  %v1453_v39 = vld [vmem:[#allocation2 + $0x918] sm:$0xff]  ;;  %v1590_v8 = vld [vmem:[#allocation2 + $0xb20] sm:$0xff] }
 0x164   : > { %5241 = vmatpush1.bf16.msra.mxu1 %v7872_v21  ;;  %5179 = vmatprep.subr.bf16.mxu0 %v7874_v0  ;;  %v7892_v21 = vpack.c.bf16 %v1448_v42, %v1446_v35  ;;  %9957 = vst [vmem:[#allocation176_spill] sm:$0xff] %v7896_v34  ;;  %v7898_v62 = vpack.c.bf16 %v1453_v39, %v1451_v3  ;;  %9959 = vst [vmem:[#allocation178_spill] sm:$0xff] %v7901_v22  ;;  %v1455_v0 = vld [vmem:[#allocation2 + $0x928] sm:$0xff]  ;;  %v1593_v42 = vld [vmem:[#allocation2 + $0xb38] sm:$0xff] }
 0x165   : > { %5243 = vmatprep.subr.bf16.mxu1 %v7877_v10  ;;  %v1588_v10 = vld [vmem:[#allocation2 + $0xb10] sm:$0xff]  ;;  %v1591_v35 = vld [vmem:[#allocation2 + $0xb28] sm:$0xff] }
 0x166   : > { %9956 = vst [vmem:[#allocation175_spill] sm:$0xff] %v7892_v21  ;;  %9958 = vst [vmem:[#allocation177_spill] sm:$0xff] %v7898_v62  ;;  %v7908_v39 = vpack.c.bf16 %v1588_v10, %v1586_v24  ;;  %v7913_v53 = vpack.c.bf16 %v1593_v42, %v1591_v35  ;;  %v1458_v10 = vld [vmem:[#allocation2 + $0x940] sm:$0xff]  ;;  %v1460_v24 = vld [vmem:[#allocation2 + $0x950] sm:$0xff] }
 0x167   : > { %5181 = vmatpush1.bf16.msra.mxu0 %v7880_v50  ;;  %v1457_v50 = vld [vmem:[#allocation2 + $0x938] sm:$0xff]  ;;  %v1594_v35 = vld [vmem:[#allocation2 + $0xb40] sm:$0xff] }
 0x168   : > { %5245 = vmatpush1.bf16.msra.mxu1 %v7884_v28  ;;  %5183 = vmatprep.subr.bf16.mxu0 %v7886_v32  ;;  %v7904_v28 = vpack.c.bf16 %v1452_v13, %v1450_v59  ;;  %9961 = vst [vmem:[#allocation180_spill] sm:$0xff] %v7908_v39  ;;  %v7910_v3 = vpack.c.bf16 %v1457_v50, %v1455_v0  ;;  %9963 = vst [vmem:[#allocation182_spill] sm:$0xff] %v7913_v53  ;;  %v1459_v32 = vld [vmem:[#allocation2 + $0x948] sm:$0xff]  ;;  %v1597_v13 = vld [vmem:[#allocation2 + $0xb58] sm:$0xff] }
 0x169   : > { %5247 = vmatprep.subr.bf16.mxu1 %v7889_v18  ;;  %v1592_v18 = vld [vmem:[#allocation2 + $0xb30] sm:$0xff]  ;;  %v1595_v59 = vld [vmem:[#allocation2 + $0xb48] sm:$0xff] }
 0x16a   : > { %9960 = vst [vmem:[#allocation179_spill] sm:$0xff] %v7904_v28  ;;  %9962 = vst [vmem:[#allocation181_spill] sm:$0xff] %v7910_v3  ;;  %v7920_v50 = vpack.c.bf16 %v1592_v18, %v1590_v8  ;;  %v7925_v42 = vpack.c.bf16 %v1597_v13, %v1595_v59  ;;  %v1462_v18 = vld [vmem:[#allocation2 + $0x960] sm:$0xff]  ;;  %v1464_v8 = vld [vmem:[#allocation2 + $0x970] sm:$0xff] }
 0x16b   : > { %5185 = vmatpush1.bf16.msra.mxu0 %v7892_v21  ;;  %v1461_v21 = vld [vmem:[#allocation2 + $0x958] sm:$0xff]  ;;  %v1598_v59 = vld [vmem:[#allocation2 + $0xb60] sm:$0xff] }
 0x16c   : > { %5249 = vmatpush1.bf16.msra.mxu1 %v7896_v34  ;;  %5187 = vmatprep.subr.bf16.mxu0 %v7898_v62  ;;  %v7916_v34 = vpack.c.bf16 %v1456_v40, %v1454_v55  ;;  %9965 = vst [vmem:[#allocation184_spill] sm:$0xff] %v7920_v50  ;;  %v7922_v0 = vpack.c.bf16 %v1461_v21, %v1459_v32  ;;  %9967 = vst [vmem:[#allocation186_spill] sm:$0xff] %v7925_v42  ;;  %v1463_v62 = vld [vmem:[#allocation2 + $0x968] sm:$0xff]  ;;  %v1601_v40 = vld [vmem:[#allocation2 + $0xb78] sm:$0xff] }
 0x16d   : > { %5251 = vmatprep.subr.bf16.mxu1 %v7901_v22  ;;  %v1596_v22 = vld [vmem:[#allocation2 + $0xb50] sm:$0xff]  ;;  %v1599_v55 = vld [vmem:[#allocation2 + $0xb68] sm:$0xff] }
 0x16e   : > { %9964 = vst [vmem:[#allocation183_spill] sm:$0xff] %v7916_v34  ;;  %9966 = vst [vmem:[#allocation185_spill] sm:$0xff] %v7922_v0  ;;  %v7932_v21 = vpack.c.bf16 %v1596_v22, %v1594_v35  ;;  %v7937_v13 = vpack.c.bf16 %v1601_v40, %v1599_v55  ;;  %v1466_v22 = vld [vmem:[#allocation2 + $0x980] sm:$0xff]  ;;  %v1468_v35 = vld [vmem:[#allocation2 + $0x990] sm:$0xff] }
 0x16f   : > { %5189 = vmatpush1.bf16.msra.mxu0 %v7904_v28  ;;  %v1465_v28 = vld [vmem:[#allocation2 + $0x978] sm:$0xff]  ;;  %v1602_v55 = vld [vmem:[#allocation2 + $0xb80] sm:$0xff] }
 0x170   : > { %5253 = vmatpush1.bf16.msra.mxu1 %v7908_v39  ;;  %5191 = vmatprep.subr.bf16.mxu0 %v7910_v3  ;;  %v7928_v39 = vpack.c.bf16 %v1460_v24, %v1458_v10  ;;  %9969 = vst [vmem:[#allocation188_spill] sm:$0xff] %v7932_v21  ;;  %v7934_v32 = vpack.c.bf16 %v1465_v28, %v1463_v62  ;;  %9971 = vst [vmem:[#allocation190_spill] sm:$0xff] %v7937_v13  ;;  %v1467_v3 = vld [vmem:[#allocation2 + $0x988] sm:$0xff]  ;;  %v1605_v24 = vld [vmem:[#allocation2 + $0xb98] sm:$0xff] }
 0x171   : > { %5255 = vmatprep.subr.bf16.mxu1 %v7913_v53  ;;  %v1600_v53 = vld [vmem:[#allocation2 + $0xb70] sm:$0xff]  ;;  %v1603_v10 = vld [vmem:[#allocation2 + $0xb88] sm:$0xff] }
 0x172   : > { %9968 = vst [vmem:[#allocation187_spill] sm:$0xff] %v7928_v39  ;;  %9970 = vst [vmem:[#allocation189_spill] sm:$0xff] %v7934_v32  ;;  %v7944_v28 = vpack.c.bf16 %v1600_v53, %v1598_v59  ;;  %v7949_v40 = vpack.c.bf16 %v1605_v24, %v1603_v10  ;;  %v1470_v53 = vld [vmem:[#allocation2 + $0x9a0] sm:$0xff]  ;;  %v1472_v59 = vld [vmem:[#allocation2 + $0x9b0] sm:$0xff] }
 0x173   : > { %5193 = vmatpush1.bf16.msra.mxu0 %v7916_v34  ;;  %v1469_v34 = vld [vmem:[#allocation2 + $0x998] sm:$0xff]  ;;  %v1606_v10 = vld [vmem:[#allocation2 + $0xba0] sm:$0xff] }
 0x174   : > { %5257 = vmatpush1.bf16.msra.mxu1 %v7920_v50  ;;  %5195 = vmatprep.subr.bf16.mxu0 %v7922_v0  ;;  %v7940_v50 = vpack.c.bf16 %v1464_v8, %v1462_v18  ;;  %9973 = vst [vmem:[#allocation192_spill] sm:$0xff] %v7944_v28  ;;  %v7946_v62 = vpack.c.bf16 %v1469_v34, %v1467_v3  ;;  %9975 = vst [vmem:[#allocation194_spill] sm:$0xff] %v7949_v40  ;;  %v1471_v0 = vld [vmem:[#allocation2 + $0x9a8] sm:$0xff]  ;;  %v1609_v8 = vld [vmem:[#allocation2 + $0xbb8] sm:$0xff] }
 0x175   : > { %5259 = vmatprep.subr.bf16.mxu1 %v7925_v42  ;;  %v1604_v42 = vld [vmem:[#allocation2 + $0xb90] sm:$0xff]  ;;  %v1607_v18 = vld [vmem:[#allocation2 + $0xba8] sm:$0xff] }
 0x176   : > { %9972 = vst [vmem:[#allocation191_spill] sm:$0xff] %v7940_v50  ;;  %9974 = vst [vmem:[#allocation193_spill] sm:$0xff] %v7946_v62  ;;  %v7956_v34 = vpack.c.bf16 %v1604_v42, %v1602_v55  ;;  %v7961_v24 = vpack.c.bf16 %v1609_v8, %v1607_v18  ;;  %v1474_v42 = vld [vmem:[#allocation2 + $0x9c0] sm:$0xff]  ;;  %v1476_v55 = vld [vmem:[#allocation2 + $0x9d0] sm:$0xff] }
 0x177   : > { %5197 = vmatpush1.bf16.msra.mxu0 %v7928_v39  ;;  %v1473_v39 = vld [vmem:[#allocation2 + $0x9b8] sm:$0xff]  ;;  %v1610_v18 = vld [vmem:[#allocation2 + $0xbc0] sm:$0xff] }
 0x178   : > { %5261 = vmatpush1.bf16.msra.mxu1 %v7932_v21  ;;  %5199 = vmatprep.subr.bf16.mxu0 %v7934_v32  ;;  %v7952_v21 = vpack.c.bf16 %v1468_v35, %v1466_v22  ;;  %9977 = vst [vmem:[#allocation196_spill] sm:$0xff] %v7956_v34  ;;  %v7958_v3 = vpack.c.bf16 %v1473_v39, %v1471_v0  ;;  %9979 = vst [vmem:[#allocation198_spill] sm:$0xff] %v7961_v24  ;;  %v1475_v32 = vld [vmem:[#allocation2 + $0x9c8] sm:$0xff]  ;;  %v1613_v35 = vld [vmem:[#allocation2 + $0xbd8] sm:$0xff] }
 0x179   : > { %5263 = vmatprep.subr.bf16.mxu1 %v7937_v13  ;;  %v1608_v13 = vld [vmem:[#allocation2 + $0xbb0] sm:$0xff]  ;;  %v1611_v22 = vld [vmem:[#allocation2 + $0xbc8] sm:$0xff] }
 0x17a   : > { %9976 = vst [vmem:[#allocation195_spill] sm:$0xff] %v7952_v21  ;;  %9978 = vst [vmem:[#allocation197_spill] sm:$0xff] %v7958_v3  ;;  %v7968_v39 = vpack.c.bf16 %v1608_v13, %v1606_v10  ;;  %v7973_v8 = vpack.c.bf16 %v1613_v35, %v1611_v22  ;;  %v1478_v13 = vld [vmem:[#allocation2 + $0x9e0] sm:$0xff]  ;;  %v1480_v10 = vld [vmem:[#allocation2 + $0x9f0] sm:$0xff] }
 0x17b   : > { %5201 = vmatpush1.bf16.msra.mxu0 %v7940_v50  ;;  %v1477_v50 = vld [vmem:[#allocation2 + $0x9d8] sm:$0xff]  ;;  %v1614_v22 = vld [vmem:[#allocation2 + $0xbe0] sm:$0xff] }
 0x17c   : > { %5265 = vmatpush1.bf16.msra.mxu1 %v7944_v28  ;;  %5203 = vmatprep.subr.bf16.mxu0 %v7946_v62  ;;  %v7964_v28 = vpack.c.bf16 %v1472_v59, %v1470_v53  ;;  %9981 = vst [vmem:[#allocation200_spill] sm:$0xff] %v7968_v39  ;;  %v7970_v0 = vpack.c.bf16 %v1477_v50, %v1475_v32  ;;  %9983 = vst [vmem:[#allocation202_spill] sm:$0xff] %v7973_v8  ;;  %v1479_v62 = vld [vmem:[#allocation2 + $0x9e8] sm:$0xff]  ;;  %v1617_v59 = vld [vmem:[#allocation2 + $0xbf8] sm:$0xff] }
 0x17d   : > { %5267 = vmatprep.subr.bf16.mxu1 %v7949_v40  ;;  %v1612_v40 = vld [vmem:[#allocation2 + $0xbd0] sm:$0xff]  ;;  %v1615_v53 = vld [vmem:[#allocation2 + $0xbe8] sm:$0xff] }
 0x17e   : > { %9980 = vst [vmem:[#allocation199_spill] sm:$0xff] %v7964_v28  ;;  %9982 = vst [vmem:[#allocation201_spill] sm:$0xff] %v7970_v0  ;;  %v7980_v50 = vpack.c.bf16 %v1612_v40, %v1610_v18  ;;  %v7985_v35 = vpack.c.bf16 %v1617_v59, %v1615_v53  ;;  %v1690_v40 = vld [vmem:[#allocation2 + $0xc00] sm:$0xff]  ;;  %v1692_v18 = vld [vmem:[#allocation2 + $0xc10] sm:$0xff] }
 0x17f   : > { %5205 = vmatpush1.bf16.msra.mxu0 %v7952_v21  ;;  %v1481_v21 = vld [vmem:[#allocation2 + $0x9f8] sm:$0xff]  ;;  %v1826_v53 = vld [vmem:[#allocation2 + $0xe00] sm:$0xff] }
 0x180   : > { %5269 = vmatpush1.bf16.msra.mxu1 %v7956_v34  ;;  %5207 = vmatprep.subr.bf16.mxu0 %v7958_v3  ;;  %v7976_v34 = vpack.c.bf16 %v1476_v55, %v1474_v42  ;;  %9985 = vst [vmem:[#allocation204_spill] sm:$0xff] %v7980_v50  ;;  %v7982_v32 = vpack.c.bf16 %v1481_v21, %v1479_v62  ;;  %9987 = vst [vmem:[#allocation206_spill] sm:$0xff] %v7985_v35  ;;  %v1691_v3 = vld [vmem:[#allocation2 + $0xc08] sm:$0xff]  ;;  %v1829_v55 = vld [vmem:[#allocation2 + $0xe18] sm:$0xff] }
 0x181   : > { %5271 = vmatprep.subr.bf16.mxu1 %v7961_v24  ;;  %v1616_v24 = vld [vmem:[#allocation2 + $0xbf0] sm:$0xff]  ;;  %v1827_v42 = vld [vmem:[#allocation2 + $0xe08] sm:$0xff] }
 0x182   : > { %9984 = vst [vmem:[#allocation203_spill] sm:$0xff] %v7976_v34  ;;  %9986 = vst [vmem:[#allocation205_spill] sm:$0xff] %v7982_v32  ;;  %v7992_v21 = vpack.c.bf16 %v1616_v24, %v1614_v22  ;;  %v7997_v59 = vpack.c.bf16 %v1829_v55, %v1827_v42  ;;  %v1694_v24 = vld [vmem:[#allocation2 + $0xc20] sm:$0xff]  ;;  %v1696_v22 = vld [vmem:[#allocation2 + $0xc30] sm:$0xff] }
 0x183   : > { %5209 = vmatpush1.bf16.msra.mxu0 %v7964_v28  ;;  %v1693_v28 = vld [vmem:[#allocation2 + $0xc18] sm:$0xff]  ;;  %v1830_v42 = vld [vmem:[#allocation2 + $0xe20] sm:$0xff] }
 0x184   : > { %5273 = vmatpush1.bf16.msra.mxu1 %v7968_v39  ;;  %5211 = vmatprep.subr.bf16.mxu0 %v7970_v0  ;;  %v7988_v39 = vpack.c.bf16 %v1480_v10, %v1478_v13  ;;  %9989 = vst [vmem:[#allocation208_spill] sm:$0xff] %v7992_v21  ;;  %v7994_v62 = vpack.c.bf16 %v1693_v28, %v1691_v3  ;;  %9991 = vst [vmem:[#allocation210_spill] sm:$0xff] %v7997_v59  ;;  %v1695_v0 = vld [vmem:[#allocation2 + $0xc28] sm:$0xff]  ;;  %v1833_v10 = vld [vmem:[#allocation2 + $0xe38] sm:$0xff] }
 0x185   : > { %5275 = vmatprep.subr.bf16.mxu1 %v7973_v8  ;;  %v1828_v8 = vld [vmem:[#allocation2 + $0xe10] sm:$0xff]  ;;  %v1831_v13 = vld [vmem:[#allocation2 + $0xe28] sm:$0xff] }
 0x186   : > { %9988 = vst [vmem:[#allocation207_spill] sm:$0xff] %v7988_v39  ;;  %9990 = vst [vmem:[#allocation209_spill] sm:$0xff] %v7994_v62  ;;  %v8004_v28 = vpack.c.bf16 %v1828_v8, %v1826_v53  ;;  %v8009_v55 = vpack.c.bf16 %v1833_v10, %v1831_v13  ;;  %v1698_v53 = vld [vmem:[#allocation2 + $0xc40] sm:$0xff]  ;;  %v1700_v13 = vld [vmem:[#allocation2 + $0xc50] sm:$0xff] }
 0x187   : > { %5213 = vmatpush1.bf16.msra.mxu0 %v7976_v34  ;;  %v1697_v34 = vld [vmem:[#allocation2 + $0xc38] sm:$0xff]  ;;  %v1834_v10 = vld [vmem:[#allocation2 + $0xe40] sm:$0xff] }
 0x188   : > { %5277 = vmatpush1.bf16.msra.mxu1 %v7980_v50  ;;  %5215 = vmatprep.subr.bf16.mxu0 %v7982_v32  ;;  %v8000_v32 = vpack.c.bf16 %v1692_v18, %v1690_v40  ;;  %9993 = vst [vmem:[#allocation212_spill] sm:$0xff] %v8004_v28  ;;  %v8006_v3 = vpack.c.bf16 %v1697_v34, %v1695_v0  ;;  %9995 = vst [vmem:[#allocation214_spill] sm:$0xff] %v8009_v55  ;;  %v1699_v50 = vld [vmem:[#allocation2 + $0xc48] sm:$0xff]  ;;  %v8012_v40 = vld [vmem:[%s7525_s22] sm:$0xff] }
 0x189   : > { %5279 = vmatprep.subr.bf16.mxu1 %v7985_v35  ;;  %v1832_v35 = vld [vmem:[#allocation2 + $0xe30] sm:$0xff]  ;;  %v1835_v18 = vld [vmem:[#allocation2 + $0xe48] sm:$0xff]  ;;  %v8017_v34 = vpack.c.bf16 %v1696_v22, %v1694_v24 }
 0x18a   : > { %9992 = vst [vmem:[#allocation211_spill] sm:$0xff] %v8000_v32  ;;  %9994 = vst [vmem:[#allocation213_spill] sm:$0xff] %v8006_v3  ;;  %v8021_v0 = vpack.c.bf16 %v1832_v35, %v1830_v42  ;;  %v8029_v24 = vld [vmem:[%s7525_s22 + $0x8] sm:$0xff]  ;;  %v1704_v42 = vld [vmem:[#allocation2 + $0xc70] sm:$0xff] }
 0x18b   : > { %5217 = vmatpush1.bf16.msra.mxu0 %v7988_v39  ;;  %v1701_v39 = vld [vmem:[#allocation2 + $0xc58] sm:$0xff]  ;;  %9996 = vst [vmem:[#allocation215_spill] sm:$0xff] %v8017_v34  ;;  %v1839_v22 = vld [vmem:[#allocation2 + $0xe68] sm:$0xff] }
 0x18c   : > { %5281 = vmatpush1.bf16.msra.mxu1 %v7992_v21  ;;  %5283 = vmatprep.subr.bf16.mxu0 %v7994_v62  ;;  %v1837_v62 = vld [vmem:[#allocation2 + $0xe58] sm:$0xff]  ;;  %9997 = vst [vmem:[#allocation216_spill] sm:$0xff] %v8021_v0  ;;  %v8023_v8 = vpack.c.bf16 %v1701_v39, %v1699_v50  ;;  %v1836_v21 = vld [vmem:[#allocation2 + $0xe50] sm:$0xff]  ;;  %v8034_v39 = vpack.c.bf16 %v1700_v13, %v1698_v53  ;;  %v1843_v53 = vld [vmem:[#allocation2 + $0xe88] sm:$0xff] }
 0x18d   : > { %5347 = vmatprep.subr.bf16.mxu1 %v7997_v59  ;;  %v8026_v59 = vpack.c.bf16 %v1837_v62, %v1835_v18  ;;  %v8038_v50 = vpack.c.bf16 %v1836_v21, %v1834_v10  ;;  %v1702_v62 = vld [vmem:[#allocation2 + $0xc60] sm:$0xff]  ;;  %v1845_v13 = vld [vmem:[#allocation2 + $0xe98] sm:$0xff] }
 0x18e   : > { %1547 = vmatmul.mubr.f32.vlgmr.msra.gmra.mrb[4].mxu0 %v8012_v40  ;;  %9998 = vst [vmem:[#allocation217_spill] sm:$0xff] %v8023_v8  ;;  %10000 = vst [vmem:[#allocation219_spill] sm:$0xff] %v8034_v39  ;;  %v1838_v18 = vld [vmem:[#allocation2 + $0xe60] sm:$0xff] }
 0x18f   : > { %1683 = vmatmul.mubr.f32.vlgmr.msra.gmra.mrb[4].mxu1 %v8012_v40  ;;  %5285 = vmatpush1.bf16.msra.mxu0 %v8000_v32  ;;  %9999 = vst [vmem:[#allocation218_spill] sm:$0xff] %v8026_v59  ;;  %v1705_v32 = vld [vmem:[#allocation2 + $0xc78] sm:$0xff]  ;;  %10001 = vst [vmem:[#allocation220_spill] sm:$0xff] %v8038_v50  ;;  %v1706_v21 = vld [vmem:[#allocation2 + $0xc80] sm:$0xff] }
 0x190   : > { %5349 = vmatpush1.bf16.msra.mxu1 %v8004_v28  ;;  %5287 = vmatprep.subr.bf16.mxu0 %v8006_v3  ;;  %v1841_v3 = vld [vmem:[#allocation2 + $0xe78] sm:$0xff]  ;;  %v8040_v35 = vpack.c.bf16 %v1705_v32, %v1703_v16  ;;  %v1840_v28 = vld [vmem:[#allocation2 + $0xe70] sm:$0xff]  ;;  %v1842_v10 = vld [vmem:[#allocation2 + $0xe80] sm:$0xff] }
 0x191   : > { %5351 = vmatprep.subr.bf16.mxu1 %v8009_v55  ;;  %1818 = vmatprep.mubr.f32.mxu0 %v8029_v24  ;;  %v8043_v55 = vpack.c.bf16 %v1841_v3, %v1839_v22  ;;  %v8050_v16 = vpack.c.bf16 %v1840_v28, %v1838_v18  ;;  %v1708_v3 = vld [vmem:[#allocation2 + $0xc90] sm:$0xff]  ;;  %v8055_v22 = vpack.c.bf16 %v1845_v13, %v1843_v53  ;;  %v1846_v53 = vld [vmem:[#allocation2 + $0xea0] sm:$0xff] }
 0x192   : > { %1954 = vmatprep.mubr.f32.mxu1 %v8029_v24  ;;  %10002 = vst [vmem:[#allocation221_spill] sm:$0xff] %v8040_v35  ;;  %v1712_v18 = vld [vmem:[#allocation2 + $0xcb0] sm:$0xff] }
 0x193   : > { %5289 = vmatpush1.bf16.msra.mxu0 %v8017_v34  ;;  %10003 = vst [vmem:[#allocation222_spill] sm:$0xff] %v8043_v55  ;;  %v1709_v34 = vld [vmem:[#allocation2 + $0xc98] sm:$0xff]  ;;  %10005 = vst [vmem:[#allocation224_spill] sm:$0xff] %v8050_v16 }
 0x194   : > { %5353 = vmatpush1.bf16.msra.mxu1 %v8021_v0  ;;  %5291 = vmatprep.subr.bf16.mxu0 %v8023_v8  ;;  %v8046_v0 = vpack.c.bf16 %v1704_v42, %v1702_v62  ;;  %v8052_v32 = vpack.c.bf16 %v1709_v34, %v1707_v26  ;;  %10007 = vst [vmem:[#allocation226_spill] sm:$0xff] %v8055_v22  ;;  %v1711_v8 = vld [vmem:[#allocation2 + $0xca8] sm:$0xff]  ;;  %v1849_v42 = vld [vmem:[#allocation2 + $0xeb8] sm:$0xff]  ;;  %v1710_v34 = vld [vmem:[#allocation2 + $0xca0] sm:$0xff] }
 0x195   : > { %5355 = vmatprep.subr.bf16.mxu1 %v8026_v59  ;;  %v1844_v59 = vld [vmem:[#allocation2 + $0xe90] sm:$0xff]  ;;  %v1847_v62 = vld [vmem:[#allocation2 + $0xea8] sm:$0xff] }
 0x196   : > { %10004 = vst [vmem:[#allocation223_spill] sm:$0xff] %v8046_v0  ;;  %10006 = vst [vmem:[#allocation225_spill] sm:$0xff] %v8052_v32  ;;  %v8062_v26 = vpack.c.bf16 %v1844_v59, %v1842_v10  ;;  %v8067_v13 = vpack.c.bf16 %v1849_v42, %v1847_v62  ;;  %v1716_v10 = vld [vmem:[#allocation2 + $0xcd0] sm:$0xff]  ;;  %v1850_v62 = vld [vmem:[#allocation2 + $0xec0] sm:$0xff] }
 0x197   : > { %5293 = vmatpush1.bf16.msra.mxu0 %v8034_v39  ;;  %v1713_v39 = vld [vmem:[#allocation2 + $0xcb8] sm:$0xff] }
 0x198   : > { %5357 = vmatpush1.bf16.msra.mxu1 %v8038_v50  ;;  %5295 = vmatprep.subr.bf16.mxu0 %v8040_v35  ;;  %v8058_v50 = vpack.c.bf16 %v1708_v3, %v1706_v21  ;;  %10009 = vst [vmem:[#allocation228_spill] sm:$0xff] %v8062_v26  ;;  %v8064_v28 = vpack.c.bf16 %v1713_v39, %v1711_v8  ;;  %10011 = vst [vmem:[#allocation230_spill] sm:$0xff] %v8067_v13  ;;  %v1715_v35 = vld [vmem:[#allocation2 + $0xcc8] sm:$0xff]  ;;  %v1853_v3 = vld [vmem:[#allocation2 + $0xed8] sm:$0xff] }
 0x199   : > { %5359 = vmatprep.subr.bf16.mxu1 %v8043_v55  ;;  %v1848_v55 = vld [vmem:[#allocation2 + $0xeb0] sm:$0xff]  ;;  %v1851_v21 = vld [vmem:[#allocation2 + $0xec8] sm:$0xff]  ;;  %v1714_v39 = vld [vmem:[#allocation2 + $0xcc0] sm:$0xff] }
 0x19a   : > { %10008 = vst [vmem:[#allocation227_spill] sm:$0xff] %v8058_v50  ;;  %10010 = vst [vmem:[#allocation229_spill] sm:$0xff] %v8064_v28  ;;  %v8074_v59 = vpack.c.bf16 %v1848_v55, %v1846_v53  ;;  %v8079_v42 = vpack.c.bf16 %v1853_v3, %v1851_v21  ;;  %v1720_v53 = vld [vmem:[#allocation2 + $0xcf0] sm:$0xff]  ;;  %v1854_v21 = vld [vmem:[#allocation2 + $0xee0] sm:$0xff] }
 0x19b   : > { %5297 = vmatpush1.bf16.msra.mxu0 %v8046_v0  ;;  %v1717_v0 = vld [vmem:[#allocation2 + $0xcd8] sm:$0xff] }
 0x19c   : > { %5361 = vmatpush1.bf16.msra.mxu1 %v8050_v16  ;;  %5299 = vmatprep.subr.bf16.mxu0 %v8052_v32  ;;  %v8070_v16 = vpack.c.bf16 %v1712_v18, %v1710_v34  ;;  %10013 = vst [vmem:[#allocation232_spill] sm:$0xff] %v8074_v59  ;;  %v8076_v8 = vpack.c.bf16 %v1717_v0, %v1715_v35  ;;  %10015 = vst [vmem:[#allocation234_spill] sm:$0xff] %v8079_v42  ;;  %v1719_v32 = vld [vmem:[#allocation2 + $0xce8] sm:$0xff]  ;;  %v1857_v18 = vld [vmem:[#allocation2 + $0xef8] sm:$0xff] }
 0x19d   : > { %5363 = vmatprep.subr.bf16.mxu1 %v8055_v22  ;;  %v1852_v22 = vld [vmem:[#allocation2 + $0xed0] sm:$0xff]  ;;  %v1855_v34 = vld [vmem:[#allocation2 + $0xee8] sm:$0xff]  ;;  %v1718_v35 = vld [vmem:[#allocation2 + $0xce0] sm:$0xff] }
 0x19e   : > { %10012 = vst [vmem:[#allocation231_spill] sm:$0xff] %v8070_v16  ;;  %10014 = vst [vmem:[#allocation233_spill] sm:$0xff] %v8076_v8  ;;  %v8086_v55 = vpack.c.bf16 %v1852_v22, %v1850_v62  ;;  %v8091_v3 = vpack.c.bf16 %v1857_v18, %v1855_v34  ;;  %v1722_v22 = vld [vmem:[#allocation2 + $0xd00] sm:$0xff]  ;;  %v1724_v62 = vld [vmem:[#allocation2 + $0xd10] sm:$0xff] }
 0x19f   : > { %5301 = vmatpush1.bf16.msra.mxu0 %v8058_v50  ;;  %v1721_v50 = vld [vmem:[#allocation2 + $0xcf8] sm:$0xff]  ;;  %v1858_v34 = vld [vmem:[#allocation2 + $0xf00] sm:$0xff] }
 0x1a0   : > { %5365 = vmatpush1.bf16.msra.mxu1 %v8062_v26  ;;  %5303 = vmatprep.subr.bf16.mxu0 %v8064_v28  ;;  %v8082_v26 = vpack.c.bf16 %v1716_v10, %v1714_v39  ;;  %10017 = vst [vmem:[#allocation236_spill] sm:$0xff] %v8086_v55  ;;  %v8088_v0 = vpack.c.bf16 %v1721_v50, %v1719_v32  ;;  %10019 = vst [vmem:[#allocation238_spill] sm:$0xff] %v8091_v3  ;;  %v1723_v28 = vld [vmem:[#allocation2 + $0xd08] sm:$0xff]  ;;  %v1861_v10 = vld [vmem:[#allocation2 + $0xf18] sm:$0xff] }
 0x1a1   : > { %5367 = vmatprep.subr.bf16.mxu1 %v8067_v13  ;;  %v1856_v13 = vld [vmem:[#allocation2 + $0xef0] sm:$0xff]  ;;  %v1859_v39 = vld [vmem:[#allocation2 + $0xf08] sm:$0xff] }
 0x1a2   : > { %10016 = vst [vmem:[#allocation235_spill] sm:$0xff] %v8082_v26  ;;  %10018 = vst [vmem:[#allocation237_spill] sm:$0xff] %v8088_v0  ;;  %v8098_v50 = vpack.c.bf16 %v1856_v13, %v1854_v21  ;;  %v8103_v18 = vpack.c.bf16 %v1861_v10, %v1859_v39  ;;  %v1726_v13 = vld [vmem:[#allocation2 + $0xd20] sm:$0xff]  ;;  %v1728_v21 = vld [vmem:[#allocation2 + $0xd30] sm:$0xff] }
 0x1a3   : > { %5305 = vmatpush1.bf16.msra.mxu0 %v8070_v16  ;;  %v1725_v16 = vld [vmem:[#allocation2 + $0xd18] sm:$0xff]  ;;  %v1862_v39 = vld [vmem:[#allocation2 + $0xf20] sm:$0xff] }
 0x1a4   : > { %5369 = vmatpush1.bf16.msra.mxu1 %v8074_v59  ;;  %5307 = vmatprep.subr.bf16.mxu0 %v8076_v8  ;;  %v8094_v59 = vpack.c.bf16 %v1720_v53, %v1718_v35  ;;  %10021 = vst [vmem:[#allocation240_spill] sm:$0xff] %v8098_v50  ;;  %v8100_v32 = vpack.c.bf16 %v1725_v16, %v1723_v28  ;;  %10023 = vst [vmem:[#allocation242_spill] sm:$0xff] %v8103_v18  ;;  %v1727_v8 = vld [vmem:[#allocation2 + $0xd28] sm:$0xff]  ;;  %v1865_v53 = vld [vmem:[#allocation2 + $0xf38] sm:$0xff] }
 0x1a5   : > { %5371 = vmatprep.subr.bf16.mxu1 %v8079_v42  ;;  %v1860_v42 = vld [vmem:[#allocation2 + $0xf10] sm:$0xff]  ;;  %v1863_v35 = vld [vmem:[#allocation2 + $0xf28] sm:$0xff] }
 0x1a6   : > { %10020 = vst [vmem:[#allocation239_spill] sm:$0xff] %v8094_v59  ;;  %10022 = vst [vmem:[#allocation241_spill] sm:$0xff] %v8100_v32  ;;  %v8110_v16 = vpack.c.bf16 %v1860_v42, %v1858_v34  ;;  %v8115_v10 = vpack.c.bf16 %v1865_v53, %v1863_v35  ;;  %v1730_v42 = vld [vmem:[#allocation2 + $0xd40] sm:$0xff]  ;;  %v1732_v34 = vld [vmem:[#allocation2 + $0xd50] sm:$0xff] }
 0x1a7   : > { %5309 = vmatpush1.bf16.msra.mxu0 %v8082_v26  ;;  %v1729_v26 = vld [vmem:[#allocation2 + $0xd38] sm:$0xff]  ;;  %v1866_v35 = vld [vmem:[#allocation2 + $0xf40] sm:$0xff] }
 0x1a8   : > { %5373 = vmatpush1.bf16.msra.mxu1 %v8086_v55  ;;  %5311 = vmatprep.subr.bf16.mxu0 %v8088_v0  ;;  %v8106_v55 = vpack.c.bf16 %v1724_v62, %v1722_v22  ;;  %10025 = vst [vmem:[#allocation244_spill] sm:$0xff] %v8110_v16  ;;  %v8112_v28 = vpack.c.bf16 %v1729_v26, %v1727_v8  ;;  %10027 = vst [vmem:[#allocation246_spill] sm:$0xff] %v8115_v10  ;;  %v1731_v0 = vld [vmem:[#allocation2 + $0xd48] sm:$0xff]  ;;  %v1869_v62 = vld [vmem:[#allocation2 + $0xf58] sm:$0xff] }
 0x1a9   : > { %5375 = vmatprep.subr.bf16.mxu1 %v8091_v3  ;;  %v1864_v3 = vld [vmem:[#allocation2 + $0xf30] sm:$0xff]  ;;  %v1867_v22 = vld [vmem:[#allocation2 + $0xf48] sm:$0xff] }
 0x1aa   : > { %10024 = vst [vmem:[#allocation243_spill] sm:$0xff] %v8106_v55  ;;  %10026 = vst [vmem:[#allocation245_spill] sm:$0xff] %v8112_v28  ;;  %v8122_v26 = vpack.c.bf16 %v1864_v3, %v1862_v39  ;;  %v8127_v53 = vpack.c.bf16 %v1869_v62, %v1867_v22  ;;  %v1734_v3 = vld [vmem:[#allocation2 + $0xd60] sm:$0xff]  ;;  %v1736_v39 = vld [vmem:[#allocation2 + $0xd70] sm:$0xff] }
 0x1ab   : > { %5313 = vmatpush1.bf16.msra.mxu0 %v8094_v59  ;;  %v1733_v59 = vld [vmem:[#allocation2 + $0xd58] sm:$0xff]  ;;  %v1870_v22 = vld [vmem:[#allocation2 + $0xf60] sm:$0xff] }
 0x1ac   : > { %5377 = vmatpush1.bf16.msra.mxu1 %v8098_v50  ;;  %5315 = vmatprep.subr.bf16.mxu0 %v8100_v32  ;;  %v8118_v50 = vpack.c.bf16 %v1728_v21, %v1726_v13  ;;  %10029 = vst [vmem:[#allocation248_spill] sm:$0xff] %v8122_v26  ;;  %v8124_v8 = vpack.c.bf16 %v1733_v59, %v1731_v0  ;;  %10031 = vst [vmem:[#allocation250_spill] sm:$0xff] %v8127_v53  ;;  %v1735_v32 = vld [vmem:[#allocation2 + $0xd68] sm:$0xff]  ;;  %v1873_v21 = vld [vmem:[#allocation2 + $0xf78] sm:$0xff] }
 0x1ad   : > { %5379 = vmatprep.subr.bf16.mxu1 %v8103_v18  ;;  %v1868_v18 = vld [vmem:[#allocation2 + $0xf50] sm:$0xff]  ;;  %v1871_v13 = vld [vmem:[#allocation2 + $0xf68] sm:$0xff] }
 0x1ae   : > { %10028 = vst [vmem:[#allocation247_spill] sm:$0xff] %v8118_v50  ;;  %10030 = vst [vmem:[#allocation249_spill] sm:$0xff] %v8124_v8  ;;  %v8134_v59 = vpack.c.bf16 %v1868_v18, %v1866_v35  ;;  %v8139_v62 = vpack.c.bf16 %v1873_v21, %v1871_v13  ;;  %v1738_v18 = vld [vmem:[#allocation2 + $0xd80] sm:$0xff]  ;;  %v1740_v35 = vld [vmem:[#allocation2 + $0xd90] sm:$0xff] }
 0x1af   : > { %5317 = vmatpush1.bf16.msra.mxu0 %v8106_v55  ;;  %v1737_v55 = vld [vmem:[#allocation2 + $0xd78] sm:$0xff]  ;;  %v1874_v13 = vld [vmem:[#allocation2 + $0xf80] sm:$0xff] }
 0x1b0   : > { %5381 = vmatpush1.bf16.msra.mxu1 %v8110_v16  ;;  %5319 = vmatprep.subr.bf16.mxu0 %v8112_v28  ;;  %v8130_v16 = vpack.c.bf16 %v1732_v34, %v1730_v42  ;;  %10033 = vst [vmem:[#allocation252_spill] sm:$0xff] %v8134_v59  ;;  %v8136_v0 = vpack.c.bf16 %v1737_v55, %v1735_v32  ;;  %10035 = vst [vmem:[#allocation254_spill] sm:$0xff] %v8139_v62  ;;  %v1739_v28 = vld [vmem:[#allocation2 + $0xd88] sm:$0xff]  ;;  %v1877_v34 = vld [vmem:[#allocation2 + $0xf98] sm:$0xff] }
 0x1b1   : > { %5383 = vmatprep.subr.bf16.mxu1 %v8115_v10  ;;  %v1872_v10 = vld [vmem:[#allocation2 + $0xf70] sm:$0xff]  ;;  %v1875_v42 = vld [vmem:[#allocation2 + $0xf88] sm:$0xff] }
 0x1b2   : > { %10032 = vst [vmem:[#allocation251_spill] sm:$0xff] %v8130_v16  ;;  %10034 = vst [vmem:[#allocation253_spill] sm:$0xff] %v8136_v0  ;;  %v8146_v55 = vpack.c.bf16 %v1872_v10, %v1870_v22  ;;  %v8151_v21 = vpack.c.bf16 %v1877_v34, %v1875_v42  ;;  %v1742_v10 = vld [vmem:[#allocation2 + $0xda0] sm:$0xff]  ;;  %v1744_v22 = vld [vmem:[#allocation2 + $0xdb0] sm:$0xff] }
 0x1b3   : > { %5321 = vmatpush1.bf16.msra.mxu0 %v8118_v50  ;;  %v1741_v50 = vld [vmem:[#allocation2 + $0xd98] sm:$0xff]  ;;  %v1878_v42 = vld [vmem:[#allocation2 + $0xfa0] sm:$0xff] }
 0x1b4   : > { %5385 = vmatpush1.bf16.msra.mxu1 %v8122_v26  ;;  %5323 = vmatprep.subr.bf16.mxu0 %v8124_v8  ;;  %v8142_v26 = vpack.c.bf16 %v1736_v39, %v1734_v3  ;;  %10037 = vst [vmem:[#allocation256_spill] sm:$0xff] %v8146_v55  ;;  %v8148_v32 = vpack.c.bf16 %v1741_v50, %v1739_v28  ;;  %10039 = vst [vmem:[#allocation258_spill] sm:$0xff] %v8151_v21  ;;  %v1743_v8 = vld [vmem:[#allocation2 + $0xda8] sm:$0xff]  ;;  %v1881_v39 = vld [vmem:[#allocation2 + $0xfb8] sm:$0xff] }
 0x1b5   : > { %5387 = vmatprep.subr.bf16.mxu1 %v8127_v53  ;;  %v1876_v53 = vld [vmem:[#allocation2 + $0xf90] sm:$0xff]  ;;  %v1879_v3 = vld [vmem:[#allocation2 + $0xfa8] sm:$0xff] }
 0x1b6   : > { %10036 = vst [vmem:[#allocation255_spill] sm:$0xff] %v8142_v26  ;;  %10038 = vst [vmem:[#allocation257_spill] sm:$0xff] %v8148_v32  ;;  %v8158_v50 = vpack.c.bf16 %v1876_v53, %v1874_v13  ;;  %v8163_v34 = vpack.c.bf16 %v1881_v39, %v1879_v3  ;;  %v1746_v53 = vld [vmem:[#allocation2 + $0xdc0] sm:$0xff]  ;;  %v1748_v13 = vld [vmem:[#allocation2 + $0xdd0] sm:$0xff] }
 0x1b7   : > { %5325 = vmatpush1.bf16.msra.mxu0 %v8130_v16  ;;  %v1745_v16 = vld [vmem:[#allocation2 + $0xdb8] sm:$0xff]  ;;  %v1882_v3 = vld [vmem:[#allocation2 + $0xfc0] sm:$0xff] }
 0x1b8   : > { %5389 = vmatpush1.bf16.msra.mxu1 %v8134_v59  ;;  %5327 = vmatprep.subr.bf16.mxu0 %v8136_v0  ;;  %v8154_v59 = vpack.c.bf16 %v1740_v35, %v1738_v18  ;;  %10041 = vst [vmem:[#allocation260_spill] sm:$0xff] %v8158_v50  ;;  %v8160_v28 = vpack.c.bf16 %v1745_v16, %v1743_v8  ;;  %10043 = vst [vmem:[#allocation262_spill] sm:$0xff] %v8163_v34  ;;  %v1747_v0 = vld [vmem:[#allocation2 + $0xdc8] sm:$0xff]  ;;  %v1885_v35 = vld [vmem:[#allocation2 + $0xfd8] sm:$0xff] }
 0x1b9   : > { %5391 = vmatprep.subr.bf16.mxu1 %v8139_v62  ;;  %v1880_v62 = vld [vmem:[#allocation2 + $0xfb0] sm:$0xff]  ;;  %v1883_v18 = vld [vmem:[#allocation2 + $0xfc8] sm:$0xff] }
 0x1ba   : > { %10040 = vst [vmem:[#allocation259_spill] sm:$0xff] %v8154_v59  ;;  %10042 = vst [vmem:[#allocation261_spill] sm:$0xff] %v8160_v28  ;;  %v8170_v16 = vpack.c.bf16 %v1880_v62, %v1878_v42  ;;  %v8175_v39 = vpack.c.bf16 %v1885_v35, %v1883_v18  ;;  %v1750_v62 = vld [vmem:[#allocation2 + $0xde0] sm:$0xff]  ;;  %v1752_v42 = vld [vmem:[#allocation2 + $0xdf0] sm:$0xff] }
 0x1bb   : > { %5329 = vmatpush1.bf16.msra.mxu0 %v8142_v26  ;;  %v1749_v26 = vld [vmem:[#allocation2 + $0xdd8] sm:$0xff]  ;;  %v1886_v18 = vld [vmem:[#allocation2 + $0xfe0] sm:$0xff] }
 0x1bc   : > { %5393 = vmatpush1.bf16.msra.mxu1 %v8146_v55  ;;  %5331 = vmatprep.subr.bf16.mxu0 %v8148_v32  ;;  %v8166_v55 = vpack.c.bf16 %v1744_v22, %v1742_v10  ;;  %v8172_v8 = vpack.c.bf16 %v1749_v26, %v1747_v0  ;;  %10045 = vst [vmem:[#allocation264_spill] sm:$0xff] %v8175_v39  ;;  %v1751_v32 = vld [vmem:[#allocation2 + $0xde8] sm:$0xff]  ;;  %v1889_v22 = vld [vmem:[#allocation2 + $0xff8] sm:$0xff] }
 0x1bd   : > { %5395 = vmatprep.subr.bf16.mxu1 %v8151_v21  ;;  %v1884_v21 = vld [vmem:[#allocation2 + $0xfd0] sm:$0xff]  ;;  %v1887_v10 = vld [vmem:[#allocation2 + $0xfe8] sm:$0xff] }
 0x1be   : > { %10044 = vst [vmem:[#allocation263_spill] sm:$0xff] %v8166_v55  ;;  %v8182_v26 = vpack.c.bf16 %v1884_v21, %v1882_v3  ;;  %v8187_v35 = vpack.c.bf16 %v1889_v22, %v1887_v10  ;;  %v1962_v21 = vld [vmem:[#allocation2 + $0x1000] sm:$0xff]  ;;  %v1967_v3 = vld [vmem:[#allocation2 + $0x1028] sm:$0xff]  ;;  %v1969_v10 = vld [vmem:[#allocation2 + $0x1038] sm:$0xff] }
 0x1bf   : > { %5333 = vmatpush1.bf16.msra.mxu0 %v8154_v59  ;;  %v1753_v59 = vld [vmem:[#allocation2 + $0xdf8] sm:$0xff] }
 0x1c0   : > { %5397 = vmatpush1.bf16.msra.mxu1 %v8158_v50  ;;  %5335 = vmatprep.subr.bf16.mxu0 %v8160_v28  ;;  %v8178_v50 = vpack.c.bf16 %v1748_v13, %v1746_v53  ;;  %10047 = vst [vmem:[#allocation266_spill] sm:$0xff] %v8182_v26  ;;  %v8184_v0 = vpack.c.bf16 %v1753_v59, %v1751_v32  ;;  %10049 = vst [vmem:[#allocation268_spill] sm:$0xff] %v8187_v35  ;;  %v1963_v28 = vld [vmem:[#allocation2 + $0x1008] sm:$0xff]  ;;  %v1964_v13 = vld [vmem:[#allocation2 + $0x1010] sm:$0xff] }
 0x1c1   : > { %5399 = vmatprep.subr.bf16.mxu1 %v8163_v34  ;;  %v1888_v34 = vld [vmem:[#allocation2 + $0xff0] sm:$0xff]  ;;  %v8190_v53 = vpack.c.bf16 %v1752_v42, %v1750_v62  ;;  %v8200_v22 = vpack.c.bf16 %v1964_v13, %v1962_v21  ;;  %v8204_v62 = vpack.c.bf16 %v1969_v10, %v1967_v3  ;;  %v1970_v13 = vld [vmem:[#allocation2 + $0x1040] sm:$0xff]  ;;  %v1975_v3 = vld [vmem:[#allocation2 + $0x1068] sm:$0xff] }
 0x1c2   : > { %10046 = vst [vmem:[#allocation265_spill] sm:$0xff] %v8178_v50  ;;  %10048 = vst [vmem:[#allocation267_spill] sm:$0xff] %v8184_v0  ;;  %v8194_v59 = vpack.c.bf16 %v1888_v34, %v1886_v18  ;;  %v1966_v34 = vld [vmem:[#allocation2 + $0x1020] sm:$0xff]  ;;  %v1968_v42 = vld [vmem:[#allocation2 + $0x1030] sm:$0xff] }
 0x1c3   : > { %5337 = vmatpush1.bf16.msra.mxu0 %v8166_v55  ;;  %v1965_v55 = vld [vmem:[#allocation2 + $0x1018] sm:$0xff]  ;;  %10050 = vst [vmem:[#allocation269_spill] sm:$0xff] %v8190_v53  ;;  %10053 = vst [vmem:[#allocation272_spill] sm:$0xff] %v8200_v22  ;;  %v8209_v18 = vpack.c.bf16 %v1968_v42, %v1966_v34  ;;  %v1974_v34 = vld [vmem:[#allocation2 + $0x1060] sm:$0xff] }
 0x1c4   : > { %5401 = vmatpush1.bf16.msra.mxu1 %v8170_v16  ;;  %5339 = vmatprep.subr.bf16.mxu0 %v8172_v8  ;;  %10051 = vst [vmem:[#allocation270_spill] sm:$0xff] %v8194_v59  ;;  %v8196_v32 = vpack.c.bf16 %v1965_v55, %v1963_v28  ;;  %10054 = vst [vmem:[#allocation273_spill] sm:$0xff] %v8204_v62  ;;  %v1971_v55 = vld [vmem:[#allocation2 + $0x1048] sm:$0xff]  ;;  %v1973_v28 = vld [vmem:[#allocation2 + $0x1058] sm:$0xff] }
 0x1c5   : > { %5403 = vmatprep.subr.bf16.mxu1 %v8175_v39  ;;  %10055 = vst [vmem:[#allocation274_spill] sm:$0xff] %v8209_v18  ;;  %v8212_v21 = vpack.c.bf16 %v1973_v28, %v1971_v55  ;;  %v1977_v10 = vld [vmem:[#allocation2 + $0x1078] sm:$0xff]  ;;  %v1976_v42 = vld [vmem:[#allocation2 + $0x1070] sm:$0xff] }
 0x1c6   : > { %10052 = vst [vmem:[#allocation271_spill] sm:$0xff] %v8196_v32  ;;  %v8222_v55 = vpack.c.bf16 %v1976_v42, %v1974_v34  ;;  %v1987_v34 = vld [vmem:[#allocation2 + $0x10c8] sm:$0xff]  ;;  %v1989_v42 = vld [vmem:[#allocation2 + $0x10d8] sm:$0xff] }
 0x1c7   : > { %5341 = vmatpush1.bf16.msra.mxu0 %v8178_v50  ;;  %10056 = vst [vmem:[#allocation275_spill] sm:$0xff] %v8212_v21 }
 0x1c8   : > { %5405 = vmatpush1.bf16.msra.mxu1 %v8182_v26  ;;  %5343 = vmatprep.subr.bf16.mxu0 %v8184_v0  ;;  %10059 = vst [vmem:[#allocation278_spill] sm:$0xff] %v8222_v55  ;;  %v1993_v0 = vld [vmem:[#allocation2 + $0x10f8] sm:$0xff] }
 0x1c9   : > { %5407 = vmatprep.subr.bf16.mxu1 %v8187_v35  ;;  %v1978_v35 = vld [vmem:[#allocation2 + $0x1080] sm:$0xff] }
 0x1cb   : > { %5345 = vmatpush1.bf16.msra.mxu0 %v8190_v53  ;;  %v8219_v53 = vpack.c.bf16 %v1977_v10, %v1975_v3 }
 0x1cc   : > { %5409 = vmatpush1.bf16.msra.mxu1 %v8194_v59  ;;  %5411 = vmatprep.subr.bf16.mxu0 %v8196_v32  ;;  %v1972_v32 = vld [vmem:[#allocation2 + $0x1050] sm:$0xff] }
 0x1cd   : > { %v8216_v59 = vpack.c.bf16 %v1972_v32, %v1970_v13  ;;  %10058 = vst [vmem:[#allocation277_spill] sm:$0xff] %v8219_v53  ;;  %v1983_v32 = vld [vmem:[#allocation2 + $0x10a8] sm:$0xff]  ;;  %v1985_v13 = vld [vmem:[#allocation2 + $0x10b8] sm:$0xff] }
 0x1ce   : > { %1819 = vmatmul.mubr.f32.vlgmr.msra.gmra.mrb[6].mxu0 %v8012_v40  ;;  %v8231_v10 = vpack.c.bf16 %v1985_v13, %v1983_v32 }
 0x1cf   : > { %1955 = vmatmul.mubr.f32.vlgmr.msra.gmra.mrb[6].mxu1 %v8012_v40  ;;  %5413 = vmatpush1.bf16.msra.mxu0 %v8200_v22  ;;  %10057 = vst [vmem:[#allocation276_spill] sm:$0xff] %v8216_v59  ;;  %v1979_v22 = vld [vmem:[#allocation2 + $0x1088] sm:$0xff] }
 0x1d0   : > { %5415 = vmatprep.subr.bf16.mxu0 %v8204_v62  ;;  %2090 = vmatprep.mubr.f32.mxu0 %v8029_v24  ;;  %v1981_v62 = vld [vmem:[#allocation2 + $0x1098] sm:$0xff]  ;;  %10062 = vst [vmem:[#allocation281_spill] sm:$0xff] %v8231_v10 }
 0x1d1   : > { %v8225_v28 = vpack.c.bf16 %v1981_v62, %v1979_v22  ;;  %v8237_v62 = vpack.c.bf16 %v1989_v42, %v1987_v34  ;;  %v1992_v34 = vld [vmem:[#allocation2 + $0x10f0] sm:$0xff]  ;;  %v1995_v42 = vld [vmem:[#allocation2 + $0x1108] sm:$0xff] }
 0x1d3   : > { %5417 = vmatpush1.bf16.msra.mxu0 %v8209_v18  ;;  %10060 = vst [vmem:[#allocation279_spill] sm:$0xff] %v8225_v28  ;;  %v1980_v18 = vld [vmem:[#allocation2 + $0x1090] sm:$0xff]  ;;  %10064 = vst [vmem:[#allocation283_spill] sm:$0xff] %v8237_v62 }
 0x1d4   : > { %5419 = vmatprep.subr.bf16.mxu0 %v8212_v21  ;;  %v8228_v3 = vpack.c.bf16 %v1980_v18, %v1978_v35  ;;  %v1982_v21 = vld [vmem:[#allocation2 + $0x10a0] sm:$0xff]  ;;  %v1991_v18 = vld [vmem:[#allocation2 + $0x10e8] sm:$0xff] }
 0x1d6   : > { %10061 = vst [vmem:[#allocation280_spill] sm:$0xff] %v8228_v3 }
 0x1d7   : > { %5421 = vmatpush1.bf16.msra.mxu0 %v8216_v59  ;;  %v1984_v59 = vld [vmem:[#allocation2 + $0x10b0] sm:$0xff] }
 0x1d8   : > { %5423 = vmatprep.subr.bf16.mxu0 %v8219_v53  ;;  %v8234_v22 = vpack.c.bf16 %v1984_v59, %v1982_v21  ;;  %v1986_v53 = vld [vmem:[#allocation2 + $0x10c0] sm:$0xff]  ;;  %v8243_v59 = vpack.c.bf16 %v1993_v0, %v1991_v18 }
 0x1d9   : > { %v1990_v21 = vld [vmem:[#allocation2 + $0x10e0] sm:$0xff] }
 0x1da   : > { %10063 = vst [vmem:[#allocation282_spill] sm:$0xff] %v8234_v22  ;;  %10066 = vst [vmem:[#allocation285_spill] sm:$0xff] %v8243_v59  ;;  %v8246_v39 = vpack.c.bf16 %v1992_v34, %v1990_v21  ;;  %v1998_v18 = vld [vmem:[#allocation2 + $0x1120] sm:$0xff]  ;;  %v2005_v21 = vld [vmem:[#allocation2 + $0x1158] sm:$0xff] }
 0x1db   : > { %5425 = vmatpush1.bf16.msra.mxu0 %v8222_v55  ;;  %v1988_v55 = vld [vmem:[#allocation2 + $0x10d0] sm:$0xff] }
 0x1dc   : > { %5427 = vmatprep.subr.bf16.mxu0 %v8225_v28  ;;  %v8240_v50 = vpack.c.bf16 %v1988_v55, %v1986_v53  ;;  %10067 = vst [vmem:[#allocation286_spill] sm:$0xff] %v8246_v39  ;;  %v1994_v53 = vld [vmem:[#allocation2 + $0x1100] sm:$0xff]  ;;  %v1999_v55 = vld [vmem:[#allocation2 + $0x1128] sm:$0xff] }
 0x1de   : > { %10065 = vst [vmem:[#allocation284_spill] sm:$0xff] %v8240_v50 }
 0x1df   : > { %5429 = vmatpush1.bf16.msra.mxu0 %v8228_v3 }
 0x1e0   : > { %5431 = vmatprep.subr.bf16.mxu0 %v8231_v10  ;;  %v1997_v10 = vld [vmem:[#allocation2 + $0x1118] sm:$0xff] }
 0x1e1   : > { %v1004_v35 = vpop.f32.mrb[0].mxu0 }
 0x1e2   : > { %v1140_v28 = vpop.f32.mrb[0].mxu1  ;;  %v1006_v32 = vpop.f32.mrb[1].mxu0 }
 0x1e3   : > { %v5476_v13 = vpack.c.bf16 %v1140_v28, %v1004_v35  ;;  %v1142_v26 = vpop.f32.mrb[1].mxu1  ;;  %5433 = vmatpush1.bf16.msra.mxu0 %v8234_v22  ;;  %v8249_v28 = vpack.c.bf16 %v1997_v10, %v1995_v42  ;;  %v2001_v35 = vld [vmem:[#allocation2 + $0x1138] sm:$0xff]  ;;  %v2002_v42 = vld [vmem:[#allocation2 + $0x1140] sm:$0xff] }
 0x1e4   : > { %v5474_v3 = vpack.c.bf16 %v1142_v26, %v1006_v32  ;;  %5435 = vmatprep.subr.bf16.mxu0 %v8237_v62  ;;  %v1996_v26 = vld [vmem:[#allocation2 + $0x1110] sm:$0xff] }
 0x1e5   : > { %10068 = vst [vmem:[#allocation287_spill] sm:$0xff] %v8249_v28  ;;  %v8252_v0 = vpack.c.bf16 %v1996_v26, %v1994_v53  ;;  %v2000_v32 = vld [vmem:[#allocation2 + $0x1130] sm:$0xff]  ;;  %v2007_v53 = vld [vmem:[#allocation2 + $0x1168] sm:$0xff]  ;;  %v2009_v26 = vld [vmem:[#allocation2 + $0x1178] sm:$0xff] }
 0x1e6   : > { %5475 = vmatprep.subr.bf16.mxu1 %v5474_v3  ;;  %v8255_v3 = vpack.c.bf16 %v2001_v35, %v1999_v55  ;;  %v8258_v10 = vpack.c.bf16 %v2000_v32, %v1998_v18  ;;  %v8267_v35 = vpack.c.bf16 %v2009_v26, %v2007_v53  ;;  %v2011_v18 = vld [vmem:[#allocation2 + $0x1188] sm:$0xff]  ;;  %v2013_v32 = vld [vmem:[#allocation2 + $0x1198] sm:$0xff] }
 0x1e7   : > { %5477 = vmatpush1.bf16.msra.mxu1 %v5476_v13  ;;  %5437 = vmatpush1.bf16.msra.mxu0 %v8240_v50  ;;  %10069 = vst [vmem:[#allocation288_spill] sm:$0xff] %v8252_v0  ;;  %v2003_v13 = vld [vmem:[#allocation2 + $0x1148] sm:$0xff] }
 0x1e8   : > { %5439 = vmatprep.subr.bf16.mxu0 %v8243_v59  ;;  %10070 = vst [vmem:[#allocation289_spill] sm:$0xff] %v8255_v3  ;;  %10071 = vst [vmem:[#allocation290_spill] sm:$0xff] %v8258_v10  ;;  %v8261_v34 = vpack.c.bf16 %v2005_v21, %v2003_v13  ;;  %v8273_v21 = vpack.c.bf16 %v2013_v32, %v2011_v18 }
 0x1e9   : > { %10074 = vst [vmem:[#allocation293_spill] sm:$0xff] %v8267_v35 }
 0x1ea   : > { %10072 = vst [vmem:[#allocation291_spill] sm:$0xff] %v8261_v34  ;;  %10076 = vst [vmem:[#allocation295_spill] sm:$0xff] %v8273_v21 }
 0x1eb   : > { %5441 = vmatpush1.bf16.msra.mxu0 %v8246_v39  ;;  %v2004_v39 = vld [vmem:[#allocation2 + $0x1150] sm:$0xff] }
 0x1ec   : > { %5443 = vmatprep.subr.bf16.mxu0 %v8249_v28  ;;  %v8264_v55 = vpack.c.bf16 %v2004_v39, %v2002_v42  ;;  %v2006_v28 = vld [vmem:[#allocation2 + $0x1160] sm:$0xff]  ;;  %v2015_v39 = vld [vmem:[#allocation2 + $0x11a8] sm:$0xff]  ;;  %v2017_v42 = vld [vmem:[#allocation2 + $0x11b8] sm:$0xff] }
 0x1ed   : > { %v8279_v26 = vpack.c.bf16 %v2017_v42, %v2015_v39 }
 0x1ee   : > { %10073 = vst [vmem:[#allocation292_spill] sm:$0xff] %v8264_v55 }
 0x1ef   : > { %5445 = vmatpush1.bf16.msra.mxu0 %v8252_v0  ;;  %v2008_v0 = vld [vmem:[#allocation2 + $0x1170] sm:$0xff]  ;;  %10078 = vst [vmem:[#allocation297_spill] sm:$0xff] %v8279_v26 }
 0x1f0   : > { %5447 = vmatprep.subr.bf16.mxu0 %v8255_v3  ;;  %v8270_v13 = vpack.c.bf16 %v2008_v0, %v2006_v28  ;;  %v2010_v3 = vld [vmem:[#allocation2 + $0x1180] sm:$0xff]  ;;  %v2019_v28 = vld [vmem:[#allocation2 + $0x11c8] sm:$0xff]  ;;  %v2021_v0 = vld [vmem:[#allocation2 + $0x11d8] sm:$0xff] }
 0x1f1   : > { %v8285_v32 = vpack.c.bf16 %v2021_v0, %v2019_v28  ;;  %v10084_v28 = vld [vmem:[#allocation100_spill] sm:$0xff]  ;;  %v10085_v0 = vld [vmem:[#allocation102_spill] sm:$0xff] }
 0x1f2   : > { %10075 = vst [vmem:[#allocation294_spill] sm:$0xff] %v8270_v13 }
 0x1f3   : > { %5449 = vmatpush1.bf16.msra.mxu0 %v8258_v10  ;;  %v2012_v10 = vld [vmem:[#allocation2 + $0x1190] sm:$0xff]  ;;  %10080 = vst [vmem:[#allocation299_spill] sm:$0xff] %v8285_v32 }
 0x1f4   : > { %5451 = vmatprep.subr.bf16.mxu0 %v8261_v34  ;;  %v8276_v53 = vpack.c.bf16 %v2012_v10, %v2010_v3  ;;  %v2014_v34 = vld [vmem:[#allocation2 + $0x11a0] sm:$0xff]  ;;  %v2023_v3 = vld [vmem:[#allocation2 + $0x11e8] sm:$0xff]  ;;  %v2025_v10 = vld [vmem:[#allocation2 + $0x11f8] sm:$0xff] }
 0x1f5   : > { %v8291_v42 = vpack.c.bf16 %v2025_v10, %v2023_v3 }
 0x1f6   : > { %10077 = vst [vmem:[#allocation296_spill] sm:$0xff] %v8276_v53 }
 0x1f7   : > { %5453 = vmatpush1.bf16.msra.mxu0 %v8264_v55  ;;  %v2016_v55 = vld [vmem:[#allocation2 + $0x11b0] sm:$0xff]  ;;  %10082 = vst [vmem:[#allocation301_spill] sm:$0xff] %v8291_v42 }
 0x1f8   : > { %5455 = vmatprep.subr.bf16.mxu0 %v8267_v35  ;;  %v8282_v18 = vpack.c.bf16 %v2016_v55, %v2014_v34  ;;  %v2018_v35 = vld [vmem:[#allocation2 + $0x11c0] sm:$0xff] }
 0x1fa   : > { %10079 = vst [vmem:[#allocation298_spill] sm:$0xff] %v8282_v18 }
 0x1fb   : > { %5457 = vmatpush1.bf16.msra.mxu0 %v8270_v13  ;;  %v2020_v13 = vld [vmem:[#allocation2 + $0x11d0] sm:$0xff] }
 0x1fc   : > { %5459 = vmatprep.subr.bf16.mxu0 %v8273_v21  ;;  %v8288_v39 = vpack.c.bf16 %v2020_v13, %v2018_v35  ;;  %v2022_v21 = vld [vmem:[#allocation2 + $0x11e0] sm:$0xff] }
 0x1fe   : > { %10081 = vst [vmem:[#allocation300_spill] sm:$0xff] %v8288_v39 }
 0x1ff   : > { %5461 = vmatpush1.bf16.msra.mxu0 %v8276_v53  ;;  %v2024_v53 = vld [vmem:[#allocation2 + $0x11f0] sm:$0xff] }
 0x200   : > { %5463 = vmatprep.subr.bf16.mxu0 %v8279_v26  ;;  %v8294_v34 = vpack.c.bf16 %v2024_v53, %v2022_v21 }
 0x202   : > { %10083 = vst [vmem:[#allocation302_spill] sm:$0xff] %v8294_v34 }
 0x203   : > { %5465 = vmatpush1.bf16.msra.mxu0 %v8282_v18 }
 0x204   : > { %5467 = vmatprep.subr.bf16.mxu0 %v8285_v32 }
 0x207   : > { %5469 = vmatpush1.bf16.msra.mxu0 %v8288_v39 }
 0x208   : > { %5471 = vmatprep.subr.bf16.mxu0 %v8291_v42 }
 0x20b   : > { %5473 = vmatpush1.bf16.msra.mxu0 %v8294_v34 }
 0x20c   : > { %5555 = vmatprep.subr.bf16.mxu0 %v7393_v7  ;;  %v10161_v7 = vld [vmem:[#allocation109_spill] sm:$0xff] }
 0x20e   : > { %2091 = vmatmul.mubr.f32.vlgmr.msra.gmra.mrb[8].mxu0 %v8012_v40 }
 0x20f   : > { %5557 = vmatpush1.bf16.msra.mxu0 %v7398_v12  ;;  %2513 = vmatprep.mubr.f32.mxu0 %v8029_v24  ;;  %v10160_v12 = vld [vmem:[#allocation107_spill] sm:$0xff] }
 0x210   : > { %5559 = vmatprep.subr.bf16.mxu0 %v7404_v17  ;;  %v10159_v17 = vld [vmem:[#allocation105_spill] sm:$0xff] }
 0x213   : > { %5561 = vmatpush1.bf16.msra.mxu0 %v7411_v25  ;;  %v10158_v25 = vld [vmem:[#allocation103_spill] sm:$0xff] }
 0x214   : > { %5563 = vmatprep.subr.bf16.mxu0 %v7415_v30  ;;  %v10157_v30 = vld [vmem:[#allocation101_spill] sm:$0xff] }
 0x217   : > { %5565 = vmatpush1.bf16.msra.mxu0 %v7422_v38  ;;  %v10156_v38 = vld [vmem:[#allocation99_spill] sm:$0xff] }
 0x218   : > { %5567 = vmatprep.subr.bf16.mxu0 %v7427_v43  ;;  %v10155_v43 = vld [vmem:[#allocation97_spill] sm:$0xff] }
 0x21b   : > { %5569 = vmatpush1.bf16.msra.mxu0 %v7434_v51  ;;  %v10154_v51 = vld [vmem:[#allocation95_spill] sm:$0xff] }
 0x21c   : > { %5571 = vmatprep.subr.bf16.mxu0 %v7439_v56  ;;  %v10153_v56 = vld [vmem:[#allocation93_spill] sm:$0xff] }
 0x21f   : > { %5573 = vmatpush1.bf16.msra.mxu0 %v7446_v63  ;;  %v10152_v63 = vld [vmem:[#allocation91_spill] sm:$0xff] }
 0x220   : > { %5575 = vmatprep.subr.bf16.mxu0 %v7451_v5  ;;  %v10151_v5 = vld [vmem:[#allocation89_spill] sm:$0xff] }
 0x221   : > { %v1276_v55 = vpop.f32.mrb[2].mxu0 }
 0x222   : > { %v1412_v24 = vpop.f32.mrb[2].mxu1  ;;  %v1278_v35 = vpop.f32.mrb[3].mxu0 }
 0x223   : > { %v5480_v13 = vpack.c.bf16 %v1412_v24, %v1276_v55  ;;  %v1414_v21 = vpop.f32.mrb[3].mxu1  ;;  %5577 = vmatpush1.bf16.msra.mxu0 %v7458_v15  ;;  %v10150_v15 = vld [vmem:[#allocation87_spill] sm:$0xff] }
 0x224   : > { %v5478_v53 = vpack.c.bf16 %v1414_v21, %v1278_v35  ;;  %5579 = vmatprep.subr.bf16.mxu0 %v7463_v23  ;;  %v10086_v35 = vld [vmem:[#allocation104_spill] sm:$0xff]  ;;  %v10087_v21 = vld [vmem:[#allocation106_spill] sm:$0xff]  ;;  %v10149_v23 = vld [vmem:[#allocation85_spill] sm:$0xff] }
 0x226   : > { %5479 = vmatprep.subr.bf16.mxu1 %v5478_v53  ;;  %v9711_v53 = vmov 0.0  }
 0x227   : > { %5481 = vmatpush1.bf16.msra.mxu1 %v5480_v13  ;;  %5581 = vmatpush1.bf16.msra.mxu0 %v7470_v33  ;;  %v10148_v33 = vld [vmem:[#allocation83_spill] sm:$0xff] }
 0x228   : > { %5583 = vmatprep.subr.bf16.mxu0 %v7475_v41  ;;  %2172 = vmatprep.mubr.f32.mxu1 %v9711_v53  ;;  %v10094_v53 = vld [vmem:[#allocation118_spill] sm:$0xff]  ;;  %v8445_v41 = vld [vmem:[%s7525_s22] sm:$0xff] }
 0x22b   : > { %5585 = vmatpush1.bf16.msra.mxu0 %v7483_v49  ;;  %v10147_v49 = vld [vmem:[#allocation81_spill] sm:$0xff] }
 0x22c   : > { %5587 = vmatprep.subr.bf16.mxu0 %v7488_v58  ;;  %v10146_v58 = vld [vmem:[#allocation79_spill] sm:$0xff] }
 0x22f   : > { %5589 = vmatpush1.bf16.msra.mxu0 %v7500_v6  ;;  %v10145_v6 = vld [vmem:[#allocation77_spill] sm:$0xff] }
 0x230   : > { %5591 = vmatprep.subr.bf16.mxu0 %v7505_v19  ;;  %v10144_v19 = vld [vmem:[#allocation75_spill] sm:$0xff] }
 0x233   : > { %5593 = vmatpush1.bf16.msra.mxu0 %v7513_v31  ;;  %v10143_v31 = vld [vmem:[#allocation73_spill] sm:$0xff] }
 0x234   : > { %5595 = vmatprep.subr.bf16.mxu0 %v7518_v44  ;;  %v10142_v44 = vld [vmem:[#allocation71_spill] sm:$0xff] }
 0x237   : > { %5597 = vmatpush1.bf16.msra.mxu0 %v7532_v60  ;;  %v10141_v60 = vld [vmem:[#allocation69_spill] sm:$0xff] }
 0x238   : > { %5599 = vmatprep.subr.bf16.mxu0 %v7537_v11  ;;  %v10140_v11 = vld [vmem:[#allocation67_spill] sm:$0xff] }
 0x23b   : > { %5601 = vmatpush1.bf16.msra.mxu0 %v7549_v37  ;;  %v10139_v37 = vld [vmem:[#allocation65_spill] sm:$0xff] }
 0x23c   : > { %5603 = vmatprep.subr.bf16.mxu0 %v7554_v47  ;;  %v10138_v47 = vld [vmem:[#allocation63_spill] sm:$0xff] }
 0x23f   : > { %5605 = vmatpush1.bf16.msra.mxu0 %v7561_v2  ;;  %v10137_v2 = vld [vmem:[#allocation61_spill] sm:$0xff] }
 0x240   : > { %5607 = vmatprep.subr.bf16.mxu0 %v7566_v27  ;;  %v10136_v27 = vld [vmem:[#allocation59_spill] sm:$0xff] }
 0x243   : > { %5609 = vmatpush1.bf16.msra.mxu0 %v7573_v57  ;;  %v10135_v57 = vld [vmem:[#allocation57_spill] sm:$0xff] }
 0x244   : > { %5611 = vmatprep.subr.bf16.mxu0 %v7578_v1  ;;  %v10134_v1 = vld [vmem:[#allocation55_spill] sm:$0xff] }
 0x247   : > { %5613 = vmatpush1.bf16.msra.mxu0 %v7585_v29  ;;  %v10133_v29 = vld [vmem:[#allocation53_spill] sm:$0xff] }
 0x248   : > { %5615 = vmatprep.subr.bf16.mxu0 %v7590_v45  ;;  %v10132_v45 = vld [vmem:[#allocation51_spill] sm:$0xff] }
 0x24b   : > { %5617 = vmatpush1.bf16.msra.mxu0 %v7597_v4  ;;  %v10131_v4 = vld [vmem:[#allocation49_spill] sm:$0xff] }
 0x24c   : > { %5683 = vmatprep.subr.bf16.mxu0 %v7602_v20  ;;  %v10130_v20 = vld [vmem:[#allocation47_spill] sm:$0xff] }
 0x24e   : > { %2514 = vmatmul.mubr.f32.vlgmr.msra.gmra.mrb[10].mxu0 %v8012_v40 }
 0x24f   : > { %5685 = vmatpush1.bf16.msra.mxu0 %v7612_v48  ;;  %v10129_v48 = vld [vmem:[#allocation45_spill] sm:$0xff] }
 0x250   : > { %5687 = vmatprep.subr.bf16.mxu0 %v7617_v61  ;;  %v10128_v61 = vld [vmem:[#allocation43_spill] sm:$0xff] }
 0x253   : > { %5689 = vmatpush1.bf16.msra.mxu0 %v7626_v46  ;;  %v10127_v46 = vld [vmem:[#allocation41_spill] sm:$0xff] }
 0x254   : > { %5691 = vmatprep.subr.bf16.mxu0 %v7631_v36 }
 0x257   : > { %5693 = vmatpush1.bf16.msra.mxu0 %v7640_v14 }
 0x258   : > { %5695 = vmatprep.subr.bf16.mxu0 %v7645_v9 }
 0x25b   : > { %5697 = vmatpush1.bf16.msra.mxu0 %v7652_v52 }
 0x25c   : > { %5699 = vmatprep.subr.bf16.mxu0 %v7657_v54  ;;  %v2098_v54 = vld [vmem:[%s10088_s10] sm:$0xff] }
 0x25f   : > { %5701 = vmatpush1.bf16.msra.mxu0 %v10084_v28  ;;  %v7076_v28 = vmov 0  }
 0x260   : > { %5703 = vmatprep.subr.bf16.mxu0 %v10085_v0  ;;  %6825 = vset.pattern.permute.xlu0 %v7076_v28  ;;  %v10097_v0 = vld [vmem:[#allocation124_spill] sm:$0xff] }
 0x261   : > { %v1548_v40 = vpop.f32.mrb[4].mxu0  ;;  %2101 = vperm.xlu0 %6825, %v2098_v54   ;;  %6826 = vset.pattern.permute.xlu1 %v7076_v28  ;;  %v10098_v54 = vld [vmem:[#allocation126_spill] sm:$0xff]  ;;  %v10099_v28 = vld [vmem:[#allocation128_spill] sm:$0xff] }
 0x262   : > { %v1684_v3 = vpop.f32.mrb[4].mxu1  ;;  %v1550_v10 = vpop.f32.mrb[5].mxu0 }
 0x263   : > { %v5484_v55 = vpack.c.bf16 %v1684_v3, %v1548_v40  ;;  %v1686_v24 = vpop.f32.mrb[5].mxu1  ;;  %5705 = vmatpush1.bf16.msra.mxu0 %v10086_v35  ;;  %v10089_v40 = vld [vmem:[#allocation108_spill] sm:$0xff]  ;;  %v10090_v3 = vld [vmem:[#allocation110_spill] sm:$0xff] }
 0x264   : > { %v5482_v13 = vpack.c.bf16 %v1686_v24, %v1550_v10  ;;  %5707 = vmatprep.subr.bf16.mxu0 %v10087_v21  ;;  %v10091_v10 = vld [vmem:[#allocation112_spill] sm:$0xff]  ;;  %v10092_v24 = vld [vmem:[#allocation114_spill] sm:$0xff] }
 0x265   : > { %v10093_v21 = vld [vmem:[#allocation116_spill] sm:$0xff] }
 0x266   : > { %5483 = vmatprep.subr.bf16.mxu1 %v5482_v13  ;;  %v10095_v35 = vld [vmem:[#allocation120_spill] sm:$0xff]  ;;  %v10096_v13 = vld [vmem:[#allocation122_spill] sm:$0xff] }
 0x267   : > { %5485 = vmatpush1.bf16.msra.mxu1 %v5484_v55  ;;  %5709 = vmatpush1.bf16.msra.mxu0 %v10089_v40  ;;  %v10100_v55 = vld [vmem:[#allocation130_spill] sm:$0xff] }
 0x268   : > { %5711 = vmatprep.subr.bf16.mxu0 %v10090_v3  ;;  %v10101_v3 = vld [vmem:[#allocation132_spill] sm:$0xff] }
 0x26b   : > { %5713 = vmatpush1.bf16.msra.mxu0 %v10091_v10  ;;  %v10102_v10 = vld [vmem:[#allocation134_spill] sm:$0xff] }
 0x26c   : > { %5715 = vmatprep.subr.bf16.mxu0 %v10092_v24  ;;  %v10103_v24 = vld [vmem:[#allocation136_spill] sm:$0xff] }
 0x26f   : > { %5717 = vmatpush1.bf16.msra.mxu0 %v10093_v21  ;;  %v10104_v21 = vld [vmem:[#allocation138_spill] sm:$0xff] }
 0x270   : > { %5719 = vmatprep.subr.bf16.mxu0 %v10094_v53  ;;  %v10105_v53 = vld [vmem:[#allocation140_spill] sm:$0xff] }
 0x273   : > { %5721 = vmatpush1.bf16.msra.mxu0 %v10095_v35  ;;  %v10106_v35 = vld [vmem:[#allocation142_spill] sm:$0xff] }
 0x274   : > { %5723 = vmatprep.subr.bf16.mxu0 %v10096_v13  ;;  %v10107_v13 = vld [vmem:[#allocation144_spill] sm:$0xff] }
 0x277   : > { %5725 = vmatpush1.bf16.msra.mxu0 %v10097_v0  ;;  %v10108_v0 = vld [vmem:[#allocation146_spill] sm:$0xff] }
 0x278   : > { %5727 = vmatprep.subr.bf16.mxu0 %v10098_v54 }
 0x27b   : > { %5729 = vmatpush1.bf16.msra.mxu0 %v10099_v28 }
 0x27c   : > { %5731 = vmatprep.subr.bf16.mxu0 %v10100_v55 }
 0x27f   : > { %5733 = vmatpush1.bf16.msra.mxu0 %v10101_v3 }
 0x280   : > { %5735 = vmatprep.subr.bf16.mxu0 %v10102_v10 }
 0x283   : > { %5737 = vmatpush1.bf16.msra.mxu0 %v10103_v24 }
 0x284   : > { %5739 = vmatprep.subr.bf16.mxu0 %v10104_v21 }
 0x287   : > { %5741 = vmatpush1.bf16.msra.mxu0 %v10105_v53  ;;  %v2097_v53 = vld [vmem:[%s10109_s27] sm:$0xff] }
 0x288   : > { %5743 = vmatprep.subr.bf16.mxu0 %v10106_v35 }
 0x28b   : > { %5745 = vmatpush1.bf16.msra.mxu0 %v10107_v13  ;;  %v10110_v13 = vmov 0.0  }
 0x28c   : > { %5811 = vmatprep.subr.bf16.mxu0 %v10108_v0 }
 0x2a1   : > { %v1820_v54 = vpop.f32.mrb[6].mxu0 }
 0x2a2   : > { %v1956_v28 = vpop.f32.mrb[6].mxu1  ;;  %v1822_v40 = vpop.f32.mrb[7].mxu0 }
 0x2a3   : > { %v5488_v55 = vpack.c.bf16 %v1956_v28, %v1820_v54  ;;  %v1958_v52 = vpop.f32.mrb[7].mxu1  ;;  %v3067_v28 = vld [vmem:[%s10113_s3] sm:$0xff] }
 0x2a4   : > { %v5486_v3 = vpack.c.bf16 %v1958_v52, %v1822_v40 }
 0x2a6   : > { %5487 = vmatprep.subr.bf16.mxu1 %v5486_v3 }
 0x2a7   : > { %5489 = vmatpush1.bf16.msra.mxu1 %v5488_v55 }
 0x2e0   : > { %v2102_v0 = vpop.permute.xlu0 %2101 }
 0x2e1   : > { %v2092_v10 = vpop.f32.mrb[8].mxu0 }
 0x2e2   : > { %v2094_v24 = vpop.f32.mrb[9].mxu0 }
 0x2e3   : > { %2124 = vmatprep.subr.mxu1 %v2094_v24 }
 0x2e4   : > { %2125 = vmatpush1.msra.mxu1 %v2092_v10  ;;  %v2280_v10 = vld [vmem:[%s10112_s16] sm:$0xff] }
 0x2e5   : > { %4862 = vmatmul.mubr.msk.f32.vlgmr.msra.gmra.mrb[8].mxu1 %vm2104_vm0, %v2097_v53  ;;  %v3155_v53 = vld [vmem:[%s9214_s11] sm:$0xf] }
 0x2e6   : > { %2260 = vmatprep.mubr.f32.mxu1 %v10110_v13 }
 0x3b8   : > { %v2174_v35 = vpop.f32.mrb[8].mxu1 }
 0x3b9   : > { %v8374_v21 = vadd.f32 %v2174_v35, %v2102_v0  ;;  %v2176_v54 = vpop.f32.mrb[9].mxu1  ;;  %v2186_v35 = vld [vmem:[%s10111_s30] sm:$0xf] }
 0x3ba   : > { %v8376_v52 = vadd.f32 %v2176_v54, %v2102_v0  ;;  %v4087_v0 = vld [vmem:[%s9218_s15] sm:$0xff]  ;;  %2189 = vperm.xlu1 %6826, %v2186_v35  }
 0x3bb   : > { %v9714_v40 = vmax.f32 %v8374_v21, 0.0 }
 0x3bc   : > { %v9715_v3 = vmax.f32 %v8376_v52, 0.0 }
 0x3be   : > { %v2181_v24 = vadd.f32 %v9715_v3, %v9714_v40  ;;  %2283 = vperm.xlu1 %6826, %v2280_v10  }
 0x3c0   : > { %2182 = vadd.xlane.f32.xlu0 %v2181_v24  ;;  %v2185_v24 = vld [vmem:[#allocation4] sm:$0xf] }
 0x3c2   : > { %3070 = vperm.xlu1 %6826, %v3067_v28  }
 0x3d6   : > { %3158 = vperm.xlu0 %6825, %v3155_v53  }
 0x3da   : > { %4090 = vperm.xlu0 %6825, %v4087_v0  }
 0x439   : > { %v2190_v53 = vpop.permute.xlu1 %2189 }
 0x44d   : > { %v2183_v55 = vpop.xlane.xlu0 %2182 }
 0x44e   : > { %v2184_v54 = vmul.f32 0.00390625, %v2183_v55 }
 0x450   : > { %2196 = vmatprep.subr.mxu1 %v2184_v54 }
 0x451   : > { %2197 = vmatpush1.msra.mxu1 %v2184_v54 }
 0x452   : > { %4863 = vmatmul.mubr.msk.f32.vlgmr.msra.gmra.mrb[10].mxu1 %vm2192_vm1, %v2185_v24  ;;  %v2279_v24 = vld [vmem:[%s10114_s7] sm:$0xff] }
 0x453   : > { %2361 = vmatprep.mubr.f32.mxu1 %v10110_v13 }
 0x525   : > { %v2262_v0 = vpop.f32.mrb[10].mxu1 }
 0x526   : > { %v2263_v35 = vadd.f32 %v2262_v0, %v2190_v53  ;;  %v2264_v40 = vpop.f32.mrb[11].mxu1 }
 0x527   : > { %v2265_v10 = vadd.f32 %v2264_v40, %v2190_v53  ;;  %v10116_v40 = vld [vmem:[#allocation19_spill] sm:$0xff]  ;;  %v10119_v53 = vld [vmem:[#allocation25_spill] sm:$0xff] }
 0x528   : > { %v4864_v3 = vmul.f32 -1.442695, %v2263_v35  ;;  %v10120_v35 = vld [vmem:[#allocation27_spill] sm:$0xff] }
 0x529   : > { %v4865_v9 = vmul.f32 -1.442695, %v2265_v10  ;;  %v10121_v10 = vld [vmem:[#allocation29_spill] sm:$0xff] }
 0x52a   : > { %6827 = vpow2.f32 %v4864_v3  ;;  %v10118_v3 = vld [vmem:[#allocation23_spill] sm:$0xff] }
 0x52b   : > { %6829 = vpow2.f32 %v4865_v9  ;;  %v10115_v9 = vld [vmem:[#allocation17_spill] sm:$0xff] }
 0x534   : > { %v6828_v28 = vpop.eup %6827 }
 0x535   : > { %v6830_v55 = vpop.eup %6829  ;;  %v2273_v14 = vadd.f32 1.0, %v6828_v28  ;;  %v10122_v28 = vld [vmem:[#allocation31_spill] sm:$0xff] }
 0x536   : > { %v2274_v36 = vadd.f32 1.0, %v6830_v55  ;;  %v10123_v55 = vld [vmem:[#allocation33_spill] sm:$0xff] }
 0x538   : > { %6831 = vrcp.f32 %v2274_v36  ;;  %v8410_v36 = vld [vmem:[%s7525_s22 + $0x8] sm:$0xff] }
 0x539   : > { %6833 = vrcp.f32 %v2273_v14  ;;  %v10117_v14 = vld [vmem:[#allocation21_spill] sm:$0xff] }
 0x542   : > { %v6832_v54 = vpop.eup %6831 }
 0x543   : > { %v6834_v0 = vpop.eup %6833  ;;  %4866 = vmatprep.subr.msk.mxu1 %vm2290_vm2, %v6832_v54  ;;  %v10124_v54 = vld [vmem:[#allocation35_spill] sm:$0xff] }
 0x544   : > { %4867 = vmatpush1.msk.msra.mxu1 %vm2290_vm2, %v6834_v0  ;;  %v10126_v0 = vld [vmem:[#allocation39_spill] sm:$0xff] }
 0x545   : > { %4868 = vmatmul.mubr.msk.f32.vlgmr.msra.gmra.mrb[12].mxu1 %vm2286_vm3, %v2279_v24  ;;  %5491 = vmatprep.subr.bf16.mxu1 %v10115_v9  ;;  %v10125_v24 = vld [vmem:[#allocation37_spill] sm:$0xff] }
 0x546   : > { %5493 = vmatpush1.bf16.msra.mxu1 %v10116_v40  ;;  %2436 = vmatprep.mubr.f32.mxu1 %v8410_v36 }
 0x547   : > { %5495 = vmatprep.subr.bf16.mxu1 %v10117_v14 }
 0x54a   : > { %5497 = vmatpush1.bf16.msra.mxu1 %v10118_v3 }
 0x54b   : > { %5499 = vmatprep.subr.bf16.mxu1 %v10119_v53 }
 0x54e   : > { %5501 = vmatpush1.bf16.msra.mxu1 %v10120_v35 }
 0x54f   : > { %5503 = vmatprep.subr.bf16.mxu1 %v10121_v10 }
 0x552   : > { %5505 = vmatpush1.bf16.msra.mxu1 %v10122_v28 }
 0x553   : > { %5507 = vmatprep.subr.bf16.mxu1 %v10123_v55 }
 0x556   : > { %5509 = vmatpush1.bf16.msra.mxu1 %v10124_v54 }
 0x557   : > { %5511 = vmatprep.subr.bf16.mxu1 %v10125_v24 }
 0x55a   : > { %5513 = vmatpush1.bf16.msra.mxu1 %v10126_v0 }
 0x55b   : > { %5515 = vmatprep.subr.bf16.mxu1 %v10127_v46 }
 0x55e   : > { %5517 = vmatpush1.bf16.msra.mxu1 %v10128_v61 }
 0x55f   : > { %5519 = vmatprep.subr.bf16.mxu1 %v10129_v48 }
 0x562   : > { %5521 = vmatpush1.bf16.msra.mxu1 %v10130_v20 }
 0x563   : > { %5523 = vmatprep.subr.bf16.mxu1 %v10131_v4 }
 0x566   : > { %5525 = vmatpush1.bf16.msra.mxu1 %v10132_v45 }
 0x567   : > { %5527 = vmatprep.subr.bf16.mxu1 %v10133_v29 }
 0x56a   : > { %5529 = vmatpush1.bf16.msra.mxu1 %v10134_v1 }
 0x56b   : > { %5531 = vmatprep.subr.bf16.mxu1 %v10135_v57 }
 0x56e   : > { %5533 = vmatpush1.bf16.msra.mxu1 %v10136_v27 }
 0x56f   : > { %5535 = vmatprep.subr.bf16.mxu1 %v10137_v2 }
 0x572   : > { %5537 = vmatpush1.bf16.msra.mxu1 %v10138_v47 }
 0x573   : > { %5539 = vmatprep.subr.bf16.mxu1 %v10139_v37 }
 0x576   : > { %5541 = vmatpush1.bf16.msra.mxu1 %v10140_v11 }
 0x577   : > { %5543 = vmatprep.subr.bf16.mxu1 %v10141_v60 }
 0x57a   : > { %5545 = vmatpush1.bf16.msra.mxu1 %v10142_v44 }
 0x57b   : > { %5547 = vmatprep.subr.bf16.mxu1 %v10143_v31 }
 0x57e   : > { %5549 = vmatpush1.bf16.msra.mxu1 %v10144_v19 }
 0x57f   : > { %5551 = vmatprep.subr.bf16.mxu1 %v10145_v6 }
 0x582   : > { %5553 = vmatpush1.bf16.msra.mxu1 %v10146_v58 }
 0x583   : > { %5619 = vmatprep.subr.bf16.mxu1 %v10147_v49  ;;  %v10264_v49 = vld [vmem:[#allocation229_spill] sm:$0xff] }
 0x585   : > { %2437 = vmatmul.mubr.f32.vlgmr.msra.gmra.mrb[14].mxu1 %v8445_v41 }
 0x586   : > { %5621 = vmatpush1.bf16.msra.mxu1 %v10148_v33 }
 0x587   : > { %5623 = vmatprep.subr.bf16.mxu1 %v10149_v23 }
 0x58a   : > { %5625 = vmatpush1.bf16.msra.mxu1 %v10150_v15 }
 0x58b   : > { %5627 = vmatprep.subr.bf16.mxu1 %v10151_v5  ;;  %v10162_v5 = vld [vmem:[#allocation111_spill] sm:$0xff] }
 0x58e   : > { %5629 = vmatpush1.bf16.msra.mxu1 %v10152_v63  ;;  %v10163_v63 = vld [vmem:[#allocation113_spill] sm:$0xff] }
 0x58f   : > { %5631 = vmatprep.subr.bf16.mxu1 %v10153_v56  ;;  %v10164_v56 = vld [vmem:[#allocation115_spill] sm:$0xff] }
 0x592   : > { %5633 = vmatpush1.bf16.msra.mxu1 %v10154_v51  ;;  %v10165_v51 = vld [vmem:[#allocation117_spill] sm:$0xff] }
 0x593   : > { %5635 = vmatprep.subr.bf16.mxu1 %v10155_v43  ;;  %v10166_v43 = vld [vmem:[#allocation119_spill] sm:$0xff] }
 0x596   : > { %5637 = vmatpush1.bf16.msra.mxu1 %v10156_v38  ;;  %v10167_v38 = vld [vmem:[#allocation121_spill] sm:$0xff] }
 0x597   : > { %5639 = vmatprep.subr.bf16.mxu1 %v10157_v30  ;;  %v10168_v30 = vld [vmem:[#allocation123_spill] sm:$0xff] }
 0x59a   : > { %5641 = vmatpush1.bf16.msra.mxu1 %v10158_v25  ;;  %v10169_v25 = vld [vmem:[#allocation125_spill] sm:$0xff] }
 0x59b   : > { %5643 = vmatprep.subr.bf16.mxu1 %v10159_v17  ;;  %v10170_v17 = vld [vmem:[#allocation127_spill] sm:$0xff] }
 0x59e   : > { %5645 = vmatpush1.bf16.msra.mxu1 %v10160_v12  ;;  %v10171_v12 = vld [vmem:[#allocation129_spill] sm:$0xff] }
 0x59f   : > { %5647 = vmatprep.subr.bf16.mxu1 %v10161_v7  ;;  %v10172_v7 = vld [vmem:[#allocation131_spill] sm:$0xff] }
 0x5a2   : > { %5649 = vmatpush1.bf16.msra.mxu1 %v10162_v5  ;;  %v10173_v5 = vld [vmem:[#allocation133_spill] sm:$0xff] }
 0x5a3   : > { %5651 = vmatprep.subr.bf16.mxu1 %v10163_v63  ;;  %v10174_v63 = vld [vmem:[#allocation135_spill] sm:$0xff] }
 0x5a6   : > { %5653 = vmatpush1.bf16.msra.mxu1 %v10164_v56  ;;  %v10175_v56 = vld [vmem:[#allocation137_spill] sm:$0xff] }
 0x5a7   : > { %5655 = vmatprep.subr.bf16.mxu1 %v10165_v51  ;;  %v10176_v51 = vld [vmem:[#allocation139_spill] sm:$0xff] }
 0x5aa   : > { %5657 = vmatpush1.bf16.msra.mxu1 %v10166_v43  ;;  %v10177_v43 = vld [vmem:[#allocation141_spill] sm:$0xff] }
 0x5ab   : > { %5659 = vmatprep.subr.bf16.mxu1 %v10167_v38  ;;  %v10178_v38 = vld [vmem:[#allocation143_spill] sm:$0xff] }
 0x5ae   : > { %5661 = vmatpush1.bf16.msra.mxu1 %v10168_v30  ;;  %v10179_v30 = vld [vmem:[#allocation145_spill] sm:$0xff] }
 0x5af   : > { %5663 = vmatprep.subr.bf16.mxu1 %v10169_v25  ;;  %v2284_v25 = vpop.permute.xlu1 %2283 }
 0x5b2   : > { %5665 = vmatpush1.bf16.msra.mxu1 %v10170_v17 }
 0x5b3   : > { %5667 = vmatprep.subr.bf16.mxu1 %v10171_v12 }
 0x5b6   : > { %5669 = vmatpush1.bf16.msra.mxu1 %v10172_v7 }
 0x5b7   : > { %5671 = vmatprep.subr.bf16.mxu1 %v10173_v5  ;;  %v10180_v5 = vmax.f32 %v8376_v52, 0.0  ;;  %v10192_v52 = vld [vmem:[#allocation157_spill] sm:$0xff] }
 0x5ba   : > { %5673 = vmatpush1.bf16.msra.mxu1 %v10174_v63 }
 0x5bb   : > { %5675 = vmatprep.subr.bf16.mxu1 %v10175_v56  ;;  %v10181_v56 = vmax.f32 %v8374_v21, 0.0  ;;  %v10191_v21 = vld [vmem:[#allocation156_spill] sm:$0xff] }
 0x5be   : > { %5677 = vmatpush1.bf16.msra.mxu1 %v10176_v51 }
 0x5bf   : > { %5679 = vmatprep.subr.bf16.mxu1 %v10177_v43  ;;  %v10261_v43 = vld [vmem:[#allocation226_spill] sm:$0xff] }
 0x5c2   : > { %5681 = vmatpush1.bf16.msra.mxu1 %v10178_v38  ;;  %v10244_v38 = vld [vmem:[#allocation209_spill] sm:$0xff] }
 0x5c3   : > { %5747 = vmatprep.subr.bf16.mxu1 %v10179_v30  ;;  %v10243_v30 = vld [vmem:[#allocation208_spill] sm:$0xff] }
 0x618   : > { %v2363_v17 = vpop.f32.mrb[12].mxu1 }
 0x619   : > { %v2364_v15 = vadd.f32 %v2363_v17, %v2284_v25  ;;  %v2365_v12 = vpop.f32.mrb[13].mxu1  ;;  %v10184_v17 = vld [vmem:[#allocation149_spill] sm:$0xff] }
 0x61a   : > { %v2366_v23 = vadd.f32 %v2365_v12, %v2284_v25  ;;  %v10182_v12 = vld [vmem:[#allocation147_spill] sm:$0xff]  ;;  %v10185_v25 = vld [vmem:[#allocation150_spill] sm:$0xff] }
 0x61b   : > { %v2368_v7 = vmax.f32 %v2364_v15, 0.0  ;;  %v10188_v15 = vld [vmem:[#allocation153_spill] sm:$0xff] }
 0x61c   : > { %v2369_v33 = vmax.f32 %v2366_v23, 0.0  ;;  %v10189_v23 = vld [vmem:[#allocation154_spill] sm:$0xff] }
 0x61d   : > { %v8486_v51 = vmul.f32 %v2368_v7, %v10181_v56  ;;  %v10183_v7 = vld [vmem:[#allocation148_spill] sm:$0xff]  ;;  %v10186_v56 = vld [vmem:[#allocation151_spill] sm:$0xff] }
 0x61e   : > { %v8482_v63 = vmul.f32 %v2369_v33, %v10180_v5  ;;  %v10187_v5 = vld [vmem:[#allocation152_spill] sm:$0xff]  ;;  %v10190_v33 = vld [vmem:[#allocation155_spill] sm:$0xff] }
 0x620   : > { %2442 = vmatprep.mubr.f32.mxu1 %v8482_v63  ;;  %2519 = vmatprep.mubr.f32.mxu0 %v8482_v63 }
 0x621   : > { %2443 = vmatmul.mubr.f32.gmra.mrb[16].mxu1 %v8486_v51  ;;  %2520 = vmatmul.mubr.f32.gmra.mrb[12].mxu0 %v8486_v51 }
 0x622   : > { %2590 = vmatprep.mubr.f32.mxu1 %v8410_v36  ;;  %2667 = vmatprep.mubr.f32.mxu0 %v8410_v36 }
 0x625   : > { %2591 = vmatmul.mubr.f32.vlgmr.msra.gmra.mrb[18].mxu1 %v8445_v41  ;;  %2668 = vmatmul.mubr.f32.vlgmr.msra.gmra.mrb[14].mxu0 %v8445_v41 }
 0x626   : > { %5749 = vmatpush1.bf16.msra.mxu1 %v10182_v12  ;;  %5813 = vmatpush1.bf16.msra.mxu0 %v10183_v7  ;;  %v10199_v7 = vld [vmem:[#allocation164_spill] sm:$0xff]  ;;  %v10200_v12 = vld [vmem:[#allocation165_spill] sm:$0xff] }
 0x627   : > { %2596 = vmatprep.mubr.f32.mxu1 %v8482_v63  ;;  %2673 = vmatprep.mubr.f32.mxu0 %v8482_v63 }
 0x628   : > { %5751 = vmatprep.subr.bf16.mxu1 %v10184_v17  ;;  %5815 = vmatprep.subr.bf16.mxu0 %v10185_v25  ;;  %v10193_v25 = vld [vmem:[#allocation158_spill] sm:$0xff]  ;;  %v10194_v17 = vld [vmem:[#allocation159_spill] sm:$0xff] }
 0x629   : > { %2597 = vmatmul.mubr.f32.gmra.mrb[20].mxu1 %v8486_v51  ;;  %2674 = vmatmul.mubr.f32.gmra.mrb[16].mxu0 %v8486_v51 }
 0x62a   : > { %5753 = vmatpush1.bf16.msra.mxu1 %v10186_v56  ;;  %5817 = vmatpush1.bf16.msra.mxu0 %v10187_v5  ;;  %v10195_v56 = vld [vmem:[#allocation160_spill] sm:$0xff]  ;;  %v10196_v5 = vld [vmem:[#allocation161_spill] sm:$0xff] }
 0x62b   : > { %5755 = vmatprep.subr.bf16.mxu1 %v10188_v15  ;;  %5819 = vmatprep.subr.bf16.mxu0 %v10189_v23  ;;  %v10197_v15 = vld [vmem:[#allocation162_spill] sm:$0xff]  ;;  %v10198_v23 = vld [vmem:[#allocation163_spill] sm:$0xff] }
 0x62c   : > { %2744 = vmatprep.mubr.f32.mxu1 %v8410_v36  ;;  %2821 = vmatprep.mubr.f32.mxu0 %v8410_v36 }
 0x62e   : > { %5757 = vmatpush1.bf16.msra.mxu1 %v10190_v33  ;;  %5821 = vmatpush1.bf16.msra.mxu0 %v10191_v21  ;;  %v10201_v33 = vld [vmem:[#allocation166_spill] sm:$0xff]  ;;  %v10202_v21 = vld [vmem:[#allocation167_spill] sm:$0xff] }
 0x62f   : > { %5759 = vmatprep.subr.bf16.mxu1 %v10192_v52  ;;  %5823 = vmatprep.subr.bf16.mxu0 %v10193_v25  ;;  %v10203_v52 = vld [vmem:[#allocation168_spill] sm:$0xff]  ;;  %v10204_v25 = vld [vmem:[#allocation169_spill] sm:$0xff] }
 0x632   : > { %5761 = vmatpush1.bf16.msra.mxu1 %v10194_v17  ;;  %5825 = vmatpush1.bf16.msra.mxu0 %v10195_v56  ;;  %v10205_v17 = vld [vmem:[#allocation170_spill] sm:$0xff]  ;;  %v10206_v56 = vld [vmem:[#allocation171_spill] sm:$0xff] }
 0x633   : > { %5763 = vmatprep.subr.bf16.mxu1 %v10196_v5  ;;  %5827 = vmatprep.subr.bf16.mxu0 %v10197_v15  ;;  %v10207_v5 = vld [vmem:[#allocation172_spill] sm:$0xff]  ;;  %v10208_v15 = vld [vmem:[#allocation173_spill] sm:$0xff] }
 0x636   : > { %5765 = vmatpush1.bf16.msra.mxu1 %v10198_v23  ;;  %5829 = vmatpush1.bf16.msra.mxu0 %v10199_v7  ;;  %v10209_v23 = vld [vmem:[#allocation174_spill] sm:$0xff]  ;;  %v10210_v7 = vld [vmem:[#allocation175_spill] sm:$0xff] }
 0x637   : > { %5767 = vmatprep.subr.bf16.mxu1 %v10200_v12  ;;  %5831 = vmatprep.subr.bf16.mxu0 %v10201_v33  ;;  %v10211_v12 = vld [vmem:[#allocation176_spill] sm:$0xff]  ;;  %v10212_v33 = vld [vmem:[#allocation177_spill] sm:$0xff] }
 0x63a   : > { %5769 = vmatpush1.bf16.msra.mxu1 %v10202_v21  ;;  %5833 = vmatpush1.bf16.msra.mxu0 %v10203_v52  ;;  %v10213_v21 = vld [vmem:[#allocation178_spill] sm:$0xff]  ;;  %v10214_v52 = vld [vmem:[#allocation179_spill] sm:$0xff] }
 0x63b   : > { %5771 = vmatprep.subr.bf16.mxu1 %v10204_v25  ;;  %5835 = vmatprep.subr.bf16.mxu0 %v10205_v17  ;;  %v10215_v25 = vld [vmem:[#allocation180_spill] sm:$0xff]  ;;  %v10216_v17 = vld [vmem:[#allocation181_spill] sm:$0xff] }
 0x63e   : > { %5773 = vmatpush1.bf16.msra.mxu1 %v10206_v56  ;;  %5837 = vmatpush1.bf16.msra.mxu0 %v10207_v5  ;;  %v10217_v56 = vld [vmem:[#allocation182_spill] sm:$0xff]  ;;  %v10218_v5 = vld [vmem:[#allocation183_spill] sm:$0xff] }
 0x63f   : > { %5775 = vmatprep.subr.bf16.mxu1 %v10208_v15  ;;  %5839 = vmatprep.subr.bf16.mxu0 %v10209_v23  ;;  %v10219_v15 = vld [vmem:[#allocation184_spill] sm:$0xff]  ;;  %v10220_v23 = vld [vmem:[#allocation185_spill] sm:$0xff] }
 0x642   : > { %5777 = vmatpush1.bf16.msra.mxu1 %v10210_v7  ;;  %5841 = vmatpush1.bf16.msra.mxu0 %v10211_v12  ;;  %v10221_v7 = vld [vmem:[#allocation186_spill] sm:$0xff]  ;;  %v10222_v12 = vld [vmem:[#allocation187_spill] sm:$0xff] }
 0x643   : > { %5779 = vmatprep.subr.bf16.mxu1 %v10212_v33  ;;  %5843 = vmatprep.subr.bf16.mxu0 %v10213_v21  ;;  %v10223_v33 = vld [vmem:[#allocation188_spill] sm:$0xff]  ;;  %v10224_v21 = vld [vmem:[#allocation189_spill] sm:$0xff] }
 0x646   : > { %5781 = vmatpush1.bf16.msra.mxu1 %v10214_v52  ;;  %5845 = vmatpush1.bf16.msra.mxu0 %v10215_v25  ;;  %v10225_v52 = vld [vmem:[#allocation190_spill] sm:$0xff]  ;;  %v10226_v25 = vld [vmem:[#allocation191_spill] sm:$0xff] }
 0x647   : > { %5783 = vmatprep.subr.bf16.mxu1 %v10216_v17  ;;  %5847 = vmatprep.subr.bf16.mxu0 %v10217_v56  ;;  %v10227_v17 = vld [vmem:[#allocation192_spill] sm:$0xff]  ;;  %v10228_v56 = vld [vmem:[#allocation193_spill] sm:$0xff] }
 0x64a   : > { %5785 = vmatpush1.bf16.msra.mxu1 %v10218_v5  ;;  %5849 = vmatpush1.bf16.msra.mxu0 %v10219_v15  ;;  %v10229_v5 = vld [vmem:[#allocation194_spill] sm:$0xff]  ;;  %v10230_v15 = vld [vmem:[#allocation195_spill] sm:$0xff] }
 0x64b   : > { %5787 = vmatprep.subr.bf16.mxu1 %v10220_v23  ;;  %5851 = vmatprep.subr.bf16.mxu0 %v10221_v7  ;;  %v10231_v23 = vld [vmem:[#allocation196_spill] sm:$0xff]  ;;  %v10232_v7 = vld [vmem:[#allocation197_spill] sm:$0xff] }
 0x64e   : > { %5789 = vmatpush1.bf16.msra.mxu1 %v10222_v12  ;;  %5853 = vmatpush1.bf16.msra.mxu0 %v10223_v33  ;;  %v10233_v12 = vld [vmem:[#allocation198_spill] sm:$0xff] }
 0x64f   : > { %5791 = vmatprep.subr.bf16.mxu1 %v10224_v21  ;;  %5855 = vmatprep.subr.bf16.mxu0 %v10225_v52  ;;  %v10234_v52 = vld [vmem:[#allocation199_spill] sm:$0xff] }
 0x652   : > { %5793 = vmatpush1.bf16.msra.mxu1 %v10226_v25  ;;  %5857 = vmatpush1.bf16.msra.mxu0 %v10227_v17  ;;  %v10235_v25 = vld [vmem:[#allocation200_spill] sm:$0xff]  ;;  %v10236_v17 = vld [vmem:[#allocation201_spill] sm:$0xff] }
 0x653   : > { %5795 = vmatprep.subr.bf16.mxu1 %v10228_v56  ;;  %5859 = vmatprep.subr.bf16.mxu0 %v10229_v5  ;;  %v10237_v56 = vld [vmem:[#allocation202_spill] sm:$0xff]  ;;  %v10238_v5 = vld [vmem:[#allocation203_spill] sm:$0xff] }
 0x656   : > { %5797 = vmatpush1.bf16.msra.mxu1 %v10230_v15  ;;  %5861 = vmatpush1.bf16.msra.mxu0 %v10231_v23  ;;  %v10239_v15 = vld [vmem:[#allocation204_spill] sm:$0xff]  ;;  %v10240_v23 = vld [vmem:[#allocation205_spill] sm:$0xff] }
 0x657   : > { %5799 = vmatprep.subr.bf16.mxu1 %v10232_v7  ;;  %5863 = vmatprep.subr.bf16.mxu0 %v10233_v12  ;;  %v10241_v7 = vld [vmem:[#allocation206_spill] sm:$0xff]  ;;  %v10242_v12 = vld [vmem:[#allocation207_spill] sm:$0xff] }
 0x658   : > { %v8554_v33 = vpop.f32.mrb[14].mxu1 }
 0x659   : > { %v8556_v21 = vpop.f32.mrb[15].mxu1 }
 0x65a   : > { %5801 = vmatpush1.bf16.msra.mxu1 %v10234_v52  ;;  %5865 = vmatpush1.bf16.msra.mxu0 %v10235_v25  ;;  %v10245_v52 = vld [vmem:[#allocation210_spill] sm:$0xff]  ;;  %v10258_v25 = vld [vmem:[#allocation223_spill] sm:$0xff] }
 0x65b   : > { %5803 = vmatprep.subr.bf16.mxu1 %v10236_v17  ;;  %5867 = vmatprep.subr.bf16.mxu0 %v10237_v56  ;;  %v10256_v56 = vld [vmem:[#allocation221_spill] sm:$0xff]  ;;  %v10257_v17 = vld [vmem:[#allocation222_spill] sm:$0xff] }
 0x65e   : > { %5805 = vmatpush1.bf16.msra.mxu1 %v10238_v5  ;;  %5869 = vmatpush1.bf16.msra.mxu0 %v10239_v15  ;;  %v10246_v15 = vld [vmem:[#allocation211_spill] sm:$0xff]  ;;  %v10255_v5 = vld [vmem:[#allocation220_spill] sm:$0xff] }
 0x65f   : > { %5807 = vmatprep.subr.bf16.mxu1 %v10240_v23  ;;  %5871 = vmatprep.subr.bf16.mxu0 %v10241_v7  ;;  %v10247_v23 = vld [vmem:[#allocation212_spill] sm:$0xff]  ;;  %v10248_v7 = vld [vmem:[#allocation213_spill] sm:$0xff] }
 0x662   : > { %5809 = vmatpush1.bf16.msra.mxu1 %v10242_v12  ;;  %5873 = vmatpush1.bf16.msra.mxu0 %v10243_v30  ;;  %v10249_v12 = vld [vmem:[#allocation214_spill] sm:$0xff]  ;;  %v8584_v30 = vpop.f32.mrb[10].mxu0 }
 0x663   : > { %5875 = vmatprep.subr.bf16.mxu1 %v10244_v38  ;;  %5939 = vmatprep.subr.bf16.mxu0 %v10245_v52  ;;  %v10250_v52 = vld [vmem:[#allocation215_spill] sm:$0xff]  ;;  %v10251_v38 = vld [vmem:[#allocation216_spill] sm:$0xff] }
 0x665   : > { %2745 = vmatmul.mubr.f32.vlgmr.msra.gmra.mrb[22].mxu1 %v8445_v41  ;;  %2822 = vmatmul.mubr.f32.vlgmr.msra.gmra.mrb[18].mxu0 %v8445_v41 }
 0x666   : > { %2750 = vmatprep.mubr.f32.mxu1 %v8482_v63  ;;  %2827 = vmatprep.mubr.f32.mxu0 %v8482_v63 }
 0x667   : > { %5877 = vmatpush1.bf16.msra.mxu1 %v10246_v15  ;;  %5941 = vmatpush1.bf16.msra.mxu0 %v10247_v23  ;;  %v10252_v15 = vld [vmem:[#allocation217_spill] sm:$0xff]  ;;  %v10253_v23 = vld [vmem:[#allocation218_spill] sm:$0xff] }
 0x668   : > { %5879 = vmatprep.subr.bf16.mxu1 %v10248_v7  ;;  %5943 = vmatprep.subr.bf16.mxu0 %v10249_v12  ;;  %v8588_v7 = vpop.f32.mrb[11].mxu0  ;;  %v10254_v12 = vld [vmem:[#allocation219_spill] sm:$0xff] }
 0x669   : > { %2751 = vmatmul.mubr.f32.gmra.mrb[24].mxu1 %v8486_v51  ;;  %2828 = vmatmul.mubr.f32.gmra.mrb[20].mxu0 %v8486_v51 }
 0x66a   : > { %2898 = vmatprep.mubr.f32.mxu1 %v8410_v36  ;;  %2975 = vmatprep.mubr.f32.mxu0 %v8410_v36 }
 0x66b   : > { %5881 = vmatpush1.bf16.msra.mxu1 %v10250_v52  ;;  %5945 = vmatpush1.bf16.msra.mxu0 %v10251_v38  ;;  %v10259_v52 = vld [vmem:[#allocation224_spill] sm:$0xff]  ;;  %v10260_v38 = vld [vmem:[#allocation225_spill] sm:$0xff] }
 0x66c   : > { %5883 = vmatprep.subr.bf16.mxu1 %v10252_v15  ;;  %5947 = vmatprep.subr.bf16.mxu0 %v10253_v23  ;;  %v10262_v15 = vld [vmem:[#allocation227_spill] sm:$0xff]  ;;  %v10263_v23 = vld [vmem:[#allocation228_spill] sm:$0xff] }
 0x66f   : > { %5885 = vmatpush1.bf16.msra.mxu1 %v10254_v12  ;;  %5949 = vmatpush1.bf16.msra.mxu0 %v10255_v5  ;;  %v10265_v12 = vld [vmem:[#allocation230_spill] sm:$0xff]  ;;  %v10266_v5 = vld [vmem:[#allocation231_spill] sm:$0xff] }
 0x670   : > { %5887 = vmatprep.subr.bf16.mxu1 %v10256_v56  ;;  %5951 = vmatprep.subr.bf16.mxu0 %v10257_v17  ;;  %v10267_v56 = vld [vmem:[#allocation232_spill] sm:$0xff]  ;;  %v10268_v17 = vld [vmem:[#allocation233_spill] sm:$0xff] }
 0x673   : > { %5889 = vmatpush1.bf16.msra.mxu1 %v10258_v25  ;;  %5953 = vmatpush1.bf16.msra.mxu0 %v10259_v52  ;;  %v10269_v25 = vld [vmem:[#allocation234_spill] sm:$0xff]  ;;  %v10270_v52 = vld [vmem:[#allocation235_spill] sm:$0xff] }
 0x674   : > { %5891 = vmatprep.subr.bf16.mxu1 %v10260_v38  ;;  %5955 = vmatprep.subr.bf16.mxu0 %v10261_v43  ;;  %v10271_v38 = vld [vmem:[#allocation236_spill] sm:$0xff]  ;;  %v10272_v43 = vld [vmem:[#allocation237_spill] sm:$0xff] }
 0x677   : > { %5893 = vmatpush1.bf16.msra.mxu1 %v10262_v15  ;;  %5957 = vmatpush1.bf16.msra.mxu0 %v10263_v23  ;;  %v10273_v15 = vld [vmem:[#allocation238_spill] sm:$0xff]  ;;  %v10274_v23 = vld [vmem:[#allocation239_spill] sm:$0xff] }
 0x678   : > { %5895 = vmatprep.subr.bf16.mxu1 %v10264_v49  ;;  %5959 = vmatprep.subr.bf16.mxu0 %v10265_v12  ;;  %v10275_v49 = vld [vmem:[#allocation240_spill] sm:$0xff]  ;;  %v10276_v12 = vld [vmem:[#allocation241_spill] sm:$0xff] }
 0x67b   : > { %5897 = vmatpush1.bf16.msra.mxu1 %v10266_v5  ;;  %5961 = vmatpush1.bf16.msra.mxu0 %v10267_v56  ;;  %v10277_v5 = vld [vmem:[#allocation242_spill] sm:$0xff]  ;;  %v10278_v56 = vld [vmem:[#allocation243_spill] sm:$0xff] }
 0x67c   : > { %5899 = vmatprep.subr.bf16.mxu1 %v10268_v17  ;;  %5963 = vmatprep.subr.bf16.mxu0 %v10269_v25  ;;  %v10279_v17 = vld [vmem:[#allocation244_spill] sm:$0xff]  ;;  %v10280_v25 = vld [vmem:[#allocation245_spill] sm:$0xff] }
 0x67f   : > { %5901 = vmatpush1.bf16.msra.mxu1 %v10270_v52  ;;  %5965 = vmatpush1.bf16.msra.mxu0 %v10271_v38  ;;  %v10281_v52 = vld [vmem:[#allocation246_spill] sm:$0xff]  ;;  %v10282_v38 = vld [vmem:[#allocation247_spill] sm:$0xff] }
 0x680   : > { %5903 = vmatprep.subr.bf16.mxu1 %v10272_v43  ;;  %5967 = vmatprep.subr.bf16.mxu0 %v10273_v15  ;;  %v10283_v43 = vld [vmem:[#allocation248_spill] sm:$0xff]  ;;  %v10284_v15 = vld [vmem:[#allocation249_spill] sm:$0xff] }
 0x683   : > { %5905 = vmatpush1.bf16.msra.mxu1 %v10274_v23  ;;  %5969 = vmatpush1.bf16.msra.mxu0 %v10275_v49  ;;  %v10285_v23 = vld [vmem:[#allocation250_spill] sm:$0xff]  ;;  %v10286_v49 = vld [vmem:[#allocation251_spill] sm:$0xff] }
 0x684   : > { %5907 = vmatprep.subr.bf16.mxu1 %v10276_v12  ;;  %5971 = vmatprep.subr.bf16.mxu0 %v10277_v5  ;;  %v10287_v12 = vld [vmem:[#allocation252_spill] sm:$0xff]  ;;  %v10288_v5 = vld [vmem:[#allocation253_spill] sm:$0xff] }
 0x687   : > { %5909 = vmatpush1.bf16.msra.mxu1 %v10278_v56  ;;  %5973 = vmatpush1.bf16.msra.mxu0 %v10279_v17  ;;  %v10289_v56 = vld [vmem:[#allocation254_spill] sm:$0xff]  ;;  %v10290_v17 = vld [vmem:[#allocation255_spill] sm:$0xff] }
 0x688   : > { %5911 = vmatprep.subr.bf16.mxu1 %v10280_v25  ;;  %5975 = vmatprep.subr.bf16.mxu0 %v10281_v52  ;;  %v10291_v25 = vld [vmem:[#allocation256_spill] sm:$0xff]  ;;  %v10292_v52 = vld [vmem:[#allocation257_spill] sm:$0xff] }
 0x68b   : > { %5913 = vmatpush1.bf16.msra.mxu1 %v10282_v38  ;;  %5977 = vmatpush1.bf16.msra.mxu0 %v10283_v43  ;;  %v10293_v38 = vld [vmem:[#allocation258_spill] sm:$0xff]  ;;  %v10294_v43 = vld [vmem:[#allocation259_spill] sm:$0xff] }
 0x68c   : > { %5915 = vmatprep.subr.bf16.mxu1 %v10284_v15  ;;  %5979 = vmatprep.subr.bf16.mxu0 %v10285_v23  ;;  %v10295_v15 = vld [vmem:[#allocation260_spill] sm:$0xff]  ;;  %v10296_v23 = vld [vmem:[#allocation261_spill] sm:$0xff] }
 0x68f   : > { %5917 = vmatpush1.bf16.msra.mxu1 %v10286_v49  ;;  %5981 = vmatpush1.bf16.msra.mxu0 %v10287_v12  ;;  %v10297_v49 = vld [vmem:[#allocation262_spill] sm:$0xff]  ;;  %v10298_v12 = vld [vmem:[#allocation263_spill] sm:$0xff] }
 0x690   : > { %5919 = vmatprep.subr.bf16.mxu1 %v10288_v5  ;;  %5983 = vmatprep.subr.bf16.mxu0 %v10289_v56 }
 0x693   : > { %5921 = vmatpush1.bf16.msra.mxu1 %v10290_v17  ;;  %5985 = vmatpush1.bf16.msra.mxu0 %v10291_v25  ;;  %v10299_v17 = vld [vmem:[#allocation264_spill] sm:$0xff]  ;;  %v10300_v25 = vld [vmem:[#allocation265_spill] sm:$0xff] }
 0x694   : > { %5923 = vmatprep.subr.bf16.mxu1 %v10292_v52  ;;  %5987 = vmatprep.subr.bf16.mxu0 %v10293_v38  ;;  %v10301_v52 = vld [vmem:[#allocation266_spill] sm:$0xff]  ;;  %v10302_v38 = vld [vmem:[#allocation267_spill] sm:$0xff] }
 0x697   : > { %5925 = vmatpush1.bf16.msra.mxu1 %v10294_v43  ;;  %5989 = vmatpush1.bf16.msra.mxu0 %v10295_v15  ;;  %v10303_v43 = vld [vmem:[#allocation268_spill] sm:$0xff]  ;;  %v10304_v15 = vld [vmem:[#allocation269_spill] sm:$0xff] }
 0x698   : > { %5927 = vmatprep.subr.bf16.mxu1 %v10296_v23  ;;  %5991 = vmatprep.subr.bf16.mxu0 %v10297_v49  ;;  %v10305_v23 = vld [vmem:[#allocation270_spill] sm:$0xff]  ;;  %v10306_v49 = vld [vmem:[#allocation271_spill] sm:$0xff] }
 0x69b   : > { %5929 = vmatpush1.bf16.msra.mxu1 %v10298_v12  ;;  %5993 = vmatpush1.bf16.msra.mxu0 %v8170_v16 }
 0x69c   : > { %5931 = vmatprep.subr.bf16.mxu1 %v8172_v8  ;;  %5995 = vmatprep.subr.bf16.mxu0 %v10299_v17  ;;  %v10314_v17 = vld [vmem:[#allocation279_spill] sm:$0xff] }
 0x69f   : > { %5933 = vmatpush1.bf16.msra.mxu1 %v10300_v25  ;;  %5997 = vmatpush1.bf16.msra.mxu0 %v10301_v52  ;;  %v10307_v25 = vld [vmem:[#allocation272_spill] sm:$0xff]  ;;  %v10308_v52 = vld [vmem:[#allocation273_spill] sm:$0xff] }
 0x6a0   : > { %5935 = vmatprep.subr.bf16.mxu1 %v10302_v38  ;;  %5999 = vmatprep.subr.bf16.mxu0 %v10303_v43  ;;  %v10312_v43 = vld [vmem:[#allocation277_spill] sm:$0xff]  ;;  %v10313_v38 = vld [vmem:[#allocation278_spill] sm:$0xff] }
 0x6a3   : > { %5937 = vmatpush1.bf16.msra.mxu1 %v10304_v15  ;;  %6001 = vmatpush1.bf16.msra.mxu0 %v10305_v23  ;;  %v10309_v23 = vld [vmem:[#allocation274_spill] sm:$0xff]  ;;  %v10311_v15 = vld [vmem:[#allocation276_spill] sm:$0xff] }
 0x6a4   : > { %6003 = vmatprep.subr.bf16.mxu1 %v10306_v49  ;;  %v10310_v49 = vld [vmem:[#allocation275_spill] sm:$0xff] }
 0x6a6   : > { %2899 = vmatmul.mubr.f32.vlgmr.msra.gmra.mrb[26].mxu1 %v8445_v41  ;;  %2976 = vmatmul.mubr.f32.vlgmr.msra.gmra.mrb[22].mxu0 %v8445_v41 }
 0x6a7   : > { %2904 = vmatprep.mubr.f32.mxu1 %v8482_v63  ;;  %2981 = vmatprep.mubr.f32.mxu0 %v8482_v63 }
 0x6a8   : > { %6005 = vmatpush1.bf16.msra.mxu1 %v10307_v25  ;;  %v10315_v25 = vld [vmem:[#allocation280_spill] sm:$0xff] }
 0x6a9   : > { %6007 = vmatprep.subr.bf16.mxu1 %v10308_v52  ;;  %v10316_v52 = vld [vmem:[#allocation281_spill] sm:$0xff] }
 0x6aa   : > { %2905 = vmatmul.mubr.f32.gmra.mrb[28].mxu1 %v8486_v51  ;;  %2982 = vmatmul.mubr.f32.gmra.mrb[24].mxu0 %v8486_v51 }
 0x6ab   : > { %3052 = vmatprep.mubr.f32.mxu1 %v8410_v36 }
 0x6ac   : > { %6009 = vmatpush1.bf16.msra.mxu1 %v10309_v23 }
 0x6ad   : > { %6011 = vmatprep.subr.bf16.mxu1 %v10310_v49  ;;  %v10317_v49 = vld [vmem:[#allocation286_spill] sm:$0xff] }
 0x6b0   : > { %6013 = vmatpush1.bf16.msra.mxu1 %v10311_v15  ;;  %v10318_v15 = vld [vmem:[#allocation287_spill] sm:$0xff] }
 0x6b1   : > { %6015 = vmatprep.subr.bf16.mxu1 %v10312_v43  ;;  %v10319_v43 = vld [vmem:[#allocation288_spill] sm:$0xff] }
 0x6b4   : > { %6017 = vmatpush1.bf16.msra.mxu1 %v10313_v38  ;;  %v10320_v38 = vld [vmem:[#allocation289_spill] sm:$0xff] }
 0x6b5   : > { %6019 = vmatprep.subr.bf16.mxu1 %v10314_v17  ;;  %v10321_v17 = vld [vmem:[#allocation290_spill] sm:$0xff] }
 0x6b8   : > { %6021 = vmatpush1.bf16.msra.mxu1 %v10315_v25  ;;  %v10322_v25 = vld [vmem:[#allocation291_spill] sm:$0xff] }
 0x6b9   : > { %6023 = vmatprep.subr.bf16.mxu1 %v10316_v52  ;;  %v10323_v52 = vld [vmem:[#allocation292_spill] sm:$0xff] }
 0x6bc   : > { %6025 = vmatpush1.bf16.msra.mxu1 %v8234_v22  ;;  %v10324_v22 = vld [vmem:[#allocation293_spill] sm:$0xff] }
 0x6bd   : > { %6027 = vmatprep.subr.bf16.mxu1 %v8237_v62  ;;  %v10325_v62 = vld [vmem:[#allocation294_spill] sm:$0xff] }
 0x6c0   : > { %6029 = vmatpush1.bf16.msra.mxu1 %v8240_v50  ;;  %v10326_v50 = vld [vmem:[#allocation295_spill] sm:$0xff] }
 0x6c1   : > { %6031 = vmatprep.subr.bf16.mxu1 %v8243_v59  ;;  %v10327_v59 = vld [vmem:[#allocation296_spill] sm:$0xff] }
 0x6c4   : > { %6033 = vmatpush1.bf16.msra.mxu1 %v10317_v49 }
 0x6c5   : > { %6035 = vmatprep.subr.bf16.mxu1 %v10318_v15 }
 0x6c8   : > { %6037 = vmatpush1.bf16.msra.mxu1 %v10319_v43 }
 0x6c9   : > { %6039 = vmatprep.subr.bf16.mxu1 %v10320_v38 }
 0x6cc   : > { %6041 = vmatpush1.bf16.msra.mxu1 %v10321_v17 }
 0x6cd   : > { %6043 = vmatprep.subr.bf16.mxu1 %v10322_v25 }
 0x6d0   : > { %6045 = vmatpush1.bf16.msra.mxu1 %v10323_v52 }
 0x6d1   : > { %6047 = vmatprep.subr.bf16.mxu1 %v10324_v22 }
 0x6d4   : > { %6049 = vmatpush1.bf16.msra.mxu1 %v10325_v62 }
 0x6d5   : > { %6051 = vmatprep.subr.bf16.mxu1 %v10326_v50 }
 0x6d8   : > { %6053 = vmatpush1.bf16.msra.mxu1 %v10327_v59 }
 0x6d9   : > { %6055 = vmatprep.subr.bf16.mxu1 %v8279_v26 }
 0x6dc   : > { %6057 = vmatpush1.bf16.msra.mxu1 %v8282_v18 }
 0x6dd   : > { %6059 = vmatprep.subr.bf16.mxu1 %v8285_v32 }
 0x6e0   : > { %6061 = vmatpush1.bf16.msra.mxu1 %v8288_v39 }
 0x6e1   : > { %6063 = vmatprep.subr.bf16.mxu1 %v8291_v42 }
 0x6e4   : > { %6065 = vmatpush1.bf16.msra.mxu1 %v8294_v34 }
 0x6e7   : > { %3053 = vmatmul.mubr.f32.vlgmr.msra.gmra.mrb[30].mxu1 %v8445_v41 }
 0x6e8   : > { %3058 = vmatprep.mubr.f32.mxu1 %v8482_v63 }
 0x6eb   : > { %3059 = vmatmul.mubr.f32.gmra.mrb[32].mxu1 %v8486_v51 }
 0x6ec   : > { %3228 = vmatprep.mubr.f32.mxu1 %v10110_v13 }
 0x6f4   : > { %v2444_v59 = vpop.f32.mrb[16].mxu1  ;;  %v2521_v26 = vpop.f32.mrb[12].mxu0 }
 0x6f5   : > { %v6068_v18 = vpack.c.bf16 %v2444_v59, %v8554_v33  ;;  %v6072_v32 = vpack.c.bf16 %v2521_v26, %v8584_v30  ;;  %v2446_v50 = vpop.f32.mrb[17].mxu1  ;;  %v2523_v39 = vpop.f32.mrb[13].mxu0 }
 0x6f6   : > { %v6066_v42 = vpack.c.bf16 %v2446_v50, %v8556_v21  ;;  %v6070_v34 = vpack.c.bf16 %v2523_v39, %v8588_v7 }
 0x6f8   : > { %v2592_v62 = vpop.f32.mrb[18].mxu1  ;;  %6067 = vmatprep.subr.bf16.mxu0 %v6066_v42  ;;  %v2669_v22 = vpop.f32.mrb[14].mxu0 }
 0x6f9   : > { %v2594_v52 = vpop.f32.mrb[19].mxu1  ;;  %6069 = vmatpush1.bf16.msra.mxu0 %v6068_v18  ;;  %v2671_v25 = vpop.f32.mrb[15].mxu0 }
 0x6fa   : > { %6071 = vmatprep.subr.bf16.mxu0 %v6070_v34 }
 0x6fc   : > { %v2598_v17 = vpop.f32.mrb[20].mxu1  ;;  %v2675_v38 = vpop.f32.mrb[16].mxu0 }
 0x6fd   : > { %v6076_v43 = vpack.c.bf16 %v2598_v17, %v2592_v62  ;;  %v6080_v15 = vpack.c.bf16 %v2675_v38, %v2669_v22  ;;  %v2600_v59 = vpop.f32.mrb[21].mxu1  ;;  %v2677_v33 = vpop.f32.mrb[17].mxu0  ;;  %6073 = vmatpush1.bf16.msra.mxu0 %v6072_v32 }
 0x6fe   : > { %v6074_v30 = vpack.c.bf16 %v2600_v59, %v2594_v52  ;;  %v6078_v26 = vpack.c.bf16 %v2677_v33, %v2671_v25 }
 0x700   : > { %6075 = vmatprep.subr.bf16.mxu0 %v6074_v30 }
 0x701   : > { %6077 = vmatpush1.bf16.msra.mxu0 %v6076_v43  ;;  %v3066_v43 = vld [vmem:[%s10328_s1 + $0x8] sm:$0xff] }
 0x702   : > { %6079 = vmatprep.subr.bf16.mxu0 %v6078_v26  ;;  %4869 = vmatprep.mubr.msk.f32.mxu0 %vm3073_vm4, %v3066_v43 }
 0x705   : > { %6081 = vmatpush1.bf16.msra.mxu0 %v6080_v15 }
 0x738   : > { %v2746_v50 = vpop.f32.mrb[22].mxu1  ;;  %v2823_v39 = vpop.f32.mrb[18].mxu0 }
 0x739   : > { %v2748_v42 = vpop.f32.mrb[23].mxu1  ;;  %v2825_v7 = vpop.f32.mrb[19].mxu0 }
 0x73c   : > { %v2752_v18 = vpop.f32.mrb[24].mxu1  ;;  %v2829_v21 = vpop.f32.mrb[20].mxu0 }
 0x73d   : > { %v6084_v34 = vpack.c.bf16 %v2752_v18, %v2746_v50  ;;  %v6088_v49 = vpack.c.bf16 %v2829_v21, %v2823_v39  ;;  %v2754_v23 = vpop.f32.mrb[25].mxu1  ;;  %v2831_v62 = vpop.f32.mrb[21].mxu0 }
 0x73e   : > { %v6082_v38 = vpack.c.bf16 %v2754_v23, %v2748_v42  ;;  %v6086_v22 = vpack.c.bf16 %v2831_v62, %v2825_v7  ;;  %v3065_v62 = vld [vmem:[%s10328_s1] sm:$0xff] }
 0x740   : > { %6083 = vmatprep.subr.bf16.mxu0 %v6082_v38  ;;  %v10361_v38 = vld [vmem:[#allocation145_spill] sm:$0xff] }
 0x741   : > { %6085 = vmatpush1.bf16.msra.mxu0 %v6084_v34 }
 0x742   : > { %6087 = vmatprep.subr.bf16.mxu0 %v6086_v22  ;;  %v3071_v22 = vpop.permute.xlu1 %3070 }
 0x745   : > { %6089 = vmatpush1.bf16.msra.mxu0 %v6088_v49 }
 0x779   : > { %v2900_v32 = vpop.f32.mrb[26].mxu1  ;;  %v2977_v17 = vpop.f32.mrb[22].mxu0 }
 0x77a   : > { %v2902_v25 = vpop.f32.mrb[27].mxu1  ;;  %v2979_v15 = vpop.f32.mrb[23].mxu0 }
 0x77d   : > { %v2906_v52 = vpop.f32.mrb[28].mxu1  ;;  %v2983_v59 = vpop.f32.mrb[24].mxu0 }
 0x77e   : > { %v6092_v33 = vpack.c.bf16 %v2906_v52, %v2900_v32  ;;  %v6096_v23 = vpack.c.bf16 %v2983_v59, %v2977_v17  ;;  %v2908_v30 = vpop.f32.mrb[29].mxu1  ;;  %v2985_v26 = vpop.f32.mrb[25].mxu0 }
 0x77f   : > { %v6090_v50 = vpack.c.bf16 %v2908_v30, %v2902_v25  ;;  %v6094_v39 = vpack.c.bf16 %v2985_v26, %v2979_v15  ;;  %v4268_v30 = vld [vmem:[%s9222_s19] sm:$0xff] }
 0x781   : > { %6091 = vmatprep.subr.bf16.mxu0 %v6090_v50 }
 0x782   : > { %6093 = vmatpush1.bf16.msra.mxu0 %v6092_v33  ;;  %v3248_v33 = vld [vmem:[%s9216_s13] sm:$0xff] }
 0x783   : > { %6095 = vmatprep.subr.bf16.mxu0 %v6094_v39  ;;  %v4358_v39 = vadd.f32 %v8445_v41, %v8410_v36 }
 0x786   : > { %6097 = vmatpush1.bf16.msra.mxu0 %v6096_v23  ;;  %v4175_v23 = vld [vmem:[%s9220_s17] sm:$0xf] }
 0x7ba   : > { %v3054_v42 = vpop.f32.mrb[30].mxu1 }
 0x7bb   : > { %v3056_v7 = vpop.f32.mrb[31].mxu1 }
 0x7be   : > { %v3060_v18 = vpop.f32.mrb[32].mxu1 }
 0x7bf   : > { %v6100_v49 = vpack.c.bf16 %v3060_v18, %v3054_v42  ;;  %v3062_v21 = vpop.f32.mrb[33].mxu1 }
 0x7c0   : > { %v6098_v34 = vpack.c.bf16 %v3062_v21, %v3056_v7  ;;  %v4377_v21 = vld [vmem:[%s9224_s21 + $0x8] sm:$0xff] }
 0x7c2   : > { %6099 = vmatprep.subr.bf16.mxu0 %v6098_v34  ;;  %v4501_v34 = vld [vmem:[%s9226_s23 + $0x8] sm:$0xff] }
 0x7c3   : > { %6101 = vmatpush1.bf16.msra.mxu0 %v6100_v49 }
 0x7c4   : > { %6103 = vmatprep.subr.bf16.mxu0 %v10115_v9  ;;  %v10349_v9 = vld [vmem:[#allocation121_spill] sm:$0xff] }
 0x7c6   : > { %3142 = vmatmul.mubr.f32.vlgmr.msra.gmra.mrb[26].mxu0 %v3065_v62  ;;  %v4503_v62 = vld [vmem:[%s9226_s23 + $0x18] sm:$0xff] }
 0x7c7   : > { %6105 = vmatpush1.bf16.msra.mxu0 %v10116_v40  ;;  %3402 = vmatprep.mubr.f32.mxu0 %v8410_v36  ;;  %v10350_v40 = vld [vmem:[#allocation123_spill] sm:$0xff] }
 0x7c8   : > { %6107 = vmatprep.subr.bf16.mxu0 %v10117_v14  ;;  %v10351_v14 = vld [vmem:[#allocation125_spill] sm:$0xff] }
 0x7cb   : > { %6109 = vmatpush1.bf16.msra.mxu0 %v10118_v3  ;;  %v10352_v3 = vld [vmem:[#allocation127_spill] sm:$0xff] }
 0x7cc   : > { %6111 = vmatprep.subr.bf16.mxu0 %v10119_v53  ;;  %v10353_v53 = vld [vmem:[#allocation129_spill] sm:$0xff] }
 0x7cf   : > { %6113 = vmatpush1.bf16.msra.mxu0 %v10120_v35  ;;  %v10354_v35 = vld [vmem:[#allocation131_spill] sm:$0xff] }
 0x7d0   : > { %6115 = vmatprep.subr.bf16.mxu0 %v10121_v10  ;;  %v10355_v10 = vld [vmem:[#allocation133_spill] sm:$0xff] }
 0x7d3   : > { %6117 = vmatpush1.bf16.msra.mxu0 %v10122_v28  ;;  %v10356_v28 = vld [vmem:[#allocation135_spill] sm:$0xff] }
 0x7d4   : > { %6119 = vmatprep.subr.bf16.mxu0 %v10123_v55  ;;  %v10357_v55 = vld [vmem:[#allocation137_spill] sm:$0xff] }
 0x7d7   : > { %6121 = vmatpush1.bf16.msra.mxu0 %v10124_v54  ;;  %v10358_v54 = vld [vmem:[#allocation139_spill] sm:$0xff] }
 0x7d8   : > { %6123 = vmatprep.subr.bf16.mxu0 %v10125_v24  ;;  %v10359_v24 = vld [vmem:[#allocation141_spill] sm:$0xff] }
 0x7db   : > { %6125 = vmatpush1.bf16.msra.mxu0 %v10126_v0  ;;  %v10360_v0 = vld [vmem:[#allocation143_spill] sm:$0xff] }
 0x7dc   : > { %6127 = vmatprep.subr.bf16.mxu0 %v10127_v46  ;;  %v10348_v46 = vld [vmem:[#allocation119_spill] sm:$0xff] }
 0x7df   : > { %6129 = vmatpush1.bf16.msra.mxu0 %v10128_v61  ;;  %v10343_v61 = vld [vmem:[#allocation109_spill] sm:$0xff] }
 0x7e0   : > { %6131 = vmatprep.subr.bf16.mxu0 %v10129_v48  ;;  %v10347_v48 = vld [vmem:[#allocation117_spill] sm:$0xff] }
 0x7e3   : > { %6133 = vmatpush1.bf16.msra.mxu0 %v10130_v20  ;;  %v10346_v20 = vld [vmem:[#allocation115_spill] sm:$0xff] }
 0x7e4   : > { %6135 = vmatprep.subr.bf16.mxu0 %v10131_v4  ;;  %v10345_v4 = vld [vmem:[#allocation113_spill] sm:$0xff] }
 0x7e7   : > { %6137 = vmatpush1.bf16.msra.mxu0 %v10132_v45  ;;  %v10344_v45 = vld [vmem:[#allocation111_spill] sm:$0xff] }
 0x7e8   : > { %6139 = vmatprep.subr.bf16.mxu0 %v10133_v29  ;;  %v10342_v29 = vld [vmem:[#allocation107_spill] sm:$0xff] }
 0x7eb   : > { %6141 = vmatpush1.bf16.msra.mxu0 %v10134_v1  ;;  %v10341_v1 = vld [vmem:[#allocation105_spill] sm:$0xff] }
 0x7ec   : > { %6143 = vmatprep.subr.bf16.mxu0 %v10135_v57  ;;  %v10340_v57 = vld [vmem:[#allocation103_spill] sm:$0xff] }
 0x7ef   : > { %6145 = vmatpush1.bf16.msra.mxu0 %v10136_v27  ;;  %v10329_v27 = vld [vmem:[#allocation81_spill] sm:$0xff] }
 0x7f0   : > { %6147 = vmatprep.subr.bf16.mxu0 %v10137_v2  ;;  %v10339_v2 = vld [vmem:[#allocation101_spill] sm:$0xff] }
 0x7f3   : > { %6149 = vmatpush1.bf16.msra.mxu0 %v10138_v47  ;;  %v10338_v47 = vld [vmem:[#allocation99_spill] sm:$0xff] }
 0x7f4   : > { %6151 = vmatprep.subr.bf16.mxu0 %v10139_v37  ;;  %v10330_v37 = vld [vmem:[#allocation83_spill] sm:$0xff] }
 0x7f7   : > { %6153 = vmatpush1.bf16.msra.mxu0 %v10140_v11  ;;  %v10331_v11 = vld [vmem:[#allocation85_spill] sm:$0xff] }
 0x7f8   : > { %6155 = vmatprep.subr.bf16.mxu0 %v10141_v60  ;;  %v10337_v60 = vld [vmem:[#allocation97_spill] sm:$0xff] }
 0x7fb   : > { %6157 = vmatpush1.bf16.msra.mxu0 %v10142_v44  ;;  %v10332_v44 = vld [vmem:[#allocation87_spill] sm:$0xff] }
 0x7fc   : > { %6159 = vmatprep.subr.bf16.mxu0 %v10143_v31  ;;  %v10333_v31 = vld [vmem:[#allocation89_spill] sm:$0xff] }
 0x7ff   : > { %6161 = vmatpush1.bf16.msra.mxu0 %v10144_v19  ;;  %v10334_v19 = vld [vmem:[#allocation91_spill] sm:$0xff] }
 0x800   : > { %6163 = vmatprep.subr.bf16.mxu0 %v10145_v6  ;;  %v10335_v6 = vld [vmem:[#allocation93_spill] sm:$0xff] }
 0x803   : > { %6165 = vmatpush1.bf16.msra.mxu0 %v10146_v58  ;;  %v10336_v58 = vld [vmem:[#allocation95_spill] sm:$0xff] }
 0x804   : > { %6231 = vmatprep.subr.bf16.mxu0 %v10329_v27 }
 0x806   : > { %3403 = vmatmul.mubr.f32.vlgmr.msra.gmra.mrb[28].mxu0 %v8445_v41 }
 0x807   : > { %3408 = vmatprep.mubr.f32.mxu0 %v8482_v63  ;;  %6233 = vmatpush1.bf16.msra.mxu0 %v10330_v37 }
 0x808   : > { %6235 = vmatprep.subr.bf16.mxu0 %v10331_v11  ;;  %v3154_v11 = vld [vmem:[#allocation6] sm:$0xf] }
 0x80a   : > { %3409 = vmatmul.mubr.f32.gmra.mrb[30].mxu0 %v8486_v51 }
 0x80b   : > { %6237 = vmatpush1.bf16.msra.mxu0 %v10332_v44  ;;  %v3159_v44 = vpop.permute.xlu0 %3158 }
 0x80c   : > { %6239 = vmatprep.subr.bf16.mxu0 %v10333_v31 }
 0x80f   : > { %6241 = vmatpush1.bf16.msra.mxu0 %v10334_v19 }
 0x810   : > { %6243 = vmatprep.subr.bf16.mxu0 %v10335_v6 }
 0x813   : > { %6245 = vmatpush1.bf16.msra.mxu0 %v10336_v58 }
 0x814   : > { %6247 = vmatprep.subr.bf16.mxu0 %v10337_v60 }
 0x817   : > { %6249 = vmatpush1.bf16.msra.mxu0 %v10338_v47 }
 0x818   : > { %6251 = vmatprep.subr.bf16.mxu0 %v10339_v2 }
 0x81b   : > { %6253 = vmatpush1.bf16.msra.mxu0 %v10340_v57 }
 0x81c   : > { %6255 = vmatprep.subr.bf16.mxu0 %v10341_v1 }
 0x81f   : > { %6257 = vmatpush1.bf16.msra.mxu0 %v10342_v29 }
 0x820   : > { %6259 = vmatprep.subr.bf16.mxu0 %v10343_v61 }
 0x823   : > { %6261 = vmatpush1.bf16.msra.mxu0 %v10344_v45  ;;  %v3247_v45 = vld [vmem:[%s9215_s12] sm:$0xff] }
 0x824   : > { %6263 = vmatprep.subr.bf16.mxu0 %v10345_v4 }
 0x827   : > { %6265 = vmatpush1.bf16.msra.mxu0 %v10346_v20  ;;  %v10362_v20 = vld [vmem:[#allocation18_spill] sm:$0xff] }
 0x828   : > { %6267 = vmatprep.subr.bf16.mxu0 %v10347_v48  ;;  %v10363_v48 = vld [vmem:[#allocation20_spill] sm:$0xff] }
 0x82b   : > { %6269 = vmatpush1.bf16.msra.mxu0 %v10348_v46  ;;  %v10364_v46 = vld [vmem:[#allocation22_spill] sm:$0xff] }
 0x82c   : > { %6271 = vmatprep.subr.bf16.mxu0 %v10349_v9  ;;  %v10365_v9 = vld [vmem:[#allocation24_spill] sm:$0xff] }
 0x82f   : > { %6273 = vmatpush1.bf16.msra.mxu0 %v10350_v40  ;;  %v10366_v40 = vld [vmem:[#allocation26_spill] sm:$0xff] }
 0x830   : > { %6275 = vmatprep.subr.bf16.mxu0 %v10351_v14  ;;  %v10367_v14 = vld [vmem:[#allocation28_spill] sm:$0xff] }
 0x833   : > { %6277 = vmatpush1.bf16.msra.mxu0 %v10352_v3  ;;  %v10368_v3 = vld [vmem:[#allocation30_spill] sm:$0xff] }
 0x834   : > { %6279 = vmatprep.subr.bf16.mxu0 %v10353_v53  ;;  %v10369_v53 = vld [vmem:[#allocation32_spill] sm:$0xff] }
 0x837   : > { %6281 = vmatpush1.bf16.msra.mxu0 %v10354_v35  ;;  %v10370_v35 = vld [vmem:[#allocation34_spill] sm:$0xff] }
 0x838   : > { %6283 = vmatprep.subr.bf16.mxu0 %v10355_v10  ;;  %v10371_v10 = vld [vmem:[#allocation36_spill] sm:$0xff] }
 0x83b   : > { %6285 = vmatpush1.bf16.msra.mxu0 %v10356_v28  ;;  %v10372_v28 = vld [vmem:[#allocation38_spill] sm:$0xff] }
 0x83c   : > { %6287 = vmatprep.subr.bf16.mxu0 %v10357_v55  ;;  %v10373_v55 = vld [vmem:[#allocation40_spill] sm:$0xff] }
 0x83f   : > { %6289 = vmatpush1.bf16.msra.mxu0 %v10358_v54  ;;  %v10375_v54 = vld [vmem:[#allocation44_spill] sm:$0xff] }
 0x840   : > { %6291 = vmatprep.subr.bf16.mxu0 %v10359_v24  ;;  %v10376_v24 = vld [vmem:[#allocation46_spill] sm:$0xff] }
 0x843   : > { %6293 = vmatpush1.bf16.msra.mxu0 %v10360_v0  ;;  %v10377_v0 = vld [vmem:[#allocation48_spill] sm:$0xff] }
 0x844   : > { %6359 = vmatprep.subr.bf16.mxu0 %v10361_v38  ;;  %v10378_v38 = vld [vmem:[#allocation50_spill] sm:$0xff] }
 0x899   : > { %v3143_v43 = vpop.f32.mrb[26].mxu0 }
 0x89a   : > { %v8767_v32 = vadd.f32 %v3143_v43, %v3071_v22  ;;  %v3145_v17 = vpop.f32.mrb[27].mxu0  ;;  %v10380_v43 = vld [vmem:[#allocation54_spill] sm:$0xff] }
 0x89b   : > { %v8769_v25 = vadd.f32 %v3145_v17, %v3071_v22  ;;  %v10379_v22 = vld [vmem:[#allocation52_spill] sm:$0xff] }
 0x89c   : > { %v3148_v15 = vmax.f32 %v8767_v32, 0.0  ;;  %v10381_v17 = vld [vmem:[#allocation56_spill] sm:$0xff]  ;;  %v10427_v32 = vld [vmem:[#allocation147_spill] sm:$0xff] }
 0x89d   : > { %v3149_v52 = vmax.f32 %v8769_v25, 0.0  ;;  %v8904_v25 = vld [vmem:[%s7525_s22] sm:$0xff] }
 0x89f   : > { %v3150_v59 = vadd.f32 %v3149_v52, %v3148_v15 }
 0x8a1   : > { %3151 = vadd.xlane.f32.xlu1 %v3150_v59  ;;  %v10382_v59 = vld [vmem:[#allocation58_spill] sm:$0xff] }
 0x8b2   : > { %3251 = vperm.xlu1 %6826, %v3248_v33   ;;  %v10383_v33 = vld [vmem:[#allocation60_spill] sm:$0xff] }
 0x8b6   : > { %4178 = vperm.xlu1 %6826, %v4175_v23   ;;  %v10384_v23 = vld [vmem:[#allocation62_spill] sm:$0xff] }
 0x8ba   : > { %4271 = vperm.xlu1 %6826, %v4268_v30   ;;  %v10385_v30 = vld [vmem:[#allocation64_spill] sm:$0xff] }
 0x8d9   : > { %v8786_v26 = vpop.f32.mrb[28].mxu0 }
 0x8da   : > { %v8788_v50 = vpop.f32.mrb[29].mxu0 }
 0x8dd   : > { %v8792_v42 = vpop.f32.mrb[30].mxu0 }
 0x8de   : > { %v6680_v7 = vpack.c.bf16 %v8792_v42, %v8786_v26  ;;  %v8796_v18 = vpop.f32.mrb[31].mxu0  ;;  %4359 = vadd.xlane.f32.xlu1 %v4358_v39  ;;  %v10386_v39 = vld [vmem:[#allocation66_spill] sm:$0xff]  ;;  %v10553_v26 = vld [vmem:[#allocation276_spill] sm:$0xff]  ;;  %v10554_v42 = vld [vmem:[#allocation277_spill] sm:$0xff] }
 0x8df   : > { %v6678_v49 = vpack.c.bf16 %v8796_v18, %v8788_v50  ;;  %v10551_v50 = vld [vmem:[#allocation274_spill] sm:$0xff]  ;;  %v10552_v18 = vld [vmem:[#allocation275_spill] sm:$0xff] }
 0x8ef   : > { %4385 = vperm.xlu1 %6826, %v4377_v21   ;;  %v10387_v21 = vld [vmem:[#allocation68_spill] sm:$0xff] }
 0x8f3   : > { %4511 = vperm.xlu1 %6826, %v4501_v34   ;;  %v10388_v34 = vld [vmem:[#allocation70_spill] sm:$0xff] }
 0x8f7   : > { %4521 = vperm.xlu1 %6826, %v4503_v62   ;;  %v10389_v62 = vld [vmem:[#allocation72_spill] sm:$0xff] }
 0x92e   : > { %v3152_v27 = vpop.xlane.xlu1 %3151 }
 0x92f   : > { %v3153_v37 = vmul.f32 0.00390625, %v3152_v27  ;;  %v10390_v27 = vld [vmem:[#allocation74_spill] sm:$0xff] }
 0x931   : > { %3164 = vmatprep.subr.mxu1 %v3153_v37 }
 0x932   : > { %3165 = vmatpush1.msra.mxu1 %v3153_v37  ;;  %v10391_v37 = vld [vmem:[#allocation76_spill] sm:$0xff] }
 0x933   : > { %4870 = vmatmul.mubr.msk.f32.vlgmr.msra.gmra.mrb[34].mxu1 %vm2192_vm1, %v3154_v11  ;;  %v10392_v11 = vld [vmem:[#allocation78_spill] sm:$0xff] }
 0x934   : > { %3327 = vmatprep.mubr.f32.mxu1 %v10110_v13 }
 0xa06   : > { %v3230_v31 = vpop.f32.mrb[34].mxu1 }
 0xa07   : > { %v3231_v19 = vadd.f32 %v3230_v31, %v3159_v44  ;;  %v3232_v6 = vpop.f32.mrb[35].mxu1  ;;  %v10394_v31 = vld [vmem:[#allocation82_spill] sm:$0xff] }
 0xa08   : > { %v3233_v58 = vadd.f32 %v3232_v6, %v3159_v44  ;;  %v10393_v44 = vld [vmem:[#allocation80_spill] sm:$0xff]  ;;  %v10396_v6 = vld [vmem:[#allocation86_spill] sm:$0xff] }
 0xa09   : > { %v4871_v60 = vmul.f32 -1.442695, %v3231_v19  ;;  %v10395_v19 = vld [vmem:[#allocation84_spill] sm:$0xff] }
 0xa0a   : > { %v4872_v47 = vmul.f32 -1.442695, %v3233_v58  ;;  %v10397_v58 = vld [vmem:[#allocation88_spill] sm:$0xff] }
 0xa0b   : > { %6835 = vpow2.f32 %v4871_v60  ;;  %v10398_v60 = vld [vmem:[#allocation90_spill] sm:$0xff] }
 0xa0c   : > { %6837 = vpow2.f32 %v4872_v47  ;;  %v10399_v47 = vld [vmem:[#allocation92_spill] sm:$0xff] }
 0xa15   : > { %v6836_v2 = vpop.eup %6835 }
 0xa16   : > { %v6838_v57 = vpop.eup %6837  ;;  %v3241_v1 = vadd.f32 1.0, %v6836_v2  ;;  %v10400_v2 = vld [vmem:[#allocation94_spill] sm:$0xff] }
 0xa17   : > { %v3242_v29 = vadd.f32 1.0, %v6838_v57  ;;  %v10401_v57 = vld [vmem:[#allocation96_spill] sm:$0xff] }
 0xa19   : > { %6839 = vrcp.f32 %v3242_v29  ;;  %v10404_v29 = vld [vmem:[#allocation102_spill] sm:$0xff] }
 0xa1a   : > { %6841 = vrcp.f32 %v3241_v1  ;;  %v10402_v1 = vld [vmem:[#allocation98_spill] sm:$0xff] }
 0xa23   : > { %v6840_v61 = vpop.eup %6839 }
 0xa24   : > { %v6842_v4 = vpop.eup %6841  ;;  %4873 = vmatprep.subr.msk.mxu1 %vm2290_vm2, %v6840_v61  ;;  %v10405_v61 = vld [vmem:[#allocation104_spill] sm:$0xff] }
 0xa25   : > { %4874 = vmatpush1.msk.msra.mxu1 %vm2290_vm2, %v6842_v4  ;;  %v10407_v4 = vld [vmem:[#allocation108_spill] sm:$0xff] }
 0xa26   : > { %4875 = vmatmul.mubr.msk.f32.vlgmr.msra.gmra.mrb[36].mxu1 %vm2286_vm3, %v3247_v45  ;;  %6167 = vmatprep.subr.bf16.mxu1 %v10362_v20  ;;  %v10406_v45 = vld [vmem:[#allocation106_spill] sm:$0xff] }
 0xa27   : > { %6169 = vmatpush1.bf16.msra.mxu1 %v10363_v48  ;;  %3485 = vmatprep.mubr.f32.mxu1 %v8410_v36  ;;  %v10374_v36 = vld [vmem:[#allocation42_spill] sm:$0xff]  ;;  %v10409_v48 = vld [vmem:[#allocation112_spill] sm:$0xff] }
 0xa28   : > { %6171 = vmatprep.subr.bf16.mxu1 %v10364_v46  ;;  %v10408_v20 = vld [vmem:[#allocation110_spill] sm:$0xff] }
 0xa29   : > { %v10410_v46 = vld [vmem:[#allocation114_spill] sm:$0xff] }
 0xa2b   : > { %6173 = vmatpush1.bf16.msra.mxu1 %v10365_v9  ;;  %v10411_v9 = vld [vmem:[#allocation116_spill] sm:$0xff] }
 0xa2c   : > { %6175 = vmatprep.subr.bf16.mxu1 %v10366_v40  ;;  %v10412_v40 = vld [vmem:[#allocation118_spill] sm:$0xff] }
 0xa2f   : > { %6177 = vmatpush1.bf16.msra.mxu1 %v10367_v14  ;;  %v10413_v14 = vld [vmem:[#allocation120_spill] sm:$0xff] }
 0xa30   : > { %6179 = vmatprep.subr.bf16.mxu1 %v10368_v3  ;;  %v10414_v3 = vld [vmem:[#allocation122_spill] sm:$0xff] }
 0xa33   : > { %6181 = vmatpush1.bf16.msra.mxu1 %v10369_v53  ;;  %v10415_v53 = vld [vmem:[#allocation124_spill] sm:$0xff] }
 0xa34   : > { %6183 = vmatprep.subr.bf16.mxu1 %v10370_v35  ;;  %v10416_v35 = vld [vmem:[#allocation126_spill] sm:$0xff] }
 0xa37   : > { %6185 = vmatpush1.bf16.msra.mxu1 %v10371_v10  ;;  %v10417_v10 = vld [vmem:[#allocation128_spill] sm:$0xff] }
 0xa38   : > { %6187 = vmatprep.subr.bf16.mxu1 %v10372_v28  ;;  %v10418_v28 = vld [vmem:[#allocation130_spill] sm:$0xff] }
 0xa3b   : > { %6189 = vmatpush1.bf16.msra.mxu1 %v10373_v55  ;;  %v10419_v55 = vld [vmem:[#allocation132_spill] sm:$0xff] }
 0xa3c   : > { %6191 = vmatprep.subr.bf16.mxu1 %v10374_v36  ;;  %v10420_v36 = vld [vmem:[#allocation134_spill] sm:$0xff] }
 0xa3f   : > { %6193 = vmatpush1.bf16.msra.mxu1 %v10375_v54  ;;  %v10421_v54 = vld [vmem:[#allocation136_spill] sm:$0xff] }
 0xa40   : > { %6195 = vmatprep.subr.bf16.mxu1 %v10376_v24  ;;  %v10422_v24 = vld [vmem:[#allocation138_spill] sm:$0xff] }
 0xa43   : > { %6197 = vmatpush1.bf16.msra.mxu1 %v10377_v0  ;;  %v10423_v0 = vld [vmem:[#allocation140_spill] sm:$0xff] }
 0xa44   : > { %6199 = vmatprep.subr.bf16.mxu1 %v10378_v38  ;;  %v10424_v38 = vld [vmem:[#allocation142_spill] sm:$0xff] }
 0xa47   : > { %6201 = vmatpush1.bf16.msra.mxu1 %v10379_v22  ;;  %v10425_v22 = vld [vmem:[#allocation144_spill] sm:$0xff] }
 0xa48   : > { %6203 = vmatprep.subr.bf16.mxu1 %v10380_v43  ;;  %v10426_v43 = vld [vmem:[#allocation146_spill] sm:$0xff] }
 0xa4b   : > { %6205 = vmatpush1.bf16.msra.mxu1 %v10381_v17  ;;  %v3252_v17 = vpop.permute.xlu1 %3251 }
 0xa4c   : > { %6207 = vmatprep.subr.bf16.mxu1 %v10382_v59 }
 0xa4f   : > { %6209 = vmatpush1.bf16.msra.mxu1 %v10383_v33 }
 0xa50   : > { %6211 = vmatprep.subr.bf16.mxu1 %v10384_v23 }
 0xa53   : > { %6213 = vmatpush1.bf16.msra.mxu1 %v10385_v30 }
 0xa54   : > { %6215 = vmatprep.subr.bf16.mxu1 %v10386_v39 }
 0xa57   : > { %6217 = vmatpush1.bf16.msra.mxu1 %v10387_v21 }
 0xa58   : > { %6219 = vmatprep.subr.bf16.mxu1 %v10388_v34 }
 0xa5b   : > { %6221 = vmatpush1.bf16.msra.mxu1 %v10389_v62 }
 0xa5c   : > { %6223 = vmatprep.subr.bf16.mxu1 %v10390_v27  ;;  %v8899_v27 = vld [vmem:[%s7525_s22 + $0x8] sm:$0xff] }
 0xa5f   : > { %6225 = vmatpush1.bf16.msra.mxu1 %v10391_v37  ;;  %v10430_v37 = vld [vmem:[#allocation150_spill] sm:$0xff] }
 0xa60   : > { %6227 = vmatprep.subr.bf16.mxu1 %v10392_v11  ;;  %v10431_v11 = vld [vmem:[#allocation151_spill] sm:$0xff] }
 0xa63   : > { %6229 = vmatpush1.bf16.msra.mxu1 %v10393_v44  ;;  %v10432_v44 = vld [vmem:[#allocation152_spill] sm:$0xff] }
 0xa64   : > { %6295 = vmatprep.subr.bf16.mxu1 %v10394_v31  ;;  %v10433_v31 = vld [vmem:[#allocation153_spill] sm:$0xff] }
 0xa66   : > { %3486 = vmatmul.mubr.f32.vlgmr.msra.gmra.mrb[38].mxu1 %v8445_v41  ;;  %v10403_v41 = vld [vmem:[#allocation100_spill] sm:$0xff] }
 0xa67   : > { %3491 = vmatprep.mubr.f32.mxu1 %v8482_v63  ;;  %6297 = vmatpush1.bf16.msra.mxu1 %v10395_v19  ;;  %v10434_v19 = vld [vmem:[#allocation154_spill] sm:$0xff] }
 0xa68   : > { %6299 = vmatprep.subr.bf16.mxu1 %v10396_v6  ;;  %v10435_v6 = vld [vmem:[#allocation155_spill] sm:$0xff] }
 0xa6a   : > { %3492 = vmatmul.mubr.f32.gmra.mrb[40].mxu1 %v8486_v51 }
 0xa6b   : > { %6301 = vmatpush1.bf16.msra.mxu1 %v10397_v58  ;;  %v10436_v58 = vld [vmem:[#allocation156_spill] sm:$0xff] }
 0xa6c   : > { %6303 = vmatprep.subr.bf16.mxu1 %v10398_v60  ;;  %v10437_v60 = vld [vmem:[#allocation157_spill] sm:$0xff] }
 0xa6f   : > { %6305 = vmatpush1.bf16.msra.mxu1 %v10399_v47  ;;  %v10438_v47 = vld [vmem:[#allocation158_spill] sm:$0xff] }
 0xa70   : > { %6307 = vmatprep.subr.bf16.mxu1 %v10400_v2  ;;  %v10439_v2 = vld [vmem:[#allocation159_spill] sm:$0xff] }
 0xa73   : > { %6309 = vmatpush1.bf16.msra.mxu1 %v10401_v57  ;;  %v10440_v57 = vld [vmem:[#allocation160_spill] sm:$0xff] }
 0xa74   : > { %6311 = vmatprep.subr.bf16.mxu1 %v10402_v1  ;;  %v10441_v1 = vld [vmem:[#allocation161_spill] sm:$0xff] }
 0xa77   : > { %6313 = vmatpush1.bf16.msra.mxu1 %v10403_v41  ;;  %v10442_v41 = vld [vmem:[#allocation162_spill] sm:$0xff] }
 0xa78   : > { %6315 = vmatprep.subr.bf16.mxu1 %v10404_v29  ;;  %v10443_v29 = vld [vmem:[#allocation163_spill] sm:$0xff] }
 0xa7b   : > { %6317 = vmatpush1.bf16.msra.mxu1 %v10405_v61  ;;  %v10444_v61 = vld [vmem:[#allocation164_spill] sm:$0xff] }
 0xa7c   : > { %6319 = vmatprep.subr.bf16.mxu1 %v10406_v45  ;;  %v10445_v45 = vld [vmem:[#allocation165_spill] sm:$0xff] }
 0xa7f   : > { %6321 = vmatpush1.bf16.msra.mxu1 %v10407_v4  ;;  %v10446_v4 = vld [vmem:[#allocation166_spill] sm:$0xff] }
 0xa80   : > { %6323 = vmatprep.subr.bf16.mxu1 %v10408_v20  ;;  %v10447_v20 = vld [vmem:[#allocation167_spill] sm:$0xff] }
 0xa83   : > { %6325 = vmatpush1.bf16.msra.mxu1 %v10409_v48  ;;  %v10448_v48 = vld [vmem:[#allocation168_spill] sm:$0xff] }
 0xa84   : > { %6327 = vmatprep.subr.bf16.mxu1 %v10410_v46  ;;  %v10449_v46 = vld [vmem:[#allocation169_spill] sm:$0xff] }
 0xa87   : > { %6329 = vmatpush1.bf16.msra.mxu1 %v10411_v9  ;;  %v10450_v9 = vld [vmem:[#allocation170_spill] sm:$0xff] }
 0xa88   : > { %6331 = vmatprep.subr.bf16.mxu1 %v10412_v40  ;;  %v10451_v40 = vld [vmem:[#allocation171_spill] sm:$0xff] }
 0xa8b   : > { %6333 = vmatpush1.bf16.msra.mxu1 %v10413_v14  ;;  %v10452_v14 = vld [vmem:[#allocation172_spill] sm:$0xff] }
 0xa8c   : > { %6335 = vmatprep.subr.bf16.mxu1 %v10414_v3  ;;  %v10453_v3 = vld [vmem:[#allocation173_spill] sm:$0xff] }
 0xa8f   : > { %6337 = vmatpush1.bf16.msra.mxu1 %v10415_v53  ;;  %v10454_v53 = vld [vmem:[#allocation174_spill] sm:$0xff] }
 0xa90   : > { %6339 = vmatprep.subr.bf16.mxu1 %v10416_v35  ;;  %v10455_v35 = vld [vmem:[#allocation175_spill] sm:$0xff] }
 0xa93   : > { %6341 = vmatpush1.bf16.msra.mxu1 %v10417_v10  ;;  %v10456_v10 = vld [vmem:[#allocation176_spill] sm:$0xff] }
 0xa94   : > { %6343 = vmatprep.subr.bf16.mxu1 %v10418_v28  ;;  %v10457_v28 = vld [vmem:[#allocation177_spill] sm:$0xff] }
 0xa97   : > { %6345 = vmatpush1.bf16.msra.mxu1 %v10419_v55  ;;  %v10458_v55 = vld [vmem:[#allocation178_spill] sm:$0xff] }
 0xa98   : > { %6347 = vmatprep.subr.bf16.mxu1 %v10420_v36  ;;  %v10459_v36 = vld [vmem:[#allocation179_spill] sm:$0xff] }
 0xa9b   : > { %6349 = vmatpush1.bf16.msra.mxu1 %v10421_v54  ;;  %v10460_v54 = vld [vmem:[#allocation180_spill] sm:$0xff] }
 0xa9c   : > { %6351 = vmatprep.subr.bf16.mxu1 %v10422_v24  ;;  %v10461_v24 = vld [vmem:[#allocation181_spill] sm:$0xff] }
 0xa9f   : > { %6353 = vmatpush1.bf16.msra.mxu1 %v10423_v0  ;;  %v10462_v0 = vld [vmem:[#allocation182_spill] sm:$0xff] }
 0xaa0   : > { %6355 = vmatprep.subr.bf16.mxu1 %v10424_v38  ;;  %v10463_v38 = vld [vmem:[#allocation183_spill] sm:$0xff] }
 0xaa3   : > { %6357 = vmatpush1.bf16.msra.mxu1 %v10425_v22  ;;  %v10464_v22 = vld [vmem:[#allocation184_spill] sm:$0xff] }
 0xaa4   : > { %6423 = vmatprep.subr.bf16.mxu1 %v10426_v43  ;;  %v10465_v43 = vld [vmem:[#allocation185_spill] sm:$0xff] }
 0xaf9   : > { %v3329_v59 = vpop.f32.mrb[36].mxu1 }
 0xafa   : > { %v3330_v33 = vadd.f32 %v3329_v59, %v3252_v17  ;;  %v3331_v23 = vpop.f32.mrb[37].mxu1  ;;  %v10467_v59 = vld [vmem:[#allocation187_spill] sm:$0xff] }
 0xafb   : > { %v3332_v30 = vadd.f32 %v3331_v23, %v3252_v17  ;;  %v10466_v17 = vld [vmem:[#allocation186_spill] sm:$0xff]  ;;  %v10469_v23 = vld [vmem:[#allocation189_spill] sm:$0xff] }
 0xafc   : > { %v3334_v39 = vmax.f32 %v3330_v33, 0.0  ;;  %v10468_v33 = vld [vmem:[#allocation188_spill] sm:$0xff] }
 0xafd   : > { %v3335_v21 = vmax.f32 %v3332_v30, 0.0  ;;  %v10470_v30 = vld [vmem:[#allocation190_spill] sm:$0xff] }
 0xafe   : > { %v8892_v62 = vmul.f32 %v3334_v39, %v3148_v15  ;;  %v10428_v15 = vld [vmem:[#allocation148_spill] sm:$0xff]  ;;  %v10471_v39 = vld [vmem:[#allocation191_spill] sm:$0xff] }
 0xaff   : > { %v8888_v34 = vmul.f32 %v3335_v21, %v3149_v52  ;;  %v10429_v52 = vld [vmem:[#allocation149_spill] sm:$0xff]  ;;  %v10472_v21 = vld [vmem:[#allocation192_spill] sm:$0xff] }
 0xb01   : > { %3414 = vmatprep.mubr.f32.mxu0 %v8888_v34  ;;  %3497 = vmatprep.mubr.f32.mxu1 %v8888_v34 }
 0xb02   : > { %3415 = vmatmul.mubr.f32.gmra.mrb[32].mxu0 %v8892_v62  ;;  %3498 = vmatmul.mubr.f32.gmra.mrb[42].mxu1 %v8892_v62 }
 0xb03   : > { %3568 = vmatprep.mubr.f32.mxu0 %v8899_v27  ;;  %3651 = vmatprep.mubr.f32.mxu1 %v8899_v27 }
 0xb06   : > { %3569 = vmatmul.mubr.f32.vlgmr.msra.gmra.mrb[34].mxu0 %v8904_v25  ;;  %3652 = vmatmul.mubr.f32.vlgmr.msra.gmra.mrb[44].mxu1 %v8904_v25 }
 0xb07   : > { %6361 = vmatpush1.bf16.msra.mxu0 %v10427_v32  ;;  %6425 = vmatpush1.bf16.msra.mxu1 %v10428_v15  ;;  %v10473_v32 = vld [vmem:[#allocation193_spill] sm:$0xff]  ;;  %v10474_v15 = vld [vmem:[#allocation194_spill] sm:$0xff] }
 0xb08   : > { %3574 = vmatprep.mubr.f32.mxu0 %v8482_v63  ;;  %3657 = vmatprep.mubr.f32.mxu1 %v8482_v63 }
 0xb09   : > { %6363 = vmatprep.subr.bf16.mxu0 %v10429_v52  ;;  %6427 = vmatprep.subr.bf16.mxu1 %v10430_v37  ;;  %v10475_v52 = vld [vmem:[#allocation195_spill] sm:$0xff]  ;;  %v10476_v37 = vld [vmem:[#allocation196_spill] sm:$0xff] }
 0xb0a   : > { %3575 = vmatmul.mubr.f32.gmra.mrb[36].mxu0 %v8486_v51  ;;  %3658 = vmatmul.mubr.f32.gmra.mrb[46].mxu1 %v8486_v51 }
 0xb0b   : > { %6365 = vmatpush1.bf16.msra.mxu0 %v10431_v11  ;;  %6429 = vmatpush1.bf16.msra.mxu1 %v10432_v44  ;;  %v10477_v11 = vld [vmem:[#allocation197_spill] sm:$0xff]  ;;  %v10478_v44 = vld [vmem:[#allocation198_spill] sm:$0xff] }
 0xb0c   : > { %3580 = vmatprep.mubr.f32.mxu0 %v8888_v34  ;;  %3663 = vmatprep.mubr.f32.mxu1 %v8888_v34 }
 0xb0d   : > { %6367 = vmatprep.subr.bf16.mxu0 %v10433_v31  ;;  %6431 = vmatprep.subr.bf16.mxu1 %v10434_v19 }
 0xb0e   : > { %3581 = vmatmul.mubr.f32.gmra.mrb[38].mxu0 %v8892_v62  ;;  %3664 = vmatmul.mubr.f32.gmra.mrb[48].mxu1 %v8892_v62 }
 0xb0f   : > { %6369 = vmatpush1.bf16.msra.mxu0 %v10435_v6  ;;  %6433 = vmatpush1.bf16.msra.mxu1 %v10436_v58  ;;  %v10479_v6 = vld [vmem:[#allocation199_spill] sm:$0xff]  ;;  %v10480_v58 = vld [vmem:[#allocation200_spill] sm:$0xff] }
 0xb10   : > { %6371 = vmatprep.subr.bf16.mxu0 %v10437_v60  ;;  %6435 = vmatprep.subr.bf16.mxu1 %v10438_v47  ;;  %v10481_v60 = vld [vmem:[#allocation201_spill] sm:$0xff]  ;;  %v10482_v47 = vld [vmem:[#allocation202_spill] sm:$0xff] }
 0xb11   : > { %3734 = vmatprep.mubr.f32.mxu0 %v8899_v27  ;;  %3817 = vmatprep.mubr.f32.mxu1 %v8899_v27 }
 0xb13   : > { %6373 = vmatpush1.bf16.msra.mxu0 %v10439_v2  ;;  %6437 = vmatpush1.bf16.msra.mxu1 %v10440_v57 }
 0xb14   : > { %6375 = vmatprep.subr.bf16.mxu0 %v10441_v1  ;;  %6439 = vmatprep.subr.bf16.mxu1 %v10442_v41  ;;  %v10483_v1 = vld [vmem:[#allocation203_spill] sm:$0xff]  ;;  %v10484_v41 = vld [vmem:[#allocation204_spill] sm:$0xff] }
 0xb17   : > { %6377 = vmatpush1.bf16.msra.mxu0 %v10443_v29  ;;  %6441 = vmatpush1.bf16.msra.mxu1 %v10444_v61  ;;  %v10485_v29 = vld [vmem:[#allocation205_spill] sm:$0xff]  ;;  %v10486_v61 = vld [vmem:[#allocation206_spill] sm:$0xff] }
 0xb18   : > { %6379 = vmatprep.subr.bf16.mxu0 %v10445_v45  ;;  %6443 = vmatprep.subr.bf16.mxu1 %v10446_v4  ;;  %v10487_v45 = vld [vmem:[#allocation207_spill] sm:$0xff]  ;;  %v10488_v4 = vld [vmem:[#allocation208_spill] sm:$0xff] }
 0xb1b   : > { %6381 = vmatpush1.bf16.msra.mxu0 %v10447_v20  ;;  %6445 = vmatpush1.bf16.msra.mxu1 %v10448_v48  ;;  %v10489_v20 = vld [vmem:[#allocation209_spill] sm:$0xff]  ;;  %v10490_v48 = vld [vmem:[#allocation210_spill] sm:$0xff] }
 0xb1c   : > { %6383 = vmatprep.subr.bf16.mxu0 %v10449_v46  ;;  %6447 = vmatprep.subr.bf16.mxu1 %v10450_v9  ;;  %v10491_v46 = vld [vmem:[#allocation211_spill] sm:$0xff]  ;;  %v10492_v9 = vld [vmem:[#allocation212_spill] sm:$0xff] }
 0xb1f   : > { %6385 = vmatpush1.bf16.msra.mxu0 %v10451_v40  ;;  %6449 = vmatpush1.bf16.msra.mxu1 %v10452_v14  ;;  %v10493_v40 = vld [vmem:[#allocation213_spill] sm:$0xff]  ;;  %v10494_v14 = vld [vmem:[#allocation214_spill] sm:$0xff] }
 0xb20   : > { %6387 = vmatprep.subr.bf16.mxu0 %v10453_v3  ;;  %6451 = vmatprep.subr.bf16.mxu1 %v10454_v53  ;;  %v10495_v3 = vld [vmem:[#allocation215_spill] sm:$0xff]  ;;  %v10496_v53 = vld [vmem:[#allocation216_spill] sm:$0xff] }
 0xb23   : > { %6389 = vmatpush1.bf16.msra.mxu0 %v10455_v35  ;;  %6453 = vmatpush1.bf16.msra.mxu1 %v10456_v10  ;;  %v10497_v35 = vld [vmem:[#allocation217_spill] sm:$0xff]  ;;  %v10498_v10 = vld [vmem:[#allocation218_spill] sm:$0xff] }
 0xb24   : > { %6391 = vmatprep.subr.bf16.mxu0 %v10457_v28  ;;  %6455 = vmatprep.subr.bf16.mxu1 %v10458_v55  ;;  %v10499_v28 = vld [vmem:[#allocation219_spill] sm:$0xff]  ;;  %v10500_v55 = vld [vmem:[#allocation220_spill] sm:$0xff] }
 0xb27   : > { %6393 = vmatpush1.bf16.msra.mxu0 %v10459_v36  ;;  %6457 = vmatpush1.bf16.msra.mxu1 %v10460_v54  ;;  %v10501_v36 = vld [vmem:[#allocation221_spill] sm:$0xff]  ;;  %v10502_v54 = vld [vmem:[#allocation222_spill] sm:$0xff] }
 0xb28   : > { %6395 = vmatprep.subr.bf16.mxu0 %v10461_v24  ;;  %6459 = vmatprep.subr.bf16.mxu1 %v10462_v0  ;;  %v10503_v24 = vld [vmem:[#allocation223_spill] sm:$0xff]  ;;  %v10504_v0 = vld [vmem:[#allocation224_spill] sm:$0xff] }
 0xb2b   : > { %6397 = vmatpush1.bf16.msra.mxu0 %v10463_v38  ;;  %6461 = vmatpush1.bf16.msra.mxu1 %v10464_v22  ;;  %v10505_v38 = vld [vmem:[#allocation225_spill] sm:$0xff]  ;;  %v10506_v22 = vld [vmem:[#allocation226_spill] sm:$0xff] }
 0xb2c   : > { %6399 = vmatprep.subr.bf16.mxu0 %v10465_v43  ;;  %6463 = vmatprep.subr.bf16.mxu1 %v10466_v17  ;;  %v10507_v43 = vld [vmem:[#allocation227_spill] sm:$0xff]  ;;  %v10508_v17 = vld [vmem:[#allocation228_spill] sm:$0xff] }
 0xb2f   : > { %6401 = vmatpush1.bf16.msra.mxu0 %v10467_v59  ;;  %6465 = vmatpush1.bf16.msra.mxu1 %v10468_v33  ;;  %v10509_v59 = vld [vmem:[#allocation229_spill] sm:$0xff]  ;;  %v10510_v33 = vld [vmem:[#allocation230_spill] sm:$0xff] }
 0xb30   : > { %6403 = vmatprep.subr.bf16.mxu0 %v10469_v23  ;;  %6467 = vmatprep.subr.bf16.mxu1 %v10470_v30  ;;  %v10511_v23 = vld [vmem:[#allocation231_spill] sm:$0xff]  ;;  %v10512_v30 = vld [vmem:[#allocation232_spill] sm:$0xff] }
 0xb33   : > { %6405 = vmatpush1.bf16.msra.mxu0 %v10471_v39  ;;  %6469 = vmatpush1.bf16.msra.mxu1 %v10472_v21  ;;  %v10513_v39 = vld [vmem:[#allocation233_spill] sm:$0xff]  ;;  %v10514_v21 = vld [vmem:[#allocation234_spill] sm:$0xff] }
 0xb34   : > { %6407 = vmatprep.subr.bf16.mxu0 %v10473_v32  ;;  %6471 = vmatprep.subr.bf16.mxu1 %v10474_v15  ;;  %v10515_v32 = vld [vmem:[#allocation235_spill] sm:$0xff]  ;;  %v10516_v15 = vld [vmem:[#allocation236_spill] sm:$0xff] }
 0xb37   : > { %6409 = vmatpush1.bf16.msra.mxu0 %v10475_v52  ;;  %6473 = vmatpush1.bf16.msra.mxu1 %v10476_v37  ;;  %v10517_v52 = vld [vmem:[#allocation237_spill] sm:$0xff]  ;;  %v10518_v37 = vld [vmem:[#allocation238_spill] sm:$0xff] }
 0xb38   : > { %6411 = vmatprep.subr.bf16.mxu0 %v10477_v11  ;;  %6475 = vmatprep.subr.bf16.mxu1 %v10478_v44  ;;  %v10519_v11 = vld [vmem:[#allocation239_spill] sm:$0xff]  ;;  %v10520_v44 = vld [vmem:[#allocation240_spill] sm:$0xff] }
 0xb39   : > { %v8970_v31 = vpop.f32.mrb[38].mxu1 }
 0xb3a   : > { %v8972_v19 = vpop.f32.mrb[39].mxu1 }
 0xb3b   : > { %6413 = vmatpush1.bf16.msra.mxu0 %v10479_v6  ;;  %6477 = vmatpush1.bf16.msra.mxu1 %v10480_v58  ;;  %v10521_v6 = vld [vmem:[#allocation241_spill] sm:$0xff]  ;;  %v10522_v58 = vld [vmem:[#allocation242_spill] sm:$0xff] }
 0xb3c   : > { %6415 = vmatprep.subr.bf16.mxu0 %v10481_v60  ;;  %6479 = vmatprep.subr.bf16.mxu1 %v10482_v47  ;;  %v10523_v60 = vld [vmem:[#allocation243_spill] sm:$0xff]  ;;  %v10524_v47 = vld [vmem:[#allocation244_spill] sm:$0xff] }
 0xb3d   : > { %v8978_v2 = vpop.f32.mrb[40].mxu1 }
 0xb3e   : > { %v8980_v57 = vpop.f32.mrb[41].mxu1 }
 0xb3f   : > { %6417 = vmatpush1.bf16.msra.mxu0 %v10483_v1  ;;  %6481 = vmatpush1.bf16.msra.mxu1 %v10484_v41  ;;  %v10525_v1 = vld [vmem:[#allocation245_spill] sm:$0xff]  ;;  %v10526_v41 = vld [vmem:[#allocation246_spill] sm:$0xff] }
 0xb40   : > { %6419 = vmatprep.subr.bf16.mxu0 %v10485_v29  ;;  %6483 = vmatprep.subr.bf16.mxu1 %v10486_v61  ;;  %v10527_v29 = vld [vmem:[#allocation247_spill] sm:$0xff]  ;;  %v10528_v61 = vld [vmem:[#allocation248_spill] sm:$0xff] }
 0xb43   : > { %6421 = vmatpush1.bf16.msra.mxu0 %v10487_v45  ;;  %6485 = vmatpush1.bf16.msra.mxu1 %v10488_v4  ;;  %v10529_v45 = vld [vmem:[#allocation249_spill] sm:$0xff]  ;;  %v10530_v4 = vld [vmem:[#allocation250_spill] sm:$0xff] }
 0xb44   : > { %6487 = vmatprep.subr.bf16.mxu0 %v10489_v20  ;;  %6551 = vmatprep.subr.bf16.mxu1 %v10490_v48  ;;  %v10531_v20 = vld [vmem:[#allocation251_spill] sm:$0xff]  ;;  %v10532_v48 = vld [vmem:[#allocation252_spill] sm:$0xff] }
 0xb46   : > { %3735 = vmatmul.mubr.f32.vlgmr.msra.gmra.mrb[40].mxu0 %v8904_v25  ;;  %3818 = vmatmul.mubr.f32.vlgmr.msra.gmra.mrb[50].mxu1 %v8904_v25 }
 0xb47   : > { %3740 = vmatprep.mubr.f32.mxu0 %v8482_v63  ;;  %3823 = vmatprep.mubr.f32.mxu1 %v8482_v63 }
 0xb48   : > { %6489 = vmatpush1.bf16.msra.mxu0 %v10491_v46  ;;  %6553 = vmatpush1.bf16.msra.mxu1 %v10492_v9  ;;  %v10533_v46 = vld [vmem:[#allocation255_spill] sm:$0xff]  ;;  %v10534_v9 = vld [vmem:[#allocation256_spill] sm:$0xff] }
 0xb49   : > { %6491 = vmatprep.subr.bf16.mxu0 %v10493_v40  ;;  %6555 = vmatprep.subr.bf16.mxu1 %v10494_v14  ;;  %v10535_v40 = vld [vmem:[#allocation257_spill] sm:$0xff]  ;;  %v10536_v14 = vld [vmem:[#allocation258_spill] sm:$0xff] }
 0xb4a   : > { %3741 = vmatmul.mubr.f32.gmra.mrb[42].mxu0 %v8486_v51  ;;  %3824 = vmatmul.mubr.f32.gmra.mrb[52].mxu1 %v8486_v51 }
 0xb4b   : > { %3746 = vmatprep.mubr.f32.mxu0 %v8888_v34  ;;  %3829 = vmatprep.mubr.f32.mxu1 %v8888_v34 }
 0xb4c   : > { %6493 = vmatpush1.bf16.msra.mxu0 %v10495_v3  ;;  %6557 = vmatpush1.bf16.msra.mxu1 %v10496_v53  ;;  %v10537_v3 = vld [vmem:[#allocation259_spill] sm:$0xff]  ;;  %v10538_v53 = vld [vmem:[#allocation260_spill] sm:$0xff] }
 0xb4d   : > { %6495 = vmatprep.subr.bf16.mxu0 %v10497_v35  ;;  %6559 = vmatprep.subr.bf16.mxu1 %v10498_v10  ;;  %v10539_v35 = vld [vmem:[#allocation261_spill] sm:$0xff]  ;;  %v10540_v10 = vld [vmem:[#allocation262_spill] sm:$0xff] }
 0xb4e   : > { %3747 = vmatmul.mubr.f32.gmra.mrb[44].mxu0 %v8892_v62  ;;  %3830 = vmatmul.mubr.f32.gmra.mrb[54].mxu1 %v8892_v62 }
 0xb4f   : > { %3900 = vmatprep.mubr.f32.mxu0 %v8899_v27  ;;  %3983 = vmatprep.mubr.f32.mxu1 %v8899_v27 }
 0xb50   : > { %6497 = vmatpush1.bf16.msra.mxu0 %v10499_v28  ;;  %6561 = vmatpush1.bf16.msra.mxu1 %v10500_v55  ;;  %v10543_v28 = vld [vmem:[#allocation266_spill] sm:$0xff]  ;;  %v10544_v55 = vld [vmem:[#allocation267_spill] sm:$0xff] }
 0xb51   : > { %6499 = vmatprep.subr.bf16.mxu0 %v10501_v36  ;;  %6563 = vmatprep.subr.bf16.mxu1 %v10502_v54  ;;  %v10545_v36 = vld [vmem:[#allocation268_spill] sm:$0xff]  ;;  %v10546_v54 = vld [vmem:[#allocation269_spill] sm:$0xff] }
 0xb54   : > { %6501 = vmatpush1.bf16.msra.mxu0 %v10503_v24  ;;  %6565 = vmatpush1.bf16.msra.mxu1 %v10504_v0  ;;  %v10547_v24 = vld [vmem:[#allocation270_spill] sm:$0xff]  ;;  %v10557_v0 = vld [vmem:[#allocation280_spill] sm:$0xff] }
 0xb55   : > { %6503 = vmatprep.subr.bf16.mxu0 %v10505_v38  ;;  %6567 = vmatprep.subr.bf16.mxu1 %v10506_v22  ;;  %v10558_v38 = vld [vmem:[#allocation281_spill] sm:$0xff]  ;;  %v10559_v22 = vld [vmem:[#allocation282_spill] sm:$0xff] }
 0xb58   : > { %6505 = vmatpush1.bf16.msra.mxu0 %v10507_v43  ;;  %6569 = vmatpush1.bf16.msra.mxu1 %v10508_v17  ;;  %v10560_v43 = vld [vmem:[#allocation283_spill] sm:$0xff]  ;;  %v10561_v17 = vld [vmem:[#allocation284_spill] sm:$0xff] }
 0xb59   : > { %6507 = vmatprep.subr.bf16.mxu0 %v10509_v59  ;;  %6571 = vmatprep.subr.bf16.mxu1 %v10510_v33  ;;  %v10562_v59 = vld [vmem:[#allocation285_spill] sm:$0xff]  ;;  %v10563_v33 = vld [vmem:[#allocation286_spill] sm:$0xff] }
 0xb5c   : > { %6509 = vmatpush1.bf16.msra.mxu0 %v10511_v23  ;;  %6573 = vmatpush1.bf16.msra.mxu1 %v10512_v30  ;;  %v10564_v23 = vld [vmem:[#allocation287_spill] sm:$0xff]  ;;  %v10565_v30 = vld [vmem:[#allocation288_spill] sm:$0xff] }
 0xb5d   : > { %6511 = vmatprep.subr.bf16.mxu0 %v10513_v39  ;;  %6575 = vmatprep.subr.bf16.mxu1 %v10514_v21  ;;  %v10566_v39 = vld [vmem:[#allocation289_spill] sm:$0xff]  ;;  %v10567_v21 = vld [vmem:[#allocation290_spill] sm:$0xff] }
 0xb60   : > { %6513 = vmatpush1.bf16.msra.mxu0 %v10515_v32  ;;  %6577 = vmatpush1.bf16.msra.mxu1 %v10516_v15  ;;  %v10568_v32 = vld [vmem:[#allocation291_spill] sm:$0xff]  ;;  %v10569_v15 = vld [vmem:[#allocation292_spill] sm:$0xff] }
 0xb61   : > { %6515 = vmatprep.subr.bf16.mxu0 %v10517_v52  ;;  %6579 = vmatprep.subr.bf16.mxu1 %v10518_v37  ;;  %v10570_v52 = vld [vmem:[#allocation293_spill] sm:$0xff]  ;;  %v10571_v37 = vld [vmem:[#allocation294_spill] sm:$0xff] }
 0xb64   : > { %6517 = vmatpush1.bf16.msra.mxu0 %v10519_v11  ;;  %6581 = vmatpush1.bf16.msra.mxu1 %v10520_v44  ;;  %v10572_v11 = vld [vmem:[#allocation295_spill] sm:$0xff]  ;;  %v10573_v44 = vld [vmem:[#allocation296_spill] sm:$0xff] }
 0xb65   : > { %6519 = vmatprep.subr.bf16.mxu0 %v10521_v6  ;;  %6583 = vmatprep.subr.bf16.mxu1 %v10522_v58  ;;  %v10574_v6 = vld [vmem:[#allocation297_spill] sm:$0xff]  ;;  %v10575_v58 = vld [vmem:[#allocation298_spill] sm:$0xff] }
 0xb68   : > { %6521 = vmatpush1.bf16.msra.mxu0 %v10523_v60  ;;  %6585 = vmatpush1.bf16.msra.mxu1 %v10524_v47  ;;  %v10576_v60 = vld [vmem:[#allocation299_spill] sm:$0xff]  ;;  %v10577_v47 = vld [vmem:[#allocation300_spill] sm:$0xff] }
 0xb69   : > { %6523 = vmatprep.subr.bf16.mxu0 %v10525_v1  ;;  %6587 = vmatprep.subr.bf16.mxu1 %v10526_v41  ;;  %v10578_v1 = vld [vmem:[#allocation301_spill] sm:$0xff]  ;;  %v10579_v41 = vld [vmem:[#allocation302_spill] sm:$0xff] }
 0xb6c   : > { %6525 = vmatpush1.bf16.msra.mxu0 %v10527_v29  ;;  %6589 = vmatpush1.bf16.msra.mxu1 %v10528_v61 }
 0xb6d   : > { %6527 = vmatprep.subr.bf16.mxu0 %v10529_v45  ;;  %6591 = vmatprep.subr.bf16.mxu1 %v10530_v4 }
 0xb70   : > { %6529 = vmatpush1.bf16.msra.mxu0 %v10531_v20  ;;  %6593 = vmatpush1.bf16.msra.mxu1 %v10532_v48 }
 0xb71   : > { %6531 = vmatprep.subr.bf16.mxu0 %v10288_v5  ;;  %6595 = vmatprep.subr.bf16.mxu1 %v10289_v56  ;;  %v10541_v56 = vld [vmem:[#allocation264_spill] sm:$0xff]  ;;  %v10542_v5 = vld [vmem:[#allocation265_spill] sm:$0xff] }
 0xb74   : > { %6533 = vmatpush1.bf16.msra.mxu0 %v10533_v46  ;;  %6597 = vmatpush1.bf16.msra.mxu1 %v10534_v9 }
 0xb75   : > { %6535 = vmatprep.subr.bf16.mxu0 %v10535_v40  ;;  %6599 = vmatprep.subr.bf16.mxu1 %v10536_v14 }
 0xb78   : > { %6537 = vmatpush1.bf16.msra.mxu0 %v10537_v3  ;;  %6601 = vmatpush1.bf16.msra.mxu1 %v10538_v53 }
 0xb79   : > { %6539 = vmatprep.subr.bf16.mxu0 %v10539_v35  ;;  %6603 = vmatprep.subr.bf16.mxu1 %v10540_v10 }
 0xb7c   : > { %6541 = vmatpush1.bf16.msra.mxu0 %v10298_v12  ;;  %6605 = vmatpush1.bf16.msra.mxu1 %v8170_v16  ;;  %v10548_v16 = vld [vmem:[#allocation271_spill] sm:$0xff]  ;;  %v10550_v12 = vld [vmem:[#allocation273_spill] sm:$0xff] }
 0xb7d   : > { %6543 = vmatprep.subr.bf16.mxu0 %v8172_v8  ;;  %6607 = vmatprep.subr.bf16.mxu1 %v10541_v56  ;;  %v10549_v8 = vld [vmem:[#allocation272_spill] sm:$0xff] }
 0xb80   : > { %6545 = vmatpush1.bf16.msra.mxu0 %v10542_v5  ;;  %6609 = vmatpush1.bf16.msra.mxu1 %v10543_v28 }
 0xb81   : > { %6547 = vmatprep.subr.bf16.mxu0 %v10544_v55  ;;  %6611 = vmatprep.subr.bf16.mxu1 %v10545_v36 }
 0xb84   : > { %6549 = vmatpush1.bf16.msra.mxu0 %v10546_v54  ;;  %6613 = vmatpush1.bf16.msra.mxu1 %v10547_v24 }
 0xb85   : > { %6679 = vmatprep.subr.bf16.mxu1 %v6678_v49  ;;  %6615 = vmatprep.subr.bf16.mxu0 %v10548_v16  ;;  %v10556_v49 = vld [vmem:[#allocation279_spill] sm:$0xff] }
 0xb87   : > { %3901 = vmatmul.mubr.f32.vlgmr.msra.gmra.mrb[46].mxu0 %v8904_v25  ;;  %3984 = vmatmul.mubr.f32.vlgmr.msra.gmra.mrb[56].mxu1 %v8904_v25 }
 0xb88   : > { %3906 = vmatprep.mubr.f32.mxu0 %v8482_v63  ;;  %3989 = vmatprep.mubr.f32.mxu1 %v8482_v63 }
 0xb89   : > { %6617 = vmatpush1.bf16.msra.mxu0 %v10549_v8  ;;  %6681 = vmatpush1.bf16.msra.mxu1 %v6680_v7  ;;  %v10555_v7 = vld [vmem:[#allocation278_spill] sm:$0xff] }
 0xb8a   : > { %6619 = vmatprep.subr.bf16.mxu0 %v10550_v12 }
 0xb8b   : > { %3907 = vmatmul.mubr.f32.gmra.mrb[48].mxu0 %v8486_v51  ;;  %3990 = vmatmul.mubr.f32.gmra.mrb[58].mxu1 %v8486_v51 }
 0xb8c   : > { %3912 = vmatprep.mubr.f32.mxu0 %v8888_v34  ;;  %3995 = vmatprep.mubr.f32.mxu1 %v8888_v34 }
 0xb8d   : > { %6621 = vmatpush1.bf16.msra.mxu0 %v10551_v50 }
 0xb8e   : > { %6623 = vmatprep.subr.bf16.mxu0 %v10552_v18 }
 0xb8f   : > { %3913 = vmatmul.mubr.f32.gmra.mrb[50].mxu0 %v8892_v62  ;;  %3996 = vmatmul.mubr.f32.gmra.mrb[60].mxu1 %v8892_v62 }
 0xb90   : > { %4066 = vmatprep.mubr.f32.mxu0 %v8899_v27 }
 0xb91   : > { %6625 = vmatpush1.bf16.msra.mxu0 %v10553_v26 }
 0xb92   : > { %6627 = vmatprep.subr.bf16.mxu0 %v10554_v42 }
 0xb95   : > { %6629 = vmatpush1.bf16.msra.mxu0 %v10555_v7 }
 0xb96   : > { %6631 = vmatprep.subr.bf16.mxu0 %v10556_v49 }
 0xb99   : > { %6633 = vmatpush1.bf16.msra.mxu0 %v10557_v0 }
 0xb9a   : > { %6635 = vmatprep.subr.bf16.mxu0 %v10558_v38 }
 0xb9d   : > { %6637 = vmatpush1.bf16.msra.mxu0 %v10559_v22 }
 0xb9e   : > { %6639 = vmatprep.subr.bf16.mxu0 %v10560_v43 }
 0xba1   : > { %6641 = vmatpush1.bf16.msra.mxu0 %v10561_v17 }
 0xba2   : > { %6643 = vmatprep.subr.bf16.mxu0 %v10562_v59 }
 0xba5   : > { %6645 = vmatpush1.bf16.msra.mxu0 %v10563_v33 }
 0xba6   : > { %6647 = vmatprep.subr.bf16.mxu0 %v10564_v23 }
 0xba9   : > { %6649 = vmatpush1.bf16.msra.mxu0 %v10565_v30 }
 0xbaa   : > { %6651 = vmatprep.subr.bf16.mxu0 %v10566_v39 }
 0xbad   : > { %6653 = vmatpush1.bf16.msra.mxu0 %v10567_v21  ;;  %v4086_v21 = vld [vmem:[%s9217_s14 + $0x8] sm:$0xff] }
 0xbae   : > { %6655 = vmatprep.subr.bf16.mxu0 %v10568_v32  ;;  %4876 = vmatprep.mubr.msk.f32.mxu1 %vm4093_vm5, %v4086_v21 }
 0xbb1   : > { %6657 = vmatpush1.bf16.msra.mxu0 %v10569_v15 }
 0xbb2   : > { %6659 = vmatprep.subr.bf16.mxu0 %v10570_v52 }
 0xbb5   : > { %6661 = vmatpush1.bf16.msra.mxu0 %v10571_v37 }
 0xbb6   : > { %6663 = vmatprep.subr.bf16.mxu0 %v10572_v11 }
 0xbb9   : > { %6665 = vmatpush1.bf16.msra.mxu0 %v10573_v44 }
 0xbba   : > { %6667 = vmatprep.subr.bf16.mxu0 %v10574_v6 }
 0xbbd   : > { %6669 = vmatpush1.bf16.msra.mxu0 %v10575_v58 }
 0xbbe   : > { %6671 = vmatprep.subr.bf16.mxu0 %v10576_v60 }
 0xbc1   : > { %6673 = vmatpush1.bf16.msra.mxu0 %v10577_v47 }
 0xbc2   : > { %6675 = vmatprep.subr.bf16.mxu0 %v10578_v1 }
 0xbc5   : > { %6677 = vmatpush1.bf16.msra.mxu0 %v10579_v41 }
 0xbc8   : > { %4067 = vmatmul.mubr.f32.vlgmr.msra.gmra.mrb[52].mxu0 %v8904_v25 }
 0xbc9   : > { %4072 = vmatprep.mubr.f32.mxu0 %v8482_v63 }
 0xbcc   : > { %4073 = vmatmul.mubr.f32.gmra.mrb[54].mxu0 %v8486_v51 }
 0xbcd   : > { %4078 = vmatprep.mubr.f32.mxu0 %v8888_v34 }
 0xbd0   : > { %4079 = vmatmul.mubr.f32.gmra.mrb[56].mxu0 %v8892_v62 }
 0xbd1   : > { %4600 = vmatprep.mubr.f32.mxu0 %v10110_v13 }
 0xbd5   : > { %v3416_v29 = vpop.f32.mrb[32].mxu0  ;;  %v3499_v61 = vpop.f32.mrb[42].mxu1 }
 0xbd6   : > { %v6684_v45 = vpack.c.bf16 %v8970_v31, %v3416_v29  ;;  %v6688_v4 = vpack.c.bf16 %v3499_v61, %v8978_v2  ;;  %v3418_v20 = vpop.f32.mrb[33].mxu0  ;;  %v3501_v48 = vpop.f32.mrb[43].mxu1 }
 0xbd7   : > { %v6682_v46 = vpack.c.bf16 %v8972_v19, %v3418_v20  ;;  %v6686_v9 = vpack.c.bf16 %v3501_v48, %v8980_v57 }
 0xbd9   : > { %v3570_v40 = vpop.f32.mrb[34].mxu0  ;;  %6683 = vmatprep.subr.bf16.mxu1 %v6682_v46  ;;  %v3653_v14 = vpop.f32.mrb[44].mxu1 }
 0xbda   : > { %v3572_v3 = vpop.f32.mrb[35].mxu0  ;;  %6685 = vmatpush1.bf16.msra.mxu1 %v6684_v45  ;;  %v3655_v53 = vpop.f32.mrb[45].mxu1 }
 0xbdb   : > { %6687 = vmatprep.subr.bf16.mxu1 %v6686_v9 }
 0xbdd   : > { %v3576_v35 = vpop.f32.mrb[36].mxu0  ;;  %v3659_v10 = vpop.f32.mrb[46].mxu1 }
 0xbde   : > { %v6692_v56 = vpack.c.bf16 %v3576_v35, %v3570_v40  ;;  %v3578_v5 = vpop.f32.mrb[37].mxu0  ;;  %v3661_v31 = vpop.f32.mrb[47].mxu1  ;;  %6689 = vmatpush1.bf16.msra.mxu1 %v6688_v4 }
 0xbdf   : > { %v6690_v2 = vpack.c.bf16 %v3578_v5, %v3572_v3  ;;  %v4091_v5 = vpop.permute.xlu0 %4090 }
 0xbe1   : > { %v3582_v28 = vpop.f32.mrb[38].mxu0  ;;  %v3665_v55 = vpop.f32.mrb[48].mxu1  ;;  %6691 = vmatprep.subr.bf16.mxu1 %v6690_v2 }
 0xbe2   : > { %v6696_v19 = vpack.c.bf16 %v3653_v14, %v3582_v28  ;;  %v6700_v36 = vpack.c.bf16 %v3665_v55, %v3659_v10  ;;  %v3584_v57 = vpop.f32.mrb[39].mxu0  ;;  %v3667_v54 = vpop.f32.mrb[49].mxu1  ;;  %6693 = vmatpush1.bf16.msra.mxu1 %v6692_v56  ;;  %v4085_v56 = vld [vmem:[%s9217_s14] sm:$0xff] }
 0xbe3   : > { %v6694_v24 = vpack.c.bf16 %v3655_v53, %v3584_v57  ;;  %v6698_v16 = vpack.c.bf16 %v3667_v54, %v3661_v31  ;;  %v4361_v54 = vadd.f32 %v8482_v63, %v8486_v51 }
 0xbe5   : > { %6695 = vmatprep.subr.bf16.mxu1 %v6694_v24  ;;  %v4364_v24 = vadd.f32 %v8888_v34, %v8892_v62 }
 0xbe6   : > { %6697 = vmatpush1.bf16.msra.mxu1 %v6696_v19 }
 0xbe7   : > { %6699 = vmatprep.subr.bf16.mxu1 %v6698_v16 }
 0xbea   : > { %6701 = vmatpush1.bf16.msra.mxu1 %v6700_v36 }
 0xc19   : > { %v3736_v8 = vpop.f32.mrb[40].mxu0  ;;  %v3819_v12 = vpop.f32.mrb[50].mxu1 }
 0xc1a   : > { %v3738_v50 = vpop.f32.mrb[41].mxu0  ;;  %v3821_v18 = vpop.f32.mrb[51].mxu1 }
 0xc1d   : > { %v3742_v26 = vpop.f32.mrb[42].mxu0  ;;  %v3825_v42 = vpop.f32.mrb[52].mxu1 }
 0xc1e   : > { %v6704_v7 = vpack.c.bf16 %v3742_v26, %v3736_v8  ;;  %v3744_v49 = vpop.f32.mrb[43].mxu0  ;;  %v3827_v0 = vpop.f32.mrb[53].mxu1 }
 0xc1f   : > { %v6702_v38 = vpack.c.bf16 %v3744_v49, %v3738_v50  ;;  %v4179_v50 = vpop.permute.xlu1 %4178 }
 0xc21   : > { %v3748_v22 = vpop.f32.mrb[44].mxu0  ;;  %v3831_v43 = vpop.f32.mrb[54].mxu1  ;;  %6703 = vmatprep.subr.bf16.mxu1 %v6702_v38 }
 0xc22   : > { %v6708_v17 = vpack.c.bf16 %v3819_v12, %v3748_v22  ;;  %v6712_v59 = vpack.c.bf16 %v3831_v43, %v3825_v42  ;;  %v3750_v33 = vpop.f32.mrb[45].mxu0  ;;  %v3833_v23 = vpop.f32.mrb[55].mxu1  ;;  %6705 = vmatpush1.bf16.msra.mxu1 %v6704_v7  ;;  %v4174_v12 = vld [vmem:[#allocation7] sm:$0xf] }
 0xc23   : > { %v6706_v30 = vpack.c.bf16 %v3821_v18, %v3750_v33  ;;  %v6710_v39 = vpack.c.bf16 %v3833_v23, %v3827_v0 }
 0xc25   : > { %6707 = vmatprep.subr.bf16.mxu1 %v6706_v30 }
 0xc26   : > { %6709 = vmatpush1.bf16.msra.mxu1 %v6708_v17 }
 0xc27   : > { %6711 = vmatprep.subr.bf16.mxu1 %v6710_v39 }
 0xc2a   : > { %6713 = vmatpush1.bf16.msra.mxu1 %v6712_v59  ;;  %v4272_v59 = vpop.permute.xlu1 %4271 }
 0xc2e   : > { %v4360_v23 = vpop.xlane.xlu1 %4359 }
 0xc2f   : > { %v4370_v30 = vmul.f32 0.00390625, %v4360_v23  ;;  %v4498_v23 = vld [vmem:[%s10581_s0 + $0x10] sm:$0xff] }
 0xc5a   : > { %v3902_v32 = vpop.f32.mrb[46].mxu0  ;;  %v3985_v15 = vpop.f32.mrb[56].mxu1 }
 0xc5b   : > { %v3904_v52 = vpop.f32.mrb[47].mxu0  ;;  %v3987_v37 = vpop.f32.mrb[57].mxu1 }
 0xc5e   : > { %v3908_v11 = vpop.f32.mrb[48].mxu0  ;;  %v3991_v44 = vpop.f32.mrb[58].mxu1 }
 0xc5f   : > { %v6716_v6 = vpack.c.bf16 %v3908_v11, %v3902_v32  ;;  %v3910_v58 = vpop.f32.mrb[49].mxu0  ;;  %v3993_v60 = vpop.f32.mrb[59].mxu1  ;;  %v4267_v32 = vld [vmem:[%s9221_s18] sm:$0xff] }
 0xc60   : > { %v6714_v47 = vpack.c.bf16 %v3910_v58, %v3904_v52 }
 0xc62   : > { %v3914_v1 = vpop.f32.mrb[50].mxu0  ;;  %v3997_v41 = vpop.f32.mrb[60].mxu1  ;;  %6715 = vmatprep.subr.bf16.mxu1 %v6714_v47 }
 0xc63   : > { %v6720_v29 = vpack.c.bf16 %v3985_v15, %v3914_v1  ;;  %v6724_v61 = vpack.c.bf16 %v3997_v41, %v3991_v44  ;;  %v3916_v45 = vpop.f32.mrb[51].mxu0  ;;  %v3999_v4 = vpop.f32.mrb[61].mxu1  ;;  %6717 = vmatpush1.bf16.msra.mxu1 %v6716_v6 }
 0xc64   : > { %v6718_v20 = vpack.c.bf16 %v3987_v37, %v3916_v45  ;;  %v6722_v48 = vpack.c.bf16 %v3999_v4, %v3993_v60  ;;  %v4502_v45 = vld [vmem:[%s9226_s23 + $0x10] sm:$0xff]  ;;  %v4642_v4 = vld [vmem:[%s10580_s9] sm:$0xff] }
 0xc66   : > { %6719 = vmatprep.subr.bf16.mxu1 %v6718_v20 }
 0xc67   : > { %6721 = vmatpush1.bf16.msra.mxu1 %v6720_v29  ;;  %v4376_v29 = vld [vmem:[%s9224_s21] sm:$0xff] }
 0xc68   : > { %6723 = vmatprep.subr.bf16.mxu1 %v6722_v48 }
 0xc6b   : > { %6725 = vmatpush1.bf16.msra.mxu1 %v6724_v61  ;;  %v4500_v61 = vld [vmem:[%s9226_s23] sm:$0xff] }
 0xc9b   : > { %v4068_v46 = vpop.f32.mrb[52].mxu0 }
 0xc9c   : > { %v4070_v9 = vpop.f32.mrb[53].mxu0 }
 0xc9f   : > { %v4074_v40 = vpop.f32.mrb[54].mxu0 }
 0xca0   : > { %v6728_v14 = vpack.c.bf16 %v4074_v40, %v4068_v46  ;;  %v4076_v3 = vpop.f32.mrb[55].mxu0 }
 0xca1   : > { %v6726_v53 = vpack.c.bf16 %v4076_v3, %v4070_v9  ;;  %v4375_v3 = vld [vmem:[#allocation9 + $0x8] sm:$0xff] }
 0xca3   : > { %v4080_v35 = vpop.f32.mrb[56].mxu0  ;;  %6727 = vmatprep.subr.bf16.mxu1 %v6726_v53 }
 0xca4   : > { %v4082_v10 = vpop.f32.mrb[57].mxu0  ;;  %6729 = vmatpush1.bf16.msra.mxu1 %v6728_v14  ;;  %v4374_v14 = vld [vmem:[#allocation9] sm:$0xff] }
 0xca5   : > { %4149 = vmatprep.subr.mxu1 %v4082_v10 }
 0xca8   : > { %4150 = vmatpush1.msra.mxu1 %v4080_v35 }
 0xca9   : > { %4162 = vmatmul.mubr.f32.vlgmr.msra.gmra.mrb[62].mxu1 %v4085_v56 }
 0xcaa   : > { %4248 = vmatprep.mubr.f32.mxu1 %v10110_v13 }
 0xd7c   : > { %v4163_v31 = vpop.f32.mrb[62].mxu1 }
 0xd7d   : > { %v4164_v2 = vadd.f32 %v4163_v31, %v4091_v5  ;;  %v4165_v28 = vpop.f32.mrb[63].mxu1 }
 0xd7e   : > { %v4166_v55 = vadd.f32 %v4165_v28, %v4091_v5 }
 0xd7f   : > { %v4168_v19 = vmax.f32 %v4164_v2, 0.0  ;;  %v4386_v2 = vpop.permute.xlu1 %4385 }
 0xd80   : > { %v4169_v36 = vmax.f32 %v4166_v55, 0.0 }
 0xd82   : > { %v4170_v57 = vadd.f32 %v4169_v36, %v4168_v19 }
 0xd84   : > { %4171 = vadd.xlane.f32.xlu0 %v4170_v57 }
 0xd88   : > { %4362 = vadd.xlane.f32.xlu0 %v4361_v54 }
 0xd8c   : > { %4365 = vadd.xlane.f32.xlu0 %v4364_v24 }
 0xe11   : > { %v4172_v16 = vpop.xlane.xlu0 %4171 }
 0xe12   : > { %v4173_v8 = vmul.f32 0.00390625, %v4172_v16 }
 0xe14   : > { %4184 = vmatprep.subr.mxu1 %v4173_v8 }
 0xe15   : > { %4185 = vmatpush1.msra.mxu1 %v4173_v8  ;;  %v4363_v33 = vpop.xlane.xlu0 %4362 }
 0xe16   : > { %4877 = vmatmul.mubr.msk.f32.vlgmr.msra.gmra.mrb[64].mxu1 %vm2192_vm1, %v4174_v12  ;;  %v4371_v39 = vmul.f32 0.00390625, %v4363_v33  ;;  %v4497_v33 = vld [vmem:[%s10581_s0 + $0x8] sm:$0xff] }
 0xe17   : > { %4347 = vmatprep.mubr.f32.mxu1 %v10110_v13 }
 0xe18   : > { %v6730_v52 = vpack.c.bf16 %v4371_v39, %v4370_v30  ;;  %v4499_v30 = vld [vmem:[%s10581_s0 + $0x18] sm:$0xff] }
 0xe19   : > { %v4366_v20 = vpop.xlane.xlu0 %4365 }
 0xe1a   : > { %v4372_v46 = vmul.f32 0.00390625, %v4366_v20 }
 0xee9   : > { %v4250_v18 = vpop.f32.mrb[64].mxu1 }
 0xeea   : > { %v4251_v26 = vadd.f32 %v4250_v18, %v4179_v50  ;;  %v4252_v42 = vpop.f32.mrb[65].mxu1 }
 0xeeb   : > { %v4253_v7 = vadd.f32 %v4252_v42, %v4179_v50 }
 0xeec   : > { %v4878_v49 = vmul.f32 -1.442695, %v4251_v26 }
 0xeed   : > { %v4879_v0 = vmul.f32 -1.442695, %v4253_v7 }
 0xeee   : > { %6843 = vpow2.f32 %v4878_v49 }
 0xeef   : > { %6845 = vpow2.f32 %v4879_v0 }
 0xef8   : > { %v6844_v38 = vpop.eup %6843 }
 0xef9   : > { %v6846_v22 = vpop.eup %6845  ;;  %v4261_v43 = vadd.f32 1.0, %v6844_v38 }
 0xefa   : > { %v4262_v17 = vadd.f32 1.0, %v6846_v22 }
 0xefc   : > { %6847 = vrcp.f32 %v4262_v17 }
 0xefd   : > { %6849 = vrcp.f32 %v4261_v43 }
 0xf06   : > { %v6848_v21 = vpop.eup %6847 }
 0xf07   : > { %v6850_v15 = vpop.eup %6849  ;;  %4880 = vmatprep.subr.msk.mxu1 %vm2290_vm2, %v6848_v21 }
 0xf08   : > { %4881 = vmatpush1.msk.msra.mxu1 %vm2290_vm2, %v6850_v15 }
 0xf09   : > { %4882 = vmatmul.mubr.msk.f32.vlgmr.msra.gmra.mrb[66].mxu1 %vm2286_vm3, %v4267_v32  ;;  %6731 = vmatprep.subr.bf16.mxu1 %v6730_v52 }
 0xf0a   : > { %6733 = vmatpush1.bf16.msra.mxu1 %v6730_v52  ;;  %4459 = vmatprep.mubr.f32.mxu1 %v10110_v13 }
 0xfdc   : > { %v4349_v37 = vpop.f32.mrb[66].mxu1 }
 0xfdd   : > { %v4350_v11 = vadd.f32 %v4349_v37, %v4272_v59  ;;  %v4351_v44 = vpop.f32.mrb[67].mxu1  ;;  %v4512_v37 = vpop.permute.xlu1 %4511 }
 0xfde   : > { %v4352_v6 = vadd.f32 %v4351_v44, %v4272_v59  ;;  %v4496_v59 = vld [vmem:[%s10581_s0] sm:$0xff] }
 0xfdf   : > { %v4354_v58 = vmax.f32 %v4350_v11, 0.0 }
 0xfe0   : > { %v4355_v60 = vmax.f32 %v4352_v6, 0.0 }
 0xfe1   : > { %v9143_v47 = vmul.f32 %v4354_v58, %v4168_v19 }
 0xfe2   : > { %v9145_v1 = vmul.f32 %v4355_v60, %v4169_v36 }
 0xfe4   : > { %v4367_v41 = vadd.f32 %v9145_v1, %v9143_v47 }
 0xfe6   : > { %4368 = vadd.xlane.f32.xlu0 %v4367_v41 }
 0xffc   : > { %4380 = vperm.xlu0 %6825, %v4376_v29  }
0x1000   : > { %4506 = vperm.xlu0 %6825, %v4500_v61  }
0x1004   : > { %4516 = vperm.xlu0 %6825, %v4502_v45  }
0x1008   : > { %4645 = vperm.xlu0 %6825, %v4642_v4  }
0x1073   : > { %v4369_v48 = vpop.xlane.xlu0 %4368 }
0x1074   : > { %v4373_v9 = vmul.f32 0.00390625, %v4369_v48 }
0x1076   : > { %v6734_v40 = vpack.c.bf16 %v4373_v9, %v4372_v46 }
0x1078   : > { %6735 = vmatprep.subr.bf16.mxu1 %v6734_v40 }
0x1079   : > { %6737 = vmatpush1.bf16.msra.mxu1 %v6734_v40 }
0x107b   : > { %v4381_v53 = vpop.permute.xlu0 %4380 }
0x107c   : > { %4883 = vmatmul.mubr.msk.f32.vlgmr.msra.gmra.mrb[68].mxu1 %vm4388_vm6, %v4374_v14 }
0x107d   : > { %4465 = vmatprep.mubr.f32.mxu1 %v10110_v13 }
0x107f   : > { %v4507_v39 = vpop.permute.xlu0 %4506 }
0x1080   : > { %4884 = vmatmul.mubr.msk.f32.gmra.mrb[70].mxu1 %vm4388_vm6, %v4375_v3 }
0x1081   : > { %4715 = vmatprep.mubr.f32.mxu1 %v10110_v13 }
0x114f   : > { %v4461_v35 = vpop.f32.mrb[68].mxu1 }
0x1150   : > { %v4462_v10 = vadd.f32 %v4461_v35, %v4381_v53  ;;  %v4463_v56 = vpop.f32.mrb[69].mxu1 }
0x1151   : > { %v4464_v5 = vadd.f32 %v4463_v56, %v4381_v53  ;;  %v4522_v53 = vpop.permute.xlu1 %4521 }
0x1152   : > { %v4885_v31 = vmul.f32 -1.442695, %v4462_v10 }
0x1153   : > { %v4886_v28 = vmul.f32 -1.442695, %v4464_v5  ;;  %v4467_v55 = vpop.f32.mrb[70].mxu1 }
0x1154   : > { %6851 = vpow2.f32 %v4885_v31  ;;  %v4468_v19 = vadd.f32 %v4467_v55, %v4386_v2  ;;  %v4469_v36 = vpop.f32.mrb[71].mxu1 }
0x1155   : > { %6853 = vpow2.f32 %v4886_v28  ;;  %v4470_v57 = vadd.f32 %v4469_v36, %v4386_v2 }
0x1156   : > { %v4887_v54 = vmul.f32 -1.442695, %v4468_v19 }
0x1157   : > { %v4888_v24 = vmul.f32 -1.442695, %v4470_v57 }
0x1158   : > { %6855 = vpow2.f32 %v4887_v54 }
0x1159   : > { %6857 = vpow2.f32 %v4888_v24 }
0x115e   : > { %v6852_v16 = vpop.eup %6851 }
0x115f   : > { %v6854_v8 = vpop.eup %6853  ;;  %v4484_v12 = vadd.f32 1.0, %v6852_v16  ;;  %v4633_v16 = vld [vmem:[#allocation10] sm:$0xff] }
0x1160   : > { %v4485_v50 = vadd.f32 1.0, %v6854_v8 }
0x1161   : > { %6859 = vrcp.f32 %v4484_v12 }
0x1162   : > { %v6856_v18 = vpop.eup %6855  ;;  %6861 = vrcp.f32 %v4485_v50 }
0x1163   : > { %v6858_v26 = vpop.eup %6857  ;;  %v4486_v42 = vadd.f32 1.0, %v6856_v18 }
0x1164   : > { %v4487_v7 = vadd.f32 1.0, %v6858_v26 }
0x1165   : > { %6863 = vrcp.f32 %v4486_v42 }
0x1166   : > { %6865 = vrcp.f32 %v4487_v7 }
0x116b   : > { %v6860_v49 = vpop.eup %6859 }
0x116c   : > { %v6862_v0 = vpop.eup %6861 }
0x116f   : > { %v6864_v38 = vpop.eup %6863 }
0x1170   : > { %v6866_v22 = vpop.eup %6865  ;;  %v6740_v43 = vpack.c.bf16 %v6864_v38, %v6860_v49 }
0x1171   : > { %v6738_v17 = vpack.c.bf16 %v6866_v22, %v6862_v0 }
0x1173   : > { %6739 = vmatprep.subr.bf16.mxu0 %v6738_v17 }
0x1174   : > { %6741 = vmatpush1.bf16.msra.mxu0 %v6740_v43 }
0x1177   : > { %4889 = vmatmul.mubr.msk.f32.vlgmr.msra.gmra.mrb[58].mxu0 %vm3073_vm4, %v4496_v59 }
0x1178   : > { %4606 = vmatprep.mubr.f32.mxu0 %v10110_v13 }
0x117b   : > { %4890 = vmatmul.mubr.msk.f32.gmra.mrb[60].mxu0 %vm3073_vm4, %v4497_v33 }
0x117c   : > { %4612 = vmatprep.mubr.f32.mxu0 %v10110_v13 }
0x117f   : > { %4891 = vmatmul.mubr.msk.f32.gmra.mrb[62].mxu0 %vm3073_vm4, %v4498_v23 }
0x1180   : > { %4618 = vmatprep.mubr.f32.mxu0 %v10110_v13  ;;  %v4517_v13 = vpop.permute.xlu0 %4516 }
0x1183   : > { %4892 = vmatmul.mubr.msk.f32.gmra.mrb[64].mxu0 %vm3073_vm4, %v4499_v30 }
0x1184   : > { %v4646_v8 = vpop.permute.xlu0 %4645 }
0x124a   : > { %v4602_v21 = vpop.f32.mrb[58].mxu0 }
0x124b   : > { %v4603_v32 = vadd.f32 %v4602_v21, %v4507_v39  ;;  %v4604_v15 = vpop.f32.mrb[59].mxu0 }
0x124c   : > { %v4605_v52 = vadd.f32 %v4604_v15, %v4507_v39 }
0x124d   : > { %v4625_v44 = vmax.f32 %v4603_v32, 0.0 }
0x124e   : > { %v4608_v11 = vpop.f32.mrb[60].mxu0  ;;  %v4626_v60 = vmax.f32 %v4605_v52, 0.0 }
0x124f   : > { %v4609_v6 = vadd.f32 %v4608_v11, %v4512_v37  ;;  %v4610_v58 = vpop.f32.mrb[61].mxu0  ;;  %v4634_v4 = vmul.f32 %v8904_v25, %v4625_v44 }
0x1250   : > { %v4611_v41 = vadd.f32 %v4610_v58, %v4512_v37  ;;  %v4635_v9 = vmul.f32 %v8899_v27, %v4626_v60 }
0x1251   : > { %v4627_v29 = vmax.f32 %v4609_v6, 0.0 }
0x1252   : > { %v4628_v61 = vmax.f32 %v4611_v41, 0.0  ;;  %v4614_v45 = vpop.f32.mrb[62].mxu0 }
0x1253   : > { %v4636_v20 = vmul.f32 %v4627_v29, %v8486_v51  ;;  %v4615_v48 = vadd.f32 %v4614_v45, %v4517_v13  ;;  %v4616_v46 = vpop.f32.mrb[63].mxu0 }
0x1254   : > { %v4637_v40 = vmul.f32 %v4628_v61, %v8482_v63  ;;  %v4617_v14 = vadd.f32 %v4616_v46, %v4517_v13 }
0x1255   : > { %v6744_v3 = vpack.c.bf16 %v4636_v20, %v4634_v4  ;;  %v4629_v56 = vmax.f32 %v4615_v48, 0.0 }
0x1256   : > { %v4620_v35 = vpop.f32.mrb[64].mxu0  ;;  %v6742_v10 = vpack.c.bf16 %v4637_v40, %v4635_v9  ;;  %v4630_v2 = vmax.f32 %v4617_v14, 0.0 }
0x1257   : > { %v4621_v5 = vadd.f32 %v4620_v35, %v4522_v53  ;;  %v4622_v31 = vpop.f32.mrb[65].mxu0  ;;  %v4638_v19 = vmul.f32 %v4629_v56, %v8892_v62 }
0x1258   : > { %v4623_v28 = vadd.f32 %v4622_v31, %v4522_v53  ;;  %6743 = vmatprep.subr.bf16.mxu1 %v6742_v10  ;;  %v4639_v63 = vmul.f32 %v4630_v2, %v8888_v34 }
0x1259   : > { %v4631_v55 = vmax.f32 %v4621_v5, 0.0  ;;  %6745 = vmatpush1.bf16.msra.mxu1 %v6744_v3 }
0x125a   : > { %v4632_v51 = vmax.f32 %v4623_v28, 0.0 }
0x125b   : > { %v4640_v36 = vmul.f32 %v4631_v55, %v9143_v47 }
0x125c   : > { %v4641_v57 = vmul.f32 %v4632_v51, %v9145_v1 }
0x125d   : > { %v6748_v54 = vpack.c.bf16 %v4640_v36, %v4638_v19 }
0x125e   : > { %v6746_v24 = vpack.c.bf16 %v4641_v57, %v4639_v63 }
0x1260   : > { %6747 = vmatprep.subr.bf16.mxu1 %v6746_v24 }
0x1261   : > { %6749 = vmatpush1.bf16.msra.mxu1 %v6748_v54 }
0x1264   : > { %4893 = vmatmul.mubr.msk.f32.vlgmr.msra.gmra.mrb[72].mxu1 %vm4388_vm6, %v4633_v16 }
0x1337   : > { %v4717_v12 = vpop.f32.mrb[72].mxu1 }
0x1338   : > { %v4718_v50 = vadd.f32 %v4717_v12, %v4646_v8  ;;  %v4719_v18 = vpop.f32.mrb[73].mxu1 }
0x1339   : > { %v4720_v62 = vadd.f32 %v4719_v18, %v4646_v8 }
0x133a   : > { %v4722_v34 = vadd.f32 %v8904_v25, %v4718_v50 }
0x133b   : > { %v4723_v47 = vadd.f32 %v8899_v27, %v4720_v62 }
0x133c   : > { %4724 = vst [vmem:[%s871_s5] sm:$0xff] %v4722_v34 }
0x133d   : > { %4725 = vst [vmem:[%s871_s5 + $0x8] sm:$0xff] %v4723_v47 }
0x133e PF: > { %s10583_s26 = sld [smem:[#allocation16_spill]] }
0x1344   : > { %s40_s27 = sadd.s32 1, %s10583_s26  }
0x1345   : > { %p37_p9 = scmp.ge.s32.totalorder %s40_s27, 4  }
0x1347   :  { %39 = sbr.rel (!%p37_p9) target bundleno = 20 (0x14), region = 187 }
0x134e   :  { %4747 = vsyncpa [#allocation3], 1 }
0x134f   :  { %4749 = vsyncpa [#allocation3 + $0x1], 1 }
0x1350   :  { %4750 = vsyncpa [#allocation5], 1 }
0x1351   :  { %4751 = vsyncpa [#allocation8], 1 }
0x1352   :  { %4752 = vsyncpa [#allocation11], 1 }

</bundles_post_ra>
